<compile_context>
chip_gen: v7x
topology: tpu7x:2x2x1
jax: 0.10.0
libtpu: 0.0.40
codegen_flags: <defaults>
</compile_context>

<pallas_src>
import jax
import jax.numpy as jnp
from jax.experimental import pallas as pl
from jax.experimental.pallas import tpu as pltpu

NUM_FEATURES = 1000   # VGG16 output dim
HIDDEN = 512
NUM_CLASSES = 10

F_PAD = 1024          # NUM_FEATURES padded to a lane multiple
N_PAD = 128           # NUM_CLASSES padded to a lane multiple


def _round_up(n, m):
    return ((n + m - 1) // m) * m


def _nbytes(a):
    return int(a.size) * a.dtype.itemsize


def _tiling(in_features):
    """Reduction tile + padded reduction length for the stand-in extractor."""
    k128 = _round_up(in_features, 128)
    tk = min(2048, k128)                 # big, divisibility-independent tile
    k_pad = _round_up(k128, tk)          # zero-padded tail (numerically exact)
    return tk, k_pad


def vgg16_classifier_kernel(xf_ref, wf_ref, bf_ref,
                            w1_ref, b1_ref, w2_ref, b2_ref,
                            o_ref, acc_ref):
    k = pl.program_id(1)

    # Initialize the feats accumulator with the stand-in extractor bias
    # (folds the bias add into the k==0 init instead of a post-reduction add).
    @pl.when(k == 0)
    def _():
        acc_ref[...] = jnp.broadcast_to(bf_ref[...], acc_ref.shape)

    # Stand-in "FeatureExtractor" partial product for this K chunk:
    # [BM, tk](bf16) @ [tk, F_PAD](bf16) accumulated in f32.
    acc_ref[...] += jnp.dot(xf_ref[...], wf_ref[...],
                            preferred_element_type=jnp.float32)

    # Classifier head runs once, after the reduction over in_features finishes.
    @pl.when(k == pl.num_programs(1) - 1)
    def _():
        feats = acc_ref[...].astype(jnp.bfloat16)                 # [BM, F_PAD]
        # classifier[0]: Linear(1000, 512)
        h = jnp.dot(feats, w1_ref[...],
                    preferred_element_type=jnp.float32) + b1_ref[...]
        # classifier[1]: ReLU
        h = jnp.maximum(h, 0.0).astype(jnp.bfloat16)
        # classifier[2]: Linear(512, 10)  (output padded to 128 lanes)
        out = jnp.dot(h, w2_ref[...],
                      preferred_element_type=jnp.float32) + b2_ref[...]
        o_ref[...] = out.astype(o_ref.dtype)


def prepare_params(params):
    """One-time (per weight load) cast + pad of all parameters.

    Hoisted out of the per-call wrapper: padded bf16 weights / f32 biases are
    built once and reused by every forward call.
    """
    in_features = params["wf"].shape[0]
    _, k_pad = _tiling(in_features)

    wf_p = jnp.zeros((k_pad, F_PAD), jnp.bfloat16
                     ).at[:in_features, :NUM_FEATURES].set(
                         params["wf"].astype(jnp.bfloat16))
    bf_p = jnp.zeros((1, F_PAD), jnp.float32
                     ).at[:, :NUM_FEATURES].set(params["bf"])
    w1_p = jnp.zeros((F_PAD, HIDDEN), jnp.bfloat16
                     ).at[:NUM_FEATURES, :].set(params["w1"].astype(jnp.bfloat16))
    b1_p = params["b1"].astype(jnp.float32)
    w2_p = jnp.zeros((HIDDEN, N_PAD), jnp.bfloat16
                     ).at[:, :NUM_CLASSES].set(params["w2"].astype(jnp.bfloat16))
    b2_p = jnp.zeros((1, N_PAD), jnp.float32
                     ).at[:, :NUM_CLASSES].set(params["b2"])

    return {"wf": wf_p, "bf": bf_p, "w1": w1_p, "b1": b1_p,
            "w2": w2_p, "b2": b2_p}


def vgg16_classifier_forward(x, prep):
    """x: [B, C, H, W] float32 (NCHW).  prep: output of prepare_params.

    Returns logits [B, 10] (float32).
    """
    B = x.shape[0]
    x_flat = x.reshape(B, -1)          # [B, C*H*W], row-major flatten
    K = x_flat.shape[1]

    tk, K_pad = _tiling(K)
    assert prep["wf"].shape == (K_pad, F_PAD), (
        "prepared params do not match this input's in_features")

    # ---- batch tiling -------------------------------------------------------
    Bp = _round_up(B, 16)              # 16 rows = one full bf16 vreg sublane set
    if Bp <= 512:
        BM = Bp                        # single batch tile
    else:
        BM = 512                       # big tile so wf is re-streamed rarely
        Bp = _round_up(B, BM)

    # Activations: cast + zero-pad per call (K padding is required since K_pad
    # is a multiple of tk; bf16 halves the kernel-side read).
    x_p = jnp.zeros((Bp, K_pad), jnp.bfloat16
                    ).at[:B, :K].set(x_flat.astype(jnp.bfloat16))

    nb = Bp // BM
    nk = K_pad // tk
    grid = (nb, nk)                    # (batch tiles, reduction tiles)

    flops = 2 * Bp * (K_pad * F_PAD + F_PAD * HIDDEN + HIDDEN * N_PAD)
    # wf / head weights are re-read once per batch tile.
    bytes_accessed = (
        _nbytes(x_p)
        + nb * (_nbytes(prep["wf"]) + _nbytes(prep["bf"]) + _nbytes(prep["w1"])
                + _nbytes(prep["b1"]) + _nbytes(prep["w2"]) + _nbytes(prep["b2"]))
        + Bp * N_PAD * 4)

    out = pl.pallas_call(
        vgg16_classifier_kernel,
        out_shape=jax.ShapeDtypeStruct((Bp, N_PAD), jnp.float32),
        grid_spec=pltpu.PrefetchScalarGridSpec(
            num_scalar_prefetch=0,
            grid=grid,
            in_specs=[
                pl.BlockSpec((BM, tk), lambda b, k: (b, k)),         # x chunk
                pl.BlockSpec((tk, F_PAD), lambda b, k: (k, 0)),      # wf chunk
                pl.BlockSpec((1, F_PAD), lambda b, k: (0, 0)),       # bf
                pl.BlockSpec((F_PAD, HIDDEN), lambda b, k: (0, 0)),  # w1
                pl.BlockSpec((1, HIDDEN), lambda b, k: (0, 0)),      # b1
                pl.BlockSpec((HIDDEN, N_PAD), lambda b, k: (0, 0)),  # w2
                pl.BlockSpec((1, N_PAD), lambda b, k: (0, 0)),       # b2
            ],
            out_specs=pl.BlockSpec((BM, N_PAD), lambda b, k: (b, 0)),
            scratch_shapes=[pltpu.VMEM((BM, F_PAD), jnp.float32)],   # feats acc
        ),
        compiler_params=pltpu.CompilerParams(
            dimension_semantics=("parallel", "arbitrary"),
            # Above scoped defaults everywhere; safely below v7x's 64 MiB
            # physical VMEM (live tiles at BM=512/tk=2048 are ~17-21 MiB).
            vmem_limit_bytes=48 * 1024 * 1024,
        ),
        cost_estimate=pl.CostEstimate(
            flops=flops, transcendentals=0, bytes_accessed=bytes_accessed),
    )(x_p, prep["wf"], prep["bf"], prep["w1"], prep["b1"],
      prep["w2"], prep["b2"])

    return out[:B, :NUM_CLASSES]


def init_params(key, in_features):
    """Deterministic parameter init (shapes follow the module's __init__).

    Weights are stored as [in, out] (transposed vs. nn.Linear's [out, in]) so
    the kernel can compute x @ W + b directly; biases are [1, out] for clean
    2-D broadcasting on TPU.  Stored in f32; prepare_params casts/pads once.
    """
    ks = jax.random.split(key, 6)

    def uniform(k, shape, fan_in):
        bound = 1.0 / jnp.sqrt(fan_in)
        return jax.random.uniform(k, shape, jnp.float32, -bound, bound)

    return {
        # stand-in feature extractor: Linear(in_features, 1000)
        "wf": uniform(ks[0], (in_features, NUM_FEATURES), in_features),
        "bf": uniform(ks[1], (1, NUM_FEATURES), in_features),
        # classifier[0]: Linear(1000, 512)
        "w1": uniform(ks[2], (NUM_FEATURES, HIDDEN), NUM_FEATURES),
        "b1": uniform(ks[3], (1, HIDDEN), NUM_FEATURES),
        # classifier[2]: Linear(512, 10)
        "w2": uniform(ks[4], (HIDDEN, NUM_CLASSES), HIDDEN),
        "b2": uniform(ks[5], (1, NUM_CLASSES), HIDDEN),
    }


def _reference(x, params):
    """Pure-JAX reference mirroring the kernel's bf16-operand / f32-accum math."""
    x_flat = x.reshape(x.shape[0], -1).astype(jnp.bfloat16)
    wf = params["wf"].astype(jnp.bfloat16)
    feats = jnp.dot(x_flat, wf,
                    preferred_element_type=jnp.float32) + params["bf"]
    h = jnp.dot(feats.astype(jnp.bfloat16),
                params["w1"].astype(jnp.bfloat16),
                preferred_element_type=jnp.float32) + params["b1"]
    h = jnp.maximum(h, 0.0)
    out = jnp.dot(h.astype(jnp.bfloat16),
                  params["w2"].astype(jnp.bfloat16),
                  preferred_element_type=jnp.float32) + params["b2"]
    return out


if __name__ == "__main__":
    key = jax.random.PRNGKey(0)
    k_x, k_p = jax.random.split(key)

    # Small NCHW image batch (VGG16-style 3-channel input, reduced spatial size).
    B, C, H, W = 2, 3, 16, 16
    x = jax.random.normal(k_x, (B, C, H, W), jnp.float32)

    params = init_params(k_p, C * H * W)
    prep = prepare_params(params)                 # one-time weight cast + pad
    prep = jax.block_until_ready(prep)

    fwd = jax.jit(vgg16_classifier_forward)
    out = fwd(x, prep)
    out = jax.block_until_ready(out)

    ref = _reference(x, params)
    assert out.shape == (B, NUM_CLASSES)
    assert jnp.allclose(out, ref, atol=1e-2, rtol=1e-2)

    print("KERNEL_OK")
</pallas_src>

<mosaic_0001>
module attributes {stable_mosaic.version = 11 : i64} {
  func.func @vgg16_classifier_kernel(%arg0: i32, %arg1: i32, %arg2: memref<16x768xbf16, #tpu.memory_space<vmem>>, %arg3: memref<768x1024xbf16, #tpu.memory_space<vmem>>, %arg4: memref<1x1024xf32, #tpu.memory_space<vmem>>, %arg5: memref<1024x512xbf16, #tpu.memory_space<vmem>>, %arg6: memref<1x512xf32, #tpu.memory_space<vmem>>, %arg7: memref<512x128xbf16, #tpu.memory_space<vmem>>, %arg8: memref<1x128xf32, #tpu.memory_space<vmem>>, %arg9: memref<16x128xf32, #tpu.memory_space<vmem>>, %arg10: memref<16x1024xf32, #tpu.memory_space<vmem>>) attributes {dimension_semantics = [#tpu.dimension_semantics<parallel>, #tpu.dimension_semantics<arbitrary>], iteration_bounds = array<i64: 1, 1>, scalar_prefetch = 0 : i64, scratch_operands = 1 : i64, tpu.core_type = #tpu.core_type<tc>, window_params = [{transform_indices = @transform_0, window_bounds = array<i64: 16, 768>}, {transform_indices = @transform_1, window_bounds = array<i64: 768, 1024>}, {pipeline_mode = #tpu.pipeline_mode<synchronous>, transform_indices = @transform_2, window_bounds = array<i64: 1, 1024>}, {pipeline_mode = #tpu.pipeline_mode<synchronous>, transform_indices = @transform_3, window_bounds = array<i64: 1024, 512>}, {pipeline_mode = #tpu.pipeline_mode<synchronous>, transform_indices = @transform_4, window_bounds = array<i64: 1, 512>}, {pipeline_mode = #tpu.pipeline_mode<synchronous>, transform_indices = @transform_5, window_bounds = array<i64: 512, 128>}, {pipeline_mode = #tpu.pipeline_mode<synchronous>, transform_indices = @transform_6, window_bounds = array<i64: 1, 128>}, {transform_indices = @transform_7, window_bounds = array<i64: 16, 128>}]} {
    %c0_i32 = arith.constant 0 : i32
    %0 = arith.cmpi eq, %arg1, %c0_i32 : i32
    %1 = arith.extui %0 : i1 to i32
    %c0_i32_0 = arith.constant 0 : i32
    %2 = arith.cmpi ne, %1, %c0_i32_0 : i32
    scf.if %2 {
      %c0_10 = arith.constant 0 : index
      %c0_11 = arith.constant 0 : index
      %12 = vector.load %arg4[%c0_10, %c0_11] : memref<1x1024xf32, #tpu.memory_space<vmem>>, vector<1x1024xf32>
      %13 = vector.shape_cast %12 : vector<1x1024xf32> to vector<1x1024xf32>
      %14 = vector.broadcast %13 : vector<1x1024xf32> to vector<16x1024xf32>
      %c0_12 = arith.constant 0 : index
      %c0_13 = arith.constant 0 : index
      %15 = vector.load %arg10[%c0_12, %c0_13] : memref<16x1024xf32, #tpu.memory_space<vmem>>, vector<16x1024xf32>
      tpu.vector_store %arg10[%c0_12, %c0_13], %14 {strides = array<i32>} : memref<16x1024xf32, #tpu.memory_space<vmem>>, vector<16x1024xf32>,
    } else {
    }
    %c0 = arith.constant 0 : index
    %c0_1 = arith.constant 0 : index
    %3 = vector.load %arg10[%c0, %c0_1] : memref<16x1024xf32, #tpu.memory_space<vmem>>, vector<16x1024xf32>
    %c0_2 = arith.constant 0 : index
    %c0_3 = arith.constant 0 : index
    %4 = vector.load %arg2[%c0_2, %c0_3] : memref<16x768xbf16, #tpu.memory_space<vmem>>, vector<16x768xbf16>
    %c0_4 = arith.constant 0 : index
    %c0_5 = arith.constant 0 : index
    %5 = vector.load %arg3[%c0_4, %c0_5] : memref<768x1024xbf16, #tpu.memory_space<vmem>>, vector<768x1024xbf16>
    %cst = arith.constant dense<0.000000e+00> : vector<16x1024xf32>
    %6 = tpu.matmul %4, %5, %cst {dimension_numbers = #tpu.dot_dimension_numbers<[1], [0], [0], [1], [0, 0, 1, 1], [], []>} : vector<16x768xbf16>, vector<768x1024xbf16>, vector<16x1024xf32> -> vector<16x1024xf32>
    %7 = arith.addf %3, %6 : vector<16x1024xf32>
    %c0_6 = arith.constant 0 : index
    %c0_7 = arith.constant 0 : index
    %8 = vector.load %arg10[%c0_6, %c0_7] : memref<16x1024xf32, #tpu.memory_space<vmem>>, vector<16x1024xf32>
    tpu.vector_store %arg10[%c0_6, %c0_7], %7 {strides = array<i32>} : memref<16x1024xf32, #tpu.memory_space<vmem>>, vector<16x1024xf32>,
    %c0_i32_8 = arith.constant 0 : i32
    %9 = arith.cmpi eq, %arg1, %c0_i32_8 : i32
    %10 = arith.extui %9 : i1 to i32
    %c0_i32_9 = arith.constant 0 : i32
    %11 = arith.cmpi ne, %10, %c0_i32_9 : i32
    scf.if %11 {
      %c0_10 = arith.constant 0 : index
      %c0_11 = arith.constant 0 : index
      %12 = vector.load %arg10[%c0_10, %c0_11] : memref<16x1024xf32, #tpu.memory_space<vmem>>, vector<16x1024xf32>
      %13 = arith.truncf %12 : vector<16x1024xf32> to vector<16x1024xbf16>
      %c0_12 = arith.constant 0 : index
      %c0_13 = arith.constant 0 : index
      %14 = vector.load %arg5[%c0_12, %c0_13] : memref<1024x512xbf16, #tpu.memory_space<vmem>>, vector<1024x512xbf16>
      %cst_14 = arith.constant dense<0.000000e+00> : vector<16x512xf32>
      %15 = tpu.matmul %13, %14, %cst_14 {dimension_numbers = #tpu.dot_dimension_numbers<[1], [0], [0], [1], [0, 0, 1, 1], [], []>} : vector<16x1024xbf16>, vector<1024x512xbf16>, vector<16x512xf32> -> vector<16x512xf32>
      %c0_15 = arith.constant 0 : index
      %c0_16 = arith.constant 0 : index
      %16 = vector.load %arg6[%c0_15, %c0_16] : memref<1x512xf32, #tpu.memory_space<vmem>>, vector<1x512xf32>
      %17 = vector.broadcast %16 : vector<1x512xf32> to vector<16x512xf32>
      %18 = arith.addf %15, %17 : vector<16x512xf32>
      %cst_17 = arith.constant 0.000000e+00 : f32
      %19 = vector.broadcast %cst_17 : f32 to vector<16x512xf32>
      %20 = arith.maximumf %18, %19 : vector<16x512xf32>
      %21 = arith.truncf %20 : vector<16x512xf32> to vector<16x512xbf16>
      %c0_18 = arith.constant 0 : index
      %c0_19 = arith.constant 0 : index
      %22 = vector.load %arg7[%c0_18, %c0_19] : memref<512x128xbf16, #tpu.memory_space<vmem>>, vector<512x128xbf16>
      %cst_20 = arith.constant dense<0.000000e+00> : vector<16x128xf32>
      %23 = tpu.matmul %21, %22, %cst_20 {dimension_numbers = #tpu.dot_dimension_numbers<[1], [0], [0], [1], [0, 0, 1, 1], [], []>} : vector<16x512xbf16>, vector<512x128xbf16>, vector<16x128xf32> -> vector<16x128xf32>
      %c0_21 = arith.constant 0 : index
      %c0_22 = arith.constant 0 : index
      %24 = vector.load %arg8[%c0_21, %c0_22] : memref<1x128xf32, #tpu.memory_space<vmem>>, vector<1x128xf32>
      %25 = vector.broadcast %24 : vector<1x128xf32> to vector<16x128xf32>
      %26 = arith.addf %23, %25 : vector<16x128xf32>
      %c0_23 = arith.constant 0 : index
      %c0_24 = arith.constant 0 : index
      %27 = vector.load %arg9[%c0_23, %c0_24] : memref<16x128xf32, #tpu.memory_space<vmem>>, vector<16x128xf32>
      tpu.vector_store %arg9[%c0_23, %c0_24], %26 {strides = array<i32>} : memref<16x128xf32, #tpu.memory_space<vmem>>, vector<16x128xf32>,
    } else {
    }
    return
  }
  func.func @transform_0(%arg0: i32, %arg1: i32) -> (i32, i32) {
    %c0_i32 = arith.constant 0 : i32
    return %arg0, %arg1 : i32, i32
  }
  func.func @transform_1(%arg0: i32, %arg1: i32) -> (i32, i32) {
    %c0_i32 = arith.constant 0 : i32
    %c0_i32_0 = arith.constant 0 : i32
    return %arg1, %c0_i32 : i32, i32
  }
  func.func @transform_2(%arg0: i32, %arg1: i32) -> (i32, i32) {
    %c0_i32 = arith.constant 0 : i32
    %c0_i32_0 = arith.constant 0 : i32
    %c0_i32_1 = arith.constant 0 : i32
    return %c0_i32, %c0_i32_0 : i32, i32
  }
  func.func @transform_3(%arg0: i32, %arg1: i32) -> (i32, i32) {
    %c0_i32 = arith.constant 0 : i32
    %c0_i32_0 = arith.constant 0 : i32
    %c0_i32_1 = arith.constant 0 : i32
    return %c0_i32, %c0_i32_0 : i32, i32
  }
  func.func @transform_4(%arg0: i32, %arg1: i32) -> (i32, i32) {
    %c0_i32 = arith.constant 0 : i32
    %c0_i32_0 = arith.constant 0 : i32
    %c0_i32_1 = arith.constant 0 : i32
    return %c0_i32, %c0_i32_0 : i32, i32
  }
  func.func @transform_5(%arg0: i32, %arg1: i32) -> (i32, i32) {
    %c0_i32 = arith.constant 0 : i32
    %c0_i32_0 = arith.constant 0 : i32
    %c0_i32_1 = arith.constant 0 : i32
    return %c0_i32, %c0_i32_0 : i32, i32
  }
  func.func @transform_6(%arg0: i32, %arg1: i32) -> (i32, i32) {
    %c0_i32 = arith.constant 0 : i32
    %c0_i32_0 = arith.constant 0 : i32
    %c0_i32_1 = arith.constant 0 : i32
    return %c0_i32, %c0_i32_0 : i32, i32
  }
  func.func @transform_7(%arg0: i32, %arg1: i32) -> (i32, i32) {
    %c0_i32 = arith.constant 0 : i32
    %c0_i32_0 = arith.constant 0 : i32
    return %arg0, %c0_i32 : i32, i32
  }
}

</mosaic_0001>

<bundles_post_ra>
// kernel: vgg16_classifier_forward.1
= control target key start
LH: loop header
LB: loop body
LE: loop exit
PB: predicated region body
PF: predicated region fallthrough
CT: control target
= control target key end

     0   :  { %12 = vsyncpa [#allocation4], 0  ;;  %s6953_s0 = inlined_call_operand.vmem [shape: bf16[16,768], index: 0, kind: input, shape index: {}]   ;;  %s6954_s1 = inlined_call_operand.hbm [shape: bf16[768,1024], index: 1, kind: input, shape index: {}]   ;;  %s6955_s2 = inlined_call_operand.hbm [shape: f32[1,1024], index: 2, kind: input, shape index: {}]   ;;  %s6956_s3 = inlined_call_operand.hbm [shape: bf16[1024,512], index: 3, kind: input, shape index: {}]   ;;  %s6957_s4 = inlined_call_operand.hbm [shape: f32[1,512], index: 4, kind: input, shape index: {}]   ;;  %s6958_s5 = inlined_call_operand.hbm [shape: bf16[512,128], index: 5, kind: input, shape index: {}]   ;;  %s6959_s6 = inlined_call_operand.hbm [shape: f32[1,128], index: 6, kind: input, shape index: {}]   ;;  %s6960_s7 = inlined_call_operand.vmem [shape: f32[16,128], index: 7, kind: output, shape index: {}]  }
   0x1   :  { %13 = vsyncpa [#allocation6], 0 }
   0x2   :  { %14 = vsyncpa [#allocation9], 0 }
   0x3   :  { %15 = vsyncpa [#allocation12], 0  ;;  %s6735_s24 = smov [#allocation5]   ;;  %s6736_s26 = smov [#allocation8]  }
   0x4   :  { %s36_s25 = sshll.u32 %s6735_s24, 4  ;;  %s58_s27 = sshll.u32 %s6736_s26, 4  ;;  %s37_s25 = int_to_ptr.vmem [resolvable:$true] %s36_s25  ;;  %s59_s27 = int_to_ptr.vmem [resolvable:$true] %s58_s27 }
   0x5   :  { %s6595_s30 = scalar_lea.hbm %s6955_s2, 128 }
   0x6   :  { %p6596_p0 = scmp.ne.s32.totalorder %s6955_s2, %s6595_s30  ;;  %p6599_p1 = scmp.lt.u32.totalorder %s6595_s30, %s6955_s2 }
   0x8   :  { %p6601_p2 = pnand %p6599_p1, %p6596_p0 }
   0xa   :  { %6604 = shalt.err (!%p6601_p2)
}
   0xb   :  { %s6605_s12 = scalar_lea.vmem %s37_s25, 128  ;;  %p6610_p4 = scmp.lt.s32.totalorder %s37_s25, %s37_s25 }
   0xc   :  { %p6606_p3 = scmp.ne.s32.totalorder %s37_s25, %s6605_s12  ;;  %p6611_p5 = scmp.lt.s32.totalorder %s6605_s12, %s6605_s12 }
   0xe   :  { %p6612_p6 = por %p6611_p5, %p6610_p4 }
  0x10   :  { %p6613_p7 = pnand %p6612_p6, %p6606_p3 }
  0x12   :  { %6616 = shalt.err (!%p6613_p7)
}
  0x13   :  { %39 = dma.hbm_to_vmem [thread:$0]  %s6955_s2, 128, %s37_s25, [#allocation6]  }
  0x14   :  { %s6617_s17 = scalar_lea.hbm %s6957_s4, 64 }
  0x15   :  { %p6618_p8 = scmp.ne.s32.totalorder %s6957_s4, %s6617_s17  ;;  %p6621_p9 = scmp.lt.u32.totalorder %s6617_s17, %s6957_s4 }
  0x17   :  { %p6623_p10 = pnand %p6621_p9, %p6618_p8 }
  0x19   :  { %6626 = shalt.err (!%p6623_p10)
}
  0x1a   :  { %s6627_s22 = scalar_lea.vmem %s59_s27, 64  ;;  %p6632_p12 = scmp.lt.s32.totalorder %s59_s27, %s59_s27 }
  0x1b   :  { %p6628_p11 = scmp.ne.s32.totalorder %s59_s27, %s6627_s22  ;;  %p6633_p13 = scmp.lt.s32.totalorder %s6627_s22, %s6627_s22 }
  0x1d   :  { %p6634_p0 = por %p6633_p13, %p6632_p12 }
  0x1f   :  { %p6635_p1 = pnand %p6634_p0, %p6628_p11 }
  0x21   :  { %6638 = shalt.err (!%p6635_p1)
}
  0x22   :  { %61 = dma.hbm_to_vmem [thread:$0]  %s6957_s4, 64, %s59_s27, [#allocation9]  }
  0x23   :  { %s6737_s24 = smov [#allocation3]   ;;  %s6639_s29 = scalar_lea.hbm %s6954_s1, 49152 }
  0x24   :  { %s23_s25 = sshll.u32 %s6737_s24, 4  ;;  %p6640_p2 = scmp.ne.s32.totalorder %s6954_s1, %s6639_s29  ;;  %s24_s25 = int_to_ptr.vmem [resolvable:$true] %s23_s25 }
  0x25   :  { %p6643_p3 = scmp.lt.u32.totalorder %s6639_s29, %s6954_s1 }
  0x27   :  { %p6645_p4 = pnand %p6643_p3, %p6640_p2 }
  0x29   :  { %6648 = shalt.err (!%p6645_p4)
}
  0x2a   :  { %s6649_s11 = scalar_lea.vmem %s24_s25, 49152  ;;  %p6654_p6 = scmp.lt.s32.totalorder %s24_s25, %s24_s25 }
  0x2b   :  { %p6650_p5 = scmp.ne.s32.totalorder %s24_s25, %s6649_s11  ;;  %p6655_p7 = scmp.lt.s32.totalorder %s6649_s11, %s6649_s11 }
  0x2d   :  { %p6656_p8 = por %p6655_p7, %p6654_p6 }
  0x2f   :  { %p6657_p9 = pnand %p6656_p8, %p6650_p5 }
  0x31   :  { %6660 = shalt.err (!%p6657_p9)
}
  0x32   :  { %s6738_s4 = smov 512   ;;  %s6739_s27 = smov 32  }
  0x33   :  { %29 = dma.hbm_to_vmem [thread:$0]  %s6954_s1, 49152, %s24_s25, [#allocation4], %s6738_s4, %s6738_s4, %s6739_s27  }
  0x34   :  { %s6740_s14 = smov [#allocation7]   ;;  %s6661_s18 = scalar_lea.hbm %s6956_s3, 32768 }
  0x35   :  { %s45_s15 = sshll.u32 %s6740_s14, 4  ;;  %p6662_p10 = scmp.ne.s32.totalorder %s6956_s3, %s6661_s18  ;;  %s46_s15 = int_to_ptr.vmem [resolvable:$true] %s45_s15 }
  0x36   :  { %p6665_p11 = scmp.lt.u32.totalorder %s6661_s18, %s6956_s3 }
  0x38   :  { %p6667_p12 = pnand %p6665_p11, %p6662_p10 }
  0x3a   :  { %6670 = shalt.err (!%p6667_p12)
}
  0x3b   :  { %s6671_s2 = scalar_lea.vmem %s46_s15, 32768  ;;  %p6676_p0 = scmp.lt.s32.totalorder %s46_s15, %s46_s15 }
  0x3c   :  { %p6672_p13 = scmp.ne.s32.totalorder %s46_s15, %s6671_s2  ;;  %p6677_p1 = scmp.lt.s32.totalorder %s6671_s2, %s6671_s2 }
  0x3e   :  { %p6678_p2 = por %p6677_p1, %p6676_p0 }
  0x40   :  { %p6679_p3 = pnand %p6678_p2, %p6672_p13 }
  0x42   :  { %6682 = shalt.err (!%p6679_p3)
}
  0x43   :  { %s6741_s1 = smov 256   ;;  %s6742_s23 = smov 16  }
  0x44   :  { %51 = dma.hbm_to_vmem [thread:$0]  %s6956_s3, 32768, %s46_s15, [#allocation6], %s6741_s1, %s6741_s1, %s6742_s23  }
  0x45   :  { %s6743_s26 = smov [#allocation10]   ;;  %s6683_s8 = scalar_lea.hbm %s6958_s5, 4096 }
  0x46   :  { %s67_s28 = sshll.u32 %s6743_s26, 4  ;;  %p6684_p4 = scmp.ne.s32.totalorder %s6958_s5, %s6683_s8  ;;  %s68_s28 = int_to_ptr.vmem [resolvable:$true] %s67_s28 }
  0x47   :  { %p6687_p5 = scmp.lt.u32.totalorder %s6683_s8, %s6958_s5 }
  0x49   :  { %p6689_p6 = pnand %p6687_p5, %p6684_p4 }
  0x4b   :  { %6692 = shalt.err (!%p6689_p6)
}
  0x4c   :  { %s6693_s27 = scalar_lea.vmem %s68_s28, 4096  ;;  %p6698_p8 = scmp.lt.s32.totalorder %s68_s28, %s68_s28 }
  0x4d   :  { %p6694_p7 = scmp.ne.s32.totalorder %s68_s28, %s6693_s27  ;;  %p6699_p9 = scmp.lt.s32.totalorder %s6693_s27, %s6693_s27 }
  0x4f   :  { %p6700_p10 = por %p6699_p9, %p6698_p8 }
  0x51   :  { %p6701_p11 = pnand %p6700_p10, %p6694_p7 }
  0x53   :  { %6704 = shalt.err (!%p6701_p11)
}
  0x54   :  { %s6744_s3 = smov 64   ;;  %s6745_s12 = smov 4  }
  0x55   :  { %73 = dma.hbm_to_vmem [thread:$0]  %s6958_s5, 4096, %s68_s28, [#allocation9], %s6744_s3, %s6744_s3, %s6745_s12  }
  0x56   :  { %s6746_s15 = smov [#allocation11]   ;;  %s6705_s19 = scalar_lea.hbm %s6959_s6, 16 }
  0x57   :  { %s80_s16 = sshll.u32 %s6746_s15, 4  ;;  %p6706_p12 = scmp.ne.s32.totalorder %s6959_s6, %s6705_s19  ;;  %s81_s16 = int_to_ptr.vmem [resolvable:$true] %s80_s16 }
  0x58   :  { %p6709_p13 = scmp.lt.u32.totalorder %s6705_s19, %s6959_s6 }
  0x5a   :  { %p6711_p0 = pnand %p6709_p13, %p6706_p12 }
  0x5c   :  { %6714 = shalt.err (!%p6711_p0)
}
  0x5d   :  { %s6715_s1 = scalar_lea.vmem %s81_s16, 16  ;;  %s6719_s5 = scalar_lea.vmem %s81_s16, 32 }
  0x5e   :  { %p6716_p1 = scmp.ne.s32.totalorder %s81_s16, %s6715_s1  ;;  %p6720_p2 = scmp.lt.s32.totalorder %s81_s16, %s81_s16 }
  0x5f   :  { %p6721_p3 = scmp.lt.s32.totalorder %s6719_s5, %s6715_s1 }
  0x61   :  { %p6722_p4 = por %p6721_p3, %p6720_p2 }
  0x63   :  { %p6723_p5 = pnand %p6722_p4, %p6716_p1 }
  0x65   :  { %6726 = shalt.err (!%p6723_p5)
}
  0x66   :  { %83 = dma.hbm_to_vmem [thread:$0]  %s6959_s6, 16, %s81_s16, [#allocation12]  }
  0x67   :  { %6727 = dma.done.wait [#allocation4], 49152  }
  0x68   :  { %6728 = vsyncadd [#allocation4], 4294918144 }
  0x69   :  { %6729 = dma.done.wait [#allocation6], 32896  }
  0x6a   :  { %6730 = vsyncadd [#allocation6], 4294934400 }
  0x6b   :  { %6731 = dma.done.wait [#allocation9], 4160  }
  0x6c   :  { %6732 = vsyncadd [#allocation9], 4294963136 }
  0x6d   :  { %6733 = dma.done.wait [#allocation12], 16  }
  0x6e   :  { %6734 = vsyncadd [#allocation12], 4294967280  ;;  %v187_v0 = vld [vmem:[#allocation3] sm:$0xff]  ;;  %v188_v2 = vld [vmem:[#allocation3 + $0x8] sm:$0xff] }
  0x6f   :  { %v191_v1 = vld [vmem:[#allocation3 + $0x20] sm:$0xff]  ;;  %v192_v4 = vld [vmem:[#allocation3 + $0x28] sm:$0xff] }
  0x70   :  { %v5372_v3 = vcombine.high %v187_v0, %v191_v1  ;;  %v5371_v5 = vcombine.low %v187_v0, %v191_v1  ;;  %v195_v6 = vld [vmem:[#allocation3 + $0x40] sm:$0xff]  ;;  %v5374_v8 = vcombine.high %v188_v2, %v192_v4  ;;  %v5373_v9 = vcombine.low %v188_v2, %v192_v4  ;;  %v196_v11 = vld [vmem:[#allocation3 + $0x48] sm:$0xff] }
  0x71   :  { %v199_v7 = vld [vmem:[#allocation3 + $0x60] sm:$0xff]  ;;  %v200_v12 = vld [vmem:[#allocation3 + $0x68] sm:$0xff] }
  0x72   :  { %v5380_v10 = vcombine.high %v195_v6, %v199_v7  ;;  %v203_v13 = vld [vmem:[#allocation3 + $0x80] sm:$0xff]  ;;  %2521 = vmatprep.subr.bf16.mxu0 %v5372_v3  ;;  %v5382_v14 = vcombine.high %v196_v11, %v200_v12  ;;  %v204_v16 = vld [vmem:[#allocation3 + $0x88] sm:$0xff]  ;;  %2650 = vmatprep.subr.bf16.mxu1 %v5374_v8  ;;  %v5379_v18 = vcombine.low %v195_v6, %v199_v7 }
  0x73   :  { %v207_v15 = vld [vmem:[#allocation3 + $0xa0] sm:$0xff]  ;;  %v208_v17 = vld [vmem:[#allocation3 + $0xa8] sm:$0xff]  ;;  %2522 = vmatpush1.bf16.msra.mxu0 %v5371_v5  ;;  %2651 = vmatpush1.bf16.msra.mxu1 %v5373_v9  ;;  %v5381_v19 = vcombine.low %v196_v11, %v200_v12 }
  0x74   :  { %2523 = vmatprep.subr.bf16.mxu0 %v5380_v10  ;;  %v5388_v20 = vcombine.high %v203_v13, %v207_v15  ;;  %2652 = vmatprep.subr.bf16.mxu1 %v5382_v14  ;;  %v5390_v21 = vcombine.high %v204_v16, %v208_v17  ;;  %v211_v22 = vld [vmem:[#allocation3 + $0xc0] sm:$0xff]  ;;  %v212_v24 = vld [vmem:[#allocation3 + $0xc8] sm:$0xff]  ;;  %v5387_v26 = vcombine.low %v203_v13, %v207_v15 }
  0x75   :  { %v215_v23 = vld [vmem:[#allocation3 + $0xe0] sm:$0xff]  ;;  %v216_v25 = vld [vmem:[#allocation3 + $0xe8] sm:$0xff]  ;;  %v5389_v27 = vcombine.low %v204_v16, %v208_v17 }
  0x76   :  { %v5396_v28 = vcombine.high %v211_v22, %v215_v23  ;;  %v5398_v29 = vcombine.high %v212_v24, %v216_v25  ;;  %v219_v30 = vld [vmem:[#allocation3 + $0x100] sm:$0xff]  ;;  %v220_v32 = vld [vmem:[#allocation3 + $0x108] sm:$0xff]  ;;  %v5395_v34 = vcombine.low %v211_v22, %v215_v23  ;;  %v5397_v35 = vcombine.low %v212_v24, %v216_v25 }
  0x77   :  { %2524 = vmatpush1.bf16.msra.mxu0 %v5379_v18  ;;  %2653 = vmatpush1.bf16.msra.mxu1 %v5381_v19  ;;  %v223_v31 = vld [vmem:[#allocation3 + $0x120] sm:$0xff]  ;;  %v224_v33 = vld [vmem:[#allocation3 + $0x128] sm:$0xff] }
  0x78   :  { %2525 = vmatprep.subr.bf16.mxu0 %v5388_v20  ;;  %2654 = vmatprep.subr.bf16.mxu1 %v5390_v21  ;;  %v5404_v36 = vcombine.high %v219_v30, %v223_v31  ;;  %v5406_v37 = vcombine.high %v220_v32, %v224_v33  ;;  %v227_v38 = vld [vmem:[#allocation3 + $0x140] sm:$0xff]  ;;  %v228_v40 = vld [vmem:[#allocation3 + $0x148] sm:$0xff]  ;;  %v5403_v42 = vcombine.low %v219_v30, %v223_v31 }
  0x79   :  { %v231_v39 = vld [vmem:[#allocation3 + $0x160] sm:$0xff]  ;;  %v232_v41 = vld [vmem:[#allocation3 + $0x168] sm:$0xff]  ;;  %v5405_v43 = vcombine.low %v220_v32, %v224_v33 }
  0x7a   :  { %v5412_v44 = vcombine.high %v227_v38, %v231_v39  ;;  %v5414_v45 = vcombine.high %v228_v40, %v232_v41  ;;  %v235_v46 = vld [vmem:[#allocation3 + $0x180] sm:$0xff]  ;;  %v236_v48 = vld [vmem:[#allocation3 + $0x188] sm:$0xff]  ;;  %v5411_v50 = vcombine.low %v227_v38, %v231_v39  ;;  %v5413_v51 = vcombine.low %v228_v40, %v232_v41 }
  0x7b   :  { %2526 = vmatpush1.bf16.msra.mxu0 %v5387_v26  ;;  %2655 = vmatpush1.bf16.msra.mxu1 %v5389_v27  ;;  %v239_v47 = vld [vmem:[#allocation3 + $0x1a0] sm:$0xff]  ;;  %v240_v49 = vld [vmem:[#allocation3 + $0x1a8] sm:$0xff] }
  0x7c   :  { %2527 = vmatprep.subr.bf16.mxu0 %v5396_v28  ;;  %2656 = vmatprep.subr.bf16.mxu1 %v5398_v29  ;;  %v5420_v52 = vcombine.high %v235_v46, %v239_v47  ;;  %v5422_v53 = vcombine.high %v236_v48, %v240_v49  ;;  %v243_v54 = vld [vmem:[#allocation3 + $0x1c0] sm:$0xff]  ;;  %v244_v57 = vld [vmem:[#allocation3 + $0x1c8] sm:$0xff]  ;;  %v5419_v59 = vcombine.low %v235_v46, %v239_v47 }
  0x7d   :  { %v247_v55 = vld [vmem:[#allocation3 + $0x1e0] sm:$0xff]  ;;  %v248_v58 = vld [vmem:[#allocation3 + $0x1e8] sm:$0xff]  ;;  %v5421_v60 = vcombine.low %v236_v48, %v240_v49 }
  0x7e   :  { %v6164_v56 = vld [vmem:[%s6953_s0 + $0x4] ss:$24 sps:$4 sm:$0xff]   ;;  %v5428_v61 = vcombine.high %v243_v54, %v247_v55  ;;  %v5430_v62 = vcombine.high %v244_v57, %v248_v58  ;;  %v252_v1 = vld [vmem:[#allocation3 + $0x208] sm:$0xff]  ;;  %v5427_v3 = vcombine.low %v243_v54, %v247_v55  ;;  %v5429_v4 = vcombine.low %v244_v57, %v248_v58 }
  0x7f   :  { %2528 = vmatpush1.bf16.msra.mxu0 %v5395_v34  ;;  %2657 = vmatpush1.bf16.msra.mxu1 %v5397_v35  ;;  %v251_v63 = vld [vmem:[#allocation3 + $0x200] sm:$0xff]  ;;  %v256_v2 = vld [vmem:[#allocation3 + $0x228] sm:$0xff] }
  0x80   :  { %2529 = vmatprep.subr.bf16.mxu0 %v5404_v36  ;;  %2658 = vmatprep.subr.bf16.mxu1 %v5406_v37  ;;  %v255_v0 = vld [vmem:[#allocation3 + $0x220] sm:$0xff]  ;;  %v5438_v6 = vcombine.high %v252_v1, %v256_v2  ;;  %v260_v9 = vld [vmem:[#allocation3 + $0x248] sm:$0xff]  ;;  %v5437_v12 = vcombine.low %v252_v1, %v256_v2 }
  0x81   :  { %2553 = vmatprep.mubr.bf16.mxu0 %v6164_v56  ;;  %2682 = vmatprep.mubr.bf16.mxu1 %v6164_v56  ;;  %v5436_v5 = vcombine.high %v251_v63, %v255_v0  ;;  %v259_v7 = vld [vmem:[#allocation3 + $0x240] sm:$0xff]  ;;  %v264_v10 = vld [vmem:[#allocation3 + $0x268] sm:$0xff]  ;;  %v5435_v11 = vcombine.low %v251_v63, %v255_v0 }
  0x82   :  { %v263_v8 = vld [vmem:[#allocation3 + $0x260] sm:$0xff]  ;;  %v5446_v14 = vcombine.high %v260_v9, %v264_v10  ;;  %v268_v17 = vld [vmem:[#allocation3 + $0x288] sm:$0xff]  ;;  %v5445_v20 = vcombine.low %v260_v9, %v264_v10 }
  0x83   :  { %2530 = vmatpush1.bf16.msra.mxu0 %v5403_v42  ;;  %2659 = vmatpush1.bf16.msra.mxu1 %v5405_v43  ;;  %v5444_v13 = vcombine.high %v259_v7, %v263_v8  ;;  %v267_v15 = vld [vmem:[#allocation3 + $0x280] sm:$0xff]  ;;  %v272_v18 = vld [vmem:[#allocation3 + $0x2a8] sm:$0xff]  ;;  %v5443_v19 = vcombine.low %v259_v7, %v263_v8 }
  0x84   :  { %2531 = vmatprep.subr.bf16.mxu0 %v5412_v44  ;;  %2660 = vmatprep.subr.bf16.mxu1 %v5414_v45  ;;  %v271_v16 = vld [vmem:[#allocation3 + $0x2a0] sm:$0xff]  ;;  %v5454_v22 = vcombine.high %v268_v17, %v272_v18  ;;  %v276_v25 = vld [vmem:[#allocation3 + $0x2c8] sm:$0xff]  ;;  %v5453_v28 = vcombine.low %v268_v17, %v272_v18 }
  0x85   :  { %v5452_v21 = vcombine.high %v267_v15, %v271_v16  ;;  %v275_v23 = vld [vmem:[#allocation3 + $0x2c0] sm:$0xff]  ;;  %v280_v26 = vld [vmem:[#allocation3 + $0x2e8] sm:$0xff]  ;;  %v5451_v27 = vcombine.low %v267_v15, %v271_v16 }
  0x86   :  { %v279_v24 = vld [vmem:[#allocation3 + $0x2e0] sm:$0xff]  ;;  %v5462_v30 = vcombine.high %v276_v25, %v280_v26  ;;  %v284_v33 = vld [vmem:[#allocation3 + $0x308] sm:$0xff]  ;;  %v5461_v36 = vcombine.low %v276_v25, %v280_v26 }
  0x87   :  { %2532 = vmatpush1.bf16.msra.mxu0 %v5411_v50  ;;  %2661 = vmatpush1.bf16.msra.mxu1 %v5413_v51  ;;  %v5460_v29 = vcombine.high %v275_v23, %v279_v24  ;;  %v283_v31 = vld [vmem:[#allocation3 + $0x300] sm:$0xff]  ;;  %v288_v34 = vld [vmem:[#allocation3 + $0x328] sm:$0xff]  ;;  %v5459_v35 = vcombine.low %v275_v23, %v279_v24 }
  0x88   :  { %2533 = vmatprep.subr.bf16.mxu0 %v5420_v52  ;;  %2662 = vmatprep.subr.bf16.mxu1 %v5422_v53  ;;  %v287_v32 = vld [vmem:[#allocation3 + $0x320] sm:$0xff]  ;;  %v5470_v38 = vcombine.high %v284_v33, %v288_v34  ;;  %v292_v41 = vld [vmem:[#allocation3 + $0x348] sm:$0xff]  ;;  %v5469_v44 = vcombine.low %v284_v33, %v288_v34 }
  0x89   :  { %v5468_v37 = vcombine.high %v283_v31, %v287_v32  ;;  %v291_v39 = vld [vmem:[#allocation3 + $0x340] sm:$0xff]  ;;  %v296_v42 = vld [vmem:[#allocation3 + $0x368] sm:$0xff]  ;;  %v5467_v43 = vcombine.low %v283_v31, %v287_v32 }
  0x8a   :  { %v295_v40 = vld [vmem:[#allocation3 + $0x360] sm:$0xff]  ;;  %v5478_v46 = vcombine.high %v292_v41, %v296_v42  ;;  %v300_v49 = vld [vmem:[#allocation3 + $0x388] sm:$0xff]  ;;  %v5477_v52 = vcombine.low %v292_v41, %v296_v42 }
  0x8b   :  { %2534 = vmatpush1.bf16.msra.mxu0 %v5419_v59  ;;  %2663 = vmatpush1.bf16.msra.mxu1 %v5421_v60  ;;  %v5476_v45 = vcombine.high %v291_v39, %v295_v40  ;;  %v299_v47 = vld [vmem:[#allocation3 + $0x380] sm:$0xff]  ;;  %v304_v50 = vld [vmem:[#allocation3 + $0x3a8] sm:$0xff]  ;;  %v5475_v51 = vcombine.low %v291_v39, %v295_v40 }
  0x8c   :  { %2535 = vmatprep.subr.bf16.mxu0 %v5428_v61  ;;  %2664 = vmatprep.subr.bf16.mxu1 %v5430_v62  ;;  %v303_v48 = vld [vmem:[#allocation3 + $0x3a0] sm:$0xff]  ;;  %v5486_v54 = vcombine.high %v300_v49, %v304_v50  ;;  %v308_v57 = vld [vmem:[#allocation3 + $0x3c8] sm:$0xff]  ;;  %v5485_v60 = vcombine.low %v300_v49, %v304_v50 }
  0x8d   :  { %v5484_v53 = vcombine.high %v299_v47, %v303_v48  ;;  %v307_v55 = vld [vmem:[#allocation3 + $0x3c0] sm:$0xff]  ;;  %v312_v58 = vld [vmem:[#allocation3 + $0x3e8] sm:$0xff]  ;;  %v5483_v59 = vcombine.low %v299_v47, %v303_v48 }
  0x8e   :  { %v311_v56 = vld [vmem:[#allocation3 + $0x3e0] sm:$0xff]  ;;  %v5494_v62 = vcombine.high %v308_v57, %v312_v58  ;;  %v316_v1 = vld [vmem:[#allocation3 + $0x408] sm:$0xff] }
  0x8f   :  { %2536 = vmatpush1.bf16.msra.mxu0 %v5427_v3  ;;  %2665 = vmatpush1.bf16.msra.mxu1 %v5429_v4  ;;  %v5492_v61 = vcombine.high %v307_v55, %v311_v56  ;;  %v315_v63 = vld [vmem:[#allocation3 + $0x400] sm:$0xff]  ;;  %v320_v2 = vld [vmem:[#allocation3 + $0x428] sm:$0xff]  ;;  %v5491_v3 = vcombine.low %v307_v55, %v311_v56  ;;  %v5493_v4 = vcombine.low %v308_v57, %v312_v58 }
  0x90   :  { %2537 = vmatprep.subr.bf16.mxu0 %v5436_v5  ;;  %2666 = vmatprep.subr.bf16.mxu1 %v5438_v6  ;;  %v319_v0 = vld [vmem:[#allocation3 + $0x420] sm:$0xff]  ;;  %v5502_v6 = vcombine.high %v316_v1, %v320_v2  ;;  %v324_v10 = vld [vmem:[#allocation3 + $0x448] sm:$0xff] }
  0x91   :  { %v5500_v5 = vcombine.high %v315_v63, %v319_v0  ;;  %v323_v7 = vld [vmem:[#allocation3 + $0x440] sm:$0xff]  ;;  %v348_v34 = vld [vmem:[#allocation3 + $0x508] sm:$0xff] }
  0x92   :  { %v327_v8 = vld [vmem:[#allocation3 + $0x460] sm:$0xff]  ;;  %v356_v42 = vld [vmem:[#allocation3 + $0x548] sm:$0xff] }
  0x93   :  { %2538 = vmatpush1.bf16.msra.mxu0 %v5435_v11  ;;  %2667 = vmatpush1.bf16.msra.mxu1 %v5437_v12  ;;  %v6166_v9 = vld [vmem:[%s6953_s0] ss:$24 sps:$4 sm:$0xff]   ;;  %v328_v11 = vld [vmem:[#allocation3 + $0x468] sm:$0xff]  ;;  %v5499_v12 = vcombine.low %v315_v63, %v319_v0 }
  0x94   :  { %2539 = vmatprep.subr.bf16.mxu0 %v5444_v13  ;;  %2668 = vmatprep.subr.bf16.mxu1 %v5446_v14  ;;  %v5501_v13 = vcombine.low %v316_v1, %v320_v2  ;;  %v5508_v14 = vcombine.high %v323_v7, %v327_v8  ;;  %v331_v15 = vld [vmem:[#allocation3 + $0x480] sm:$0xff]  ;;  %v5510_v16 = vcombine.high %v324_v10, %v328_v11  ;;  %v364_v50 = vld [vmem:[#allocation3 + $0x588] sm:$0xff] }
  0x95   :  { %v335_v17 = vld [vmem:[#allocation3 + $0x4a0] sm:$0xff]  ;;  %v372_v58 = vld [vmem:[#allocation3 + $0x5c8] sm:$0xff] }
  0x96   :  { %v6167_v18 = vld [vmem:[%s6953_s0 + $0xc] ss:$24 sps:$4 sm:$0xff]   ;;  %v5516_v23 = vcombine.high %v331_v15, %v335_v17 }
  0x97   :  { %2540 = vmatpush1.bf16.msra.mxu0 %v5443_v19  ;;  %2669 = vmatpush1.bf16.msra.mxu1 %v5445_v20  ;;  %v332_v19 = vld [vmem:[#allocation3 + $0x488] sm:$0xff]  ;;  %v339_v24 = vld [vmem:[#allocation3 + $0x4c0] sm:$0xff] }
  0x98   :  { %2541 = vmatprep.subr.bf16.mxu0 %v5452_v21  ;;  %2670 = vmatprep.subr.bf16.mxu1 %v5454_v22  ;;  %v336_v20 = vld [vmem:[#allocation3 + $0x4a8] sm:$0xff]  ;;  %v5507_v21 = vcombine.low %v323_v7, %v327_v8  ;;  %v5509_v22 = vcombine.low %v324_v10, %v328_v11  ;;  %v343_v25 = vld [vmem:[#allocation3 + $0x4e0] sm:$0xff] }
  0x99   :  { %v5518_v26 = vcombine.high %v332_v19, %v336_v20  ;;  %v5524_v31 = vcombine.high %v339_v24, %v343_v25  ;;  %v347_v32 = vld [vmem:[#allocation3 + $0x500] sm:$0xff]  ;;  %v380_v2 = vld [vmem:[#allocation3 + $0x608] sm:$0xff] }
  0x9a   :  { %v351_v33 = vld [vmem:[#allocation3 + $0x520] sm:$0xff]  ;;  %v388_v10 = vld [vmem:[#allocation3 + $0x648] sm:$0xff] }
  0x9b   :  { %2542 = vmatpush1.bf16.msra.mxu0 %v5451_v27  ;;  %2671 = vmatpush1.bf16.msra.mxu1 %v5453_v28  ;;  %v340_v27 = vld [vmem:[#allocation3 + $0x4c8] sm:$0xff]  ;;  %v5532_v39 = vcombine.high %v347_v32, %v351_v33  ;;  %v355_v40 = vld [vmem:[#allocation3 + $0x540] sm:$0xff] }
  0x9c   :  { %2543 = vmatprep.subr.bf16.mxu0 %v5460_v29  ;;  %2672 = vmatprep.subr.bf16.mxu1 %v5462_v30  ;;  %v344_v28 = vld [vmem:[#allocation3 + $0x4e8] sm:$0xff]  ;;  %v5515_v29 = vcombine.low %v331_v15, %v335_v17  ;;  %v5517_v30 = vcombine.low %v332_v19, %v336_v20  ;;  %v359_v41 = vld [vmem:[#allocation3 + $0x560] sm:$0xff] }
  0x9d   :  { %v5540_v47 = vcombine.high %v355_v40, %v359_v41  ;;  %v363_v48 = vld [vmem:[#allocation3 + $0x580] sm:$0xff]  ;;  %v400_v20 = vld [vmem:[#allocation3 + $0x6a8] sm:$0xff] }
  0x9e   :  { %v367_v49 = vld [vmem:[#allocation3 + $0x5a0] sm:$0xff] }
  0x9f   :  { %2544 = vmatpush1.bf16.msra.mxu0 %v5459_v35  ;;  %2673 = vmatpush1.bf16.msra.mxu1 %v5461_v36  ;;  %v5526_v35 = vcombine.high %v340_v27, %v344_v28  ;;  %v352_v36 = vld [vmem:[#allocation3 + $0x528] sm:$0xff]  ;;  %v5548_v55 = vcombine.high %v363_v48, %v367_v49  ;;  %v371_v56 = vld [vmem:[#allocation3 + $0x5c0] sm:$0xff] }
  0xa0   :  { %2545 = vmatprep.subr.bf16.mxu0 %v5468_v37  ;;  %2674 = vmatprep.subr.bf16.mxu1 %v5470_v38  ;;  %v5523_v37 = vcombine.low %v339_v24, %v343_v25  ;;  %v5525_v38 = vcombine.low %v340_v27, %v344_v28  ;;  %v375_v57 = vld [vmem:[#allocation3 + $0x5e0] sm:$0xff]  ;;  %v408_v28 = vld [vmem:[#allocation3 + $0x6e8] sm:$0xff] }
  0xa1   :  { %v5556_v63 = vcombine.high %v371_v56, %v375_v57  ;;  %v379_v0 = vld [vmem:[#allocation3 + $0x600] sm:$0xff] }
  0xa2   :  { %v383_v1 = vld [vmem:[#allocation3 + $0x620] sm:$0xff] }
  0xa3   :  { %2546 = vmatpush1.bf16.msra.mxu0 %v5467_v43  ;;  %2675 = vmatpush1.bf16.msra.mxu1 %v5469_v44  ;;  %v5534_v43 = vcombine.high %v348_v34, %v352_v36  ;;  %v360_v44 = vld [vmem:[#allocation3 + $0x568] sm:$0xff]  ;;  %v5564_v7 = vcombine.high %v379_v0, %v383_v1  ;;  %v387_v8 = vld [vmem:[#allocation3 + $0x640] sm:$0xff] }
  0xa4   :  { %2547 = vmatprep.subr.bf16.mxu0 %v5476_v45  ;;  %2676 = vmatprep.subr.bf16.mxu1 %v5478_v46  ;;  %v5531_v45 = vcombine.low %v347_v32, %v351_v33  ;;  %v5533_v46 = vcombine.low %v348_v34, %v352_v36  ;;  %v399_v17 = vld [vmem:[#allocation3 + $0x6a0] sm:$0xff]  ;;  %v412_v34 = vld [vmem:[#allocation3 + $0x708] sm:$0xff] }
  0xa5   :  { %v403_v24 = vld [vmem:[#allocation3 + $0x6c0] sm:$0xff]  ;;  %v416_v36 = vld [vmem:[#allocation3 + $0x728] sm:$0xff] }
  0xa6   :  { %v407_v25 = vld [vmem:[#allocation3 + $0x6e0] sm:$0xff] }
  0xa7   :  { %2548 = vmatpush1.bf16.msra.mxu0 %v5475_v51  ;;  %2677 = vmatpush1.bf16.msra.mxu1 %v5477_v52  ;;  %v5542_v51 = vcombine.high %v356_v42, %v360_v44  ;;  %v368_v52 = vld [vmem:[#allocation3 + $0x5a8] sm:$0xff]  ;;  %v411_v32 = vld [vmem:[#allocation3 + $0x700] sm:$0xff] }
  0xa8   :  { %2549 = vmatprep.subr.bf16.mxu0 %v5484_v53  ;;  %2678 = vmatprep.subr.bf16.mxu1 %v5486_v54  ;;  %v5539_v53 = vcombine.low %v355_v40, %v359_v41  ;;  %v5541_v54 = vcombine.low %v356_v42, %v360_v44  ;;  %v415_v33 = vld [vmem:[#allocation3 + $0x720] sm:$0xff]  ;;  %v420_v42 = vld [vmem:[#allocation3 + $0x748] sm:$0xff] }
  0xa9   :  { %v419_v40 = vld [vmem:[#allocation3 + $0x740] sm:$0xff]  ;;  %v424_v44 = vld [vmem:[#allocation3 + $0x768] sm:$0xff] }
  0xaa   :  { %v423_v41 = vld [vmem:[#allocation3 + $0x760] sm:$0xff] }
  0xab   :  { %2550 = vmatpush1.bf16.msra.mxu0 %v5483_v59  ;;  %2679 = vmatpush1.bf16.msra.mxu1 %v5485_v60  ;;  %v5550_v59 = vcombine.high %v364_v50, %v368_v52  ;;  %v376_v60 = vld [vmem:[#allocation3 + $0x5e8] sm:$0xff] }
  0xac   :  { %2551 = vmatprep.subr.bf16.mxu0 %v5492_v61  ;;  %2680 = vmatprep.subr.bf16.mxu1 %v5494_v62  ;;  %v5547_v61 = vcombine.low %v363_v48, %v367_v49  ;;  %v5549_v62 = vcombine.low %v364_v50, %v368_v52  ;;  %v427_v48 = vld [vmem:[#allocation3 + $0x780] sm:$0xff]  ;;  %v428_v50 = vld [vmem:[#allocation3 + $0x788] sm:$0xff] }
  0xad   :  { %v431_v49 = vld [vmem:[#allocation3 + $0x7a0] sm:$0xff]  ;;  %v432_v52 = vld [vmem:[#allocation3 + $0x7a8] sm:$0xff] }
  0xaf   :  { %2552 = vmatpush1.bf16.msra.mxu0 %v5491_v3  ;;  %2681 = vmatpush1.bf16.msra.mxu1 %v5493_v4  ;;  %v5558_v3 = vcombine.high %v372_v58, %v376_v60  ;;  %v384_v4 = vld [vmem:[#allocation3 + $0x628] sm:$0xff] }
  0xb0   :  { %2564 = vmatprep.subr.bf16.mxu0 %v5500_v5  ;;  %2693 = vmatprep.subr.bf16.mxu1 %v5502_v6  ;;  %v5555_v5 = vcombine.low %v371_v56, %v375_v57  ;;  %v5557_v6 = vcombine.low %v372_v58, %v376_v60  ;;  %v5566_v11 = vcombine.high %v380_v2, %v384_v4  ;;  %v435_v56 = vld [vmem:[#allocation3 + $0x7c0] sm:$0xff]  ;;  %v436_v58 = vld [vmem:[#allocation3 + $0x7c8] sm:$0xff] }
  0xb1   :  { %v439_v57 = vld [vmem:[#allocation3 + $0x7e0] sm:$0xff]  ;;  %v440_v60 = vld [vmem:[#allocation3 + $0x7e8] sm:$0xff] }
  0xb2   :  { %2554 = vmatmul.mubr.bf16.vlgmr.msra.gmra.mrb[0].mxu0 %v6166_v9  ;;  %2683 = vmatmul.mubr.bf16.vlgmr.msra.gmra.mrb[0].mxu1 %v6166_v9  ;;  %v391_v9 = vld [vmem:[#allocation3 + $0x660] sm:$0xff] }
  0xb3   :  { %2565 = vmatpush1.bf16.msra.mxu0 %v5499_v12  ;;  %2694 = vmatpush1.bf16.msra.mxu1 %v5501_v13  ;;  %v392_v12 = vld [vmem:[#allocation3 + $0x668] sm:$0xff]  ;;  %v5563_v13 = vcombine.low %v379_v0, %v383_v1  ;;  %v5572_v15 = vcombine.high %v387_v8, %v391_v9  ;;  %v443_v0 = vld [vmem:[#allocation3 + $0x800] sm:$0xff] }
  0xb4   :  { %2566 = vmatprep.subr.bf16.mxu0 %v5508_v14  ;;  %2695 = vmatprep.subr.bf16.mxu1 %v5510_v16  ;;  %v5565_v14 = vcombine.low %v380_v2, %v384_v4  ;;  %v395_v16 = vld [vmem:[#allocation3 + $0x680] sm:$0xff]  ;;  %v5574_v19 = vcombine.high %v388_v10, %v392_v12  ;;  %v444_v2 = vld [vmem:[#allocation3 + $0x808] sm:$0xff] }
  0xb5   :  { %2596 = vmatprep.mubr.bf16.mxu0 %v6167_v18  ;;  %2725 = vmatprep.mubr.bf16.mxu1 %v6167_v18  ;;  %v396_v18 = vld [vmem:[#allocation3 + $0x688] sm:$0xff]  ;;  %v447_v1 = vld [vmem:[#allocation3 + $0x820] sm:$0xff] }
  0xb6   :  { %v5582_v27 = vcombine.high %v396_v18, %v400_v20  ;;  %v448_v4 = vld [vmem:[#allocation3 + $0x828] sm:$0xff] }
  0xb7   :  { %2567 = vmatpush1.bf16.msra.mxu0 %v5507_v21  ;;  %2696 = vmatpush1.bf16.msra.mxu1 %v5509_v22  ;;  %v5571_v21 = vcombine.low %v387_v8, %v391_v9  ;;  %v5573_v22 = vcombine.low %v388_v10, %v392_v12  ;;  %v6169_v8 = vld [vmem:[%s6953_s0 + $0x8] ss:$24 sps:$4 sm:$0xff]   ;;  %v5630_v12 = vcombine.high %v444_v2, %v448_v4 }
  0xb8   :  { %2568 = vmatprep.subr.bf16.mxu0 %v5516_v23  ;;  %2697 = vmatprep.subr.bf16.mxu1 %v5518_v26  ;;  %v5580_v23 = vcombine.high %v395_v16, %v399_v17  ;;  %v404_v26 = vld [vmem:[#allocation3 + $0x6c8] sm:$0xff]  ;;  %v451_v9 = vld [vmem:[#allocation3 + $0x840] sm:$0xff] }
  0xb9   :  { %v455_v10 = vld [vmem:[#allocation3 + $0x860] sm:$0xff] }
  0xbb   :  { %2569 = vmatpush1.bf16.msra.mxu0 %v5515_v29  ;;  %2698 = vmatpush1.bf16.msra.mxu1 %v5517_v30  ;;  %v5579_v29 = vcombine.low %v395_v16, %v399_v17  ;;  %v5581_v30 = vcombine.low %v396_v18, %v400_v20  ;;  %v5629_v16 = vcombine.low %v444_v2, %v448_v4  ;;  %v463_v18 = vld [vmem:[#allocation3 + $0x8a0] sm:$0xff]  ;;  %v464_v20 = vld [vmem:[#allocation3 + $0x8a8] sm:$0xff] }
  0xbc   :  { %2570 = vmatprep.subr.bf16.mxu0 %v5524_v31  ;;  %2699 = vmatprep.subr.bf16.mxu1 %v5526_v35  ;;  %v5588_v31 = vcombine.high %v403_v24, %v407_v25  ;;  %v5590_v35 = vcombine.high %v404_v26, %v408_v28  ;;  %v5636_v17 = vcombine.high %v451_v9, %v455_v10  ;;  %v507_v2 = vld [vmem:[#allocation3 + $0xa00] sm:$0xff]  ;;  %v508_v4 = vld [vmem:[#allocation3 + $0xa08] sm:$0xff] }
  0xbf   :  { %2571 = vmatpush1.bf16.msra.mxu0 %v5523_v37  ;;  %2700 = vmatpush1.bf16.msra.mxu1 %v5525_v38  ;;  %v5587_v37 = vcombine.low %v403_v24, %v407_v25  ;;  %v5589_v38 = vcombine.low %v404_v26, %v408_v28  ;;  %v467_v26 = vld [vmem:[#allocation3 + $0x8c0] sm:$0xff]  ;;  %v468_v28 = vld [vmem:[#allocation3 + $0x8c8] sm:$0xff] }
  0xc0   :  { %2572 = vmatprep.subr.bf16.mxu0 %v5532_v39  ;;  %2701 = vmatprep.subr.bf16.mxu1 %v5534_v43  ;;  %v5596_v39 = vcombine.high %v411_v32, %v415_v33  ;;  %v5598_v43 = vcombine.high %v412_v34, %v416_v36 }
  0xc3   :  { %2573 = vmatpush1.bf16.msra.mxu0 %v5531_v45  ;;  %2702 = vmatpush1.bf16.msra.mxu1 %v5533_v46  ;;  %v5595_v45 = vcombine.low %v411_v32, %v415_v33  ;;  %v5597_v46 = vcombine.low %v412_v34, %v416_v36  ;;  %v475_v34 = vld [vmem:[#allocation3 + $0x900] sm:$0xff]  ;;  %v476_v36 = vld [vmem:[#allocation3 + $0x908] sm:$0xff] }
  0xc4   :  { %2574 = vmatprep.subr.bf16.mxu0 %v5540_v47  ;;  %2703 = vmatprep.subr.bf16.mxu1 %v5542_v51  ;;  %v5604_v47 = vcombine.high %v419_v40, %v423_v41  ;;  %v5606_v51 = vcombine.high %v420_v42, %v424_v44 }
  0xc7   :  { %2575 = vmatpush1.bf16.msra.mxu0 %v5539_v53  ;;  %2704 = vmatpush1.bf16.msra.mxu1 %v5541_v54  ;;  %v5603_v53 = vcombine.low %v419_v40, %v423_v41  ;;  %v5605_v54 = vcombine.low %v420_v42, %v424_v44  ;;  %v483_v42 = vld [vmem:[#allocation3 + $0x940] sm:$0xff]  ;;  %v484_v44 = vld [vmem:[#allocation3 + $0x948] sm:$0xff] }
  0xc8   :  { %2576 = vmatprep.subr.bf16.mxu0 %v5548_v55  ;;  %2705 = vmatprep.subr.bf16.mxu1 %v5550_v59  ;;  %v5612_v55 = vcombine.high %v427_v48, %v431_v49  ;;  %v5614_v59 = vcombine.high %v428_v50, %v432_v52 }
  0xcb   :  { %2577 = vmatpush1.bf16.msra.mxu0 %v5547_v61  ;;  %2706 = vmatpush1.bf16.msra.mxu1 %v5549_v62  ;;  %v5611_v61 = vcombine.low %v427_v48, %v431_v49  ;;  %v5613_v62 = vcombine.low %v428_v50, %v432_v52  ;;  %v491_v50 = vld [vmem:[#allocation3 + $0x980] sm:$0xff]  ;;  %v492_v52 = vld [vmem:[#allocation3 + $0x988] sm:$0xff] }
  0xcc   :  { %2578 = vmatprep.subr.bf16.mxu0 %v5556_v63  ;;  %2707 = vmatprep.subr.bf16.mxu1 %v5558_v3  ;;  %v5620_v63 = vcombine.high %v435_v56, %v439_v57  ;;  %v5622_v3 = vcombine.high %v436_v58, %v440_v60 }
  0xcf   :  { %2579 = vmatpush1.bf16.msra.mxu0 %v5555_v5  ;;  %2708 = vmatpush1.bf16.msra.mxu1 %v5557_v6  ;;  %v5619_v5 = vcombine.low %v435_v56, %v439_v57  ;;  %v5621_v6 = vcombine.low %v436_v58, %v440_v60  ;;  %v499_v58 = vld [vmem:[#allocation3 + $0x9c0] sm:$0xff]  ;;  %v500_v60 = vld [vmem:[#allocation3 + $0x9c8] sm:$0xff] }
  0xd0   :  { %2580 = vmatprep.subr.bf16.mxu0 %v5564_v7  ;;  %2709 = vmatprep.subr.bf16.mxu1 %v5566_v11  ;;  %v5628_v7 = vcombine.high %v443_v0, %v447_v1  ;;  %v452_v11 = vld [vmem:[#allocation3 + $0x848] sm:$0xff] }
  0xd3   :  { %2581 = vmatpush1.bf16.msra.mxu0 %v5563_v13  ;;  %2710 = vmatpush1.bf16.msra.mxu1 %v5565_v14  ;;  %v456_v13 = vld [vmem:[#allocation3 + $0x868] sm:$0xff]  ;;  %v5627_v14 = vcombine.low %v443_v0, %v447_v1 }
  0xd4   :  { %2582 = vmatprep.subr.bf16.mxu0 %v5572_v15  ;;  %2711 = vmatprep.subr.bf16.mxu1 %v5574_v19  ;;  %v459_v15 = vld [vmem:[#allocation3 + $0x880] sm:$0xff]  ;;  %v460_v19 = vld [vmem:[#allocation3 + $0x888] sm:$0xff]  ;;  %v5637_v24 = vcombine.low %v452_v11, %v456_v13 }
  0xd5   :  { %v5644_v25 = vcombine.high %v459_v15, %v463_v18  ;;  %v5645_v32 = vcombine.low %v460_v19, %v464_v20 }
  0xd7   :  { %2583 = vmatpush1.bf16.msra.mxu0 %v5571_v21  ;;  %2712 = vmatpush1.bf16.msra.mxu1 %v5573_v22  ;;  %v5638_v21 = vcombine.high %v452_v11, %v456_v13  ;;  %v6170_v22 = vld [vmem:[%s6953_s0 + $0x14] ss:$24 sps:$4 sm:$0xff]   ;;  %v519_v11 = vld [vmem:[#allocation3 + $0xa60] sm:$0xff] }
  0xd8   :  { %2584 = vmatprep.subr.bf16.mxu0 %v5580_v23  ;;  %2713 = vmatprep.subr.bf16.mxu1 %v5582_v27  ;;  %v5635_v23 = vcombine.low %v451_v9, %v455_v10  ;;  %v471_v27 = vld [vmem:[#allocation3 + $0x8e0] sm:$0xff] }
  0xd9   :  { %v5652_v33 = vcombine.high %v467_v26, %v471_v27  ;;  %v515_v10 = vld [vmem:[#allocation3 + $0xa40] sm:$0xff] }
  0xdb   :  { %2585 = vmatpush1.bf16.msra.mxu0 %v5579_v29  ;;  %2714 = vmatpush1.bf16.msra.mxu1 %v5581_v30  ;;  %v5646_v29 = vcombine.high %v460_v19, %v464_v20  ;;  %v472_v30 = vld [vmem:[#allocation3 + $0x8e8] sm:$0xff]  ;;  %v527_v19 = vld [vmem:[#allocation3 + $0xaa0] sm:$0xff] }
  0xdc   :  { %2586 = vmatprep.subr.bf16.mxu0 %v5588_v31  ;;  %2715 = vmatprep.subr.bf16.mxu1 %v5590_v35  ;;  %v5643_v31 = vcombine.low %v459_v15, %v463_v18  ;;  %v479_v35 = vld [vmem:[#allocation3 + $0x920] sm:$0xff]  ;;  %v5653_v40 = vcombine.low %v468_v28, %v472_v30  ;;  %v524_v20 = vld [vmem:[#allocation3 + $0xa88] sm:$0xff] }
  0xdd   :  { %v5660_v41 = vcombine.high %v475_v34, %v479_v35  ;;  %v523_v18 = vld [vmem:[#allocation3 + $0xa80] sm:$0xff] }
  0xdf   :  { %2587 = vmatpush1.bf16.msra.mxu0 %v5587_v37  ;;  %2716 = vmatpush1.bf16.msra.mxu1 %v5589_v38  ;;  %v5654_v37 = vcombine.high %v468_v28, %v472_v30  ;;  %v480_v38 = vld [vmem:[#allocation3 + $0x928] sm:$0xff] }
  0xe0   :  { %2588 = vmatprep.subr.bf16.mxu0 %v5596_v39  ;;  %2717 = vmatprep.subr.bf16.mxu1 %v5598_v43  ;;  %v5651_v39 = vcombine.low %v467_v26, %v471_v27  ;;  %v487_v43 = vld [vmem:[#allocation3 + $0x960] sm:$0xff]  ;;  %v5661_v48 = vcombine.low %v476_v36, %v480_v38  ;;  %v532_v28 = vld [vmem:[#allocation3 + $0xac8] sm:$0xff] }
  0xe1   :  { %v5668_v49 = vcombine.high %v483_v42, %v487_v43  ;;  %v531_v26 = vld [vmem:[#allocation3 + $0xac0] sm:$0xff]  ;;  %v536_v30 = vld [vmem:[#allocation3 + $0xae8] sm:$0xff] }
  0xe2   :  { %v535_v27 = vld [vmem:[#allocation3 + $0xae0] sm:$0xff] }
  0xe3   :  { %2589 = vmatpush1.bf16.msra.mxu0 %v5595_v45  ;;  %2718 = vmatpush1.bf16.msra.mxu1 %v5597_v46  ;;  %v5662_v45 = vcombine.high %v476_v36, %v480_v38  ;;  %v488_v46 = vld [vmem:[#allocation3 + $0x968] sm:$0xff] }
  0xe4   :  { %2590 = vmatprep.subr.bf16.mxu0 %v5604_v47  ;;  %2719 = vmatprep.subr.bf16.mxu1 %v5606_v51  ;;  %v5659_v47 = vcombine.low %v475_v34, %v479_v35  ;;  %v495_v51 = vld [vmem:[#allocation3 + $0x9a0] sm:$0xff]  ;;  %v5669_v56 = vcombine.low %v484_v44, %v488_v46  ;;  %v540_v36 = vld [vmem:[#allocation3 + $0xb08] sm:$0xff] }
  0xe5   :  { %v5676_v57 = vcombine.high %v491_v50, %v495_v51  ;;  %v539_v34 = vld [vmem:[#allocation3 + $0xb00] sm:$0xff]  ;;  %v544_v38 = vld [vmem:[#allocation3 + $0xb28] sm:$0xff] }
  0xe6   :  { %v543_v35 = vld [vmem:[#allocation3 + $0xb20] sm:$0xff] }
  0xe7   :  { %2591 = vmatpush1.bf16.msra.mxu0 %v5603_v53  ;;  %2720 = vmatpush1.bf16.msra.mxu1 %v5605_v54  ;;  %v5670_v53 = vcombine.high %v484_v44, %v488_v46  ;;  %v496_v54 = vld [vmem:[#allocation3 + $0x9a8] sm:$0xff] }
  0xe8   :  { %2592 = vmatprep.subr.bf16.mxu0 %v5612_v55  ;;  %2721 = vmatprep.subr.bf16.mxu1 %v5614_v59  ;;  %v5667_v55 = vcombine.low %v483_v42, %v487_v43  ;;  %v503_v59 = vld [vmem:[#allocation3 + $0x9e0] sm:$0xff]  ;;  %v5677_v0 = vcombine.low %v492_v52, %v496_v54  ;;  %v548_v44 = vld [vmem:[#allocation3 + $0xb48] sm:$0xff] }
  0xe9   :  { %v5684_v1 = vcombine.high %v499_v58, %v503_v59  ;;  %v547_v42 = vld [vmem:[#allocation3 + $0xb40] sm:$0xff]  ;;  %v552_v46 = vld [vmem:[#allocation3 + $0xb68] sm:$0xff] }
  0xea   :  { %v551_v43 = vld [vmem:[#allocation3 + $0xb60] sm:$0xff] }
  0xeb   :  { %2593 = vmatpush1.bf16.msra.mxu0 %v5611_v61  ;;  %2722 = vmatpush1.bf16.msra.mxu1 %v5613_v62  ;;  %v5678_v61 = vcombine.high %v492_v52, %v496_v54  ;;  %v504_v62 = vld [vmem:[#allocation3 + $0x9e8] sm:$0xff] }
  0xec   :  { %2594 = vmatprep.subr.bf16.mxu0 %v5620_v63  ;;  %2723 = vmatprep.subr.bf16.mxu1 %v5622_v3  ;;  %v5675_v63 = vcombine.low %v491_v50, %v495_v51  ;;  %v511_v3 = vld [vmem:[#allocation3 + $0xa20] sm:$0xff]  ;;  %v556_v52 = vld [vmem:[#allocation3 + $0xb88] sm:$0xff] }
  0xed   :  { %v5692_v9 = vcombine.high %v507_v2, %v511_v3  ;;  %v5691_v15 = vcombine.low %v507_v2, %v511_v3  ;;  %v555_v50 = vld [vmem:[#allocation3 + $0xb80] sm:$0xff]  ;;  %v560_v54 = vld [vmem:[#allocation3 + $0xba8] sm:$0xff]  ;;  %v189_v2 = vld [vmem:[#allocation3 + $0x10] sm:$0xff] }
  0xee   :  { %v559_v51 = vld [vmem:[#allocation3 + $0xba0] sm:$0xff]  ;;  %v193_v3 = vld [vmem:[#allocation3 + $0x30] sm:$0xff] }
  0xef   :  { %2595 = vmatpush1.bf16.msra.mxu0 %v5619_v5  ;;  %2724 = vmatpush1.bf16.msra.mxu1 %v5621_v6  ;;  %v5686_v5 = vcombine.high %v500_v60, %v504_v62  ;;  %v512_v6 = vld [vmem:[#allocation3 + $0xa28] sm:$0xff] }
  0xf0   :  { %2607 = vmatprep.subr.bf16.mxu0 %v5628_v7  ;;  %2736 = vmatprep.subr.bf16.mxu1 %v5630_v12  ;;  %v5683_v7 = vcombine.low %v499_v58, %v503_v59  ;;  %v516_v12 = vld [vmem:[#allocation3 + $0xa48] sm:$0xff]  ;;  %v5694_v13 = vcombine.high %v508_v4, %v512_v6  ;;  %v563_v58 = vld [vmem:[#allocation3 + $0xbc0] sm:$0xff] }
  0xf1   :  { %v567_v59 = vld [vmem:[#allocation3 + $0xbe0] sm:$0xff] }
  0xf2   :  { %2597 = vmatmul.mubr.bf16.vlgmr.msra.gmra.mrb[0].mxu0 %v6169_v8  ;;  %2726 = vmatmul.mubr.bf16.vlgmr.msra.gmra.mrb[0].mxu1 %v6169_v8  ;;  %v5685_v8 = vcombine.low %v500_v60, %v504_v62  ;;  %v564_v60 = vld [vmem:[#allocation3 + $0xbc8] sm:$0xff] }
  0xf3   :  { %2608 = vmatpush1.bf16.msra.mxu0 %v5627_v14  ;;  %2737 = vmatpush1.bf16.msra.mxu1 %v5629_v16  ;;  %v520_v14 = vld [vmem:[#allocation3 + $0xa68] sm:$0xff]  ;;  %v5693_v16 = vcombine.low %v508_v4, %v512_v6  ;;  %v190_v4 = vld [vmem:[#allocation3 + $0x18] sm:$0xff] }
  0xf4   :  { %2609 = vmatprep.subr.bf16.mxu0 %v5636_v17  ;;  %2738 = vmatprep.subr.bf16.mxu1 %v5638_v21  ;;  %v5700_v17 = vcombine.high %v515_v10, %v519_v11  ;;  %v5702_v21 = vcombine.high %v516_v12, %v520_v14  ;;  %v568_v62 = vld [vmem:[#allocation3 + $0xbe8] sm:$0xff]  ;;  %v194_v6 = vld [vmem:[#allocation3 + $0x38] sm:$0xff] }
  0xf5   :  { %2639 = vmatprep.mubr.bf16.mxu0 %v6170_v22  ;;  %2768 = vmatprep.mubr.bf16.mxu1 %v6170_v22  ;;  %v528_v22 = vld [vmem:[#allocation3 + $0xaa8] sm:$0xff] }
  0xf7   :  { %2610 = vmatpush1.bf16.msra.mxu0 %v5635_v23  ;;  %2739 = vmatpush1.bf16.msra.mxu1 %v5637_v24  ;;  %v5699_v23 = vcombine.low %v515_v10, %v519_v11  ;;  %v5701_v24 = vcombine.low %v516_v12, %v520_v14  ;;  %v5376_v10 = vcombine.high %v189_v2, %v193_v3  ;;  %v197_v11 = vld [vmem:[#allocation3 + $0x50] sm:$0xff] }
  0xf8   :  { %2611 = vmatprep.subr.bf16.mxu0 %v5644_v25  ;;  %2740 = vmatprep.subr.bf16.mxu1 %v5646_v29  ;;  %v5708_v25 = vcombine.high %v523_v18, %v527_v19  ;;  %v5710_v29 = vcombine.high %v524_v20, %v528_v22  ;;  %v201_v12 = vld [vmem:[#allocation3 + $0x70] sm:$0xff]  ;;  %v5378_v14 = vcombine.high %v190_v4, %v194_v6 }
  0xfb   :  { %2612 = vmatpush1.bf16.msra.mxu0 %v5643_v31  ;;  %2741 = vmatpush1.bf16.msra.mxu1 %v5645_v32  ;;  %v5707_v31 = vcombine.low %v523_v18, %v527_v19  ;;  %v5709_v32 = vcombine.low %v524_v20, %v528_v22  ;;  %v5384_v18 = vcombine.high %v197_v11, %v201_v12  ;;  %v205_v19 = vld [vmem:[#allocation3 + $0x90] sm:$0xff] }
  0xfc   :  { %2613 = vmatprep.subr.bf16.mxu0 %v5652_v33  ;;  %2742 = vmatprep.subr.bf16.mxu1 %v5654_v37  ;;  %v5716_v33 = vcombine.high %v531_v26, %v535_v27  ;;  %v5718_v37 = vcombine.high %v532_v28, %v536_v30  ;;  %v209_v20 = vld [vmem:[#allocation3 + $0xb0] sm:$0xff] }
  0xff   :  { %2614 = vmatpush1.bf16.msra.mxu0 %v5651_v39  ;;  %2743 = vmatpush1.bf16.msra.mxu1 %v5653_v40  ;;  %v5715_v39 = vcombine.low %v531_v26, %v535_v27  ;;  %v5717_v40 = vcombine.low %v532_v28, %v536_v30  ;;  %v5392_v26 = vcombine.high %v205_v19, %v209_v20  ;;  %v213_v27 = vld [vmem:[#allocation3 + $0xd0] sm:$0xff] }
 0x100   :  { %2615 = vmatprep.subr.bf16.mxu0 %v5660_v41  ;;  %2744 = vmatprep.subr.bf16.mxu1 %v5662_v45  ;;  %v5724_v41 = vcombine.high %v539_v34, %v543_v35  ;;  %v5726_v45 = vcombine.high %v540_v36, %v544_v38  ;;  %v217_v28 = vld [vmem:[#allocation3 + $0xf0] sm:$0xff] }
 0x103   :  { %2616 = vmatpush1.bf16.msra.mxu0 %v5659_v47  ;;  %2745 = vmatpush1.bf16.msra.mxu1 %v5661_v48  ;;  %v5723_v47 = vcombine.low %v539_v34, %v543_v35  ;;  %v5725_v48 = vcombine.low %v540_v36, %v544_v38  ;;  %v5400_v35 = vcombine.high %v213_v27, %v217_v28  ;;  %v221_v36 = vld [vmem:[#allocation3 + $0x110] sm:$0xff]  ;;  %v222_v38 = vld [vmem:[#allocation3 + $0x118] sm:$0xff] }
 0x104   :  { %2617 = vmatprep.subr.bf16.mxu0 %v5668_v49  ;;  %2746 = vmatprep.subr.bf16.mxu1 %v5670_v53  ;;  %v5732_v49 = vcombine.high %v547_v42, %v551_v43  ;;  %v5734_v53 = vcombine.high %v548_v44, %v552_v46 }
 0x107   :  { %2618 = vmatpush1.bf16.msra.mxu0 %v5667_v55  ;;  %2747 = vmatpush1.bf16.msra.mxu1 %v5669_v56  ;;  %v5731_v55 = vcombine.low %v547_v42, %v551_v43  ;;  %v5733_v56 = vcombine.low %v548_v44, %v552_v46  ;;  %v229_v44 = vld [vmem:[#allocation3 + $0x150] sm:$0xff]  ;;  %v230_v46 = vld [vmem:[#allocation3 + $0x158] sm:$0xff] }
 0x108   :  { %2619 = vmatprep.subr.bf16.mxu0 %v5676_v57  ;;  %2748 = vmatprep.subr.bf16.mxu1 %v5678_v61  ;;  %v5740_v57 = vcombine.high %v555_v50, %v559_v51  ;;  %v5742_v61 = vcombine.high %v556_v52, %v560_v54 }
 0x10b   :  { %2620 = vmatpush1.bf16.msra.mxu0 %v5675_v63  ;;  %2749 = vmatpush1.bf16.msra.mxu1 %v5677_v0  ;;  %v5739_v63 = vcombine.low %v555_v50, %v559_v51  ;;  %v5741_v0 = vcombine.low %v556_v52, %v560_v54  ;;  %v237_v52 = vld [vmem:[#allocation3 + $0x190] sm:$0xff]  ;;  %v238_v54 = vld [vmem:[#allocation3 + $0x198] sm:$0xff] }
 0x10c   :  { %2621 = vmatprep.subr.bf16.mxu0 %v5684_v1  ;;  %2750 = vmatprep.subr.bf16.mxu1 %v5686_v5  ;;  %v5748_v1 = vcombine.high %v563_v58, %v567_v59  ;;  %v5750_v5 = vcombine.high %v564_v60, %v568_v62 }
 0x10f   :  { %2622 = vmatpush1.bf16.msra.mxu0 %v5683_v7  ;;  %2751 = vmatpush1.bf16.msra.mxu1 %v5685_v8  ;;  %v5747_v7 = vcombine.low %v563_v58, %v567_v59  ;;  %v5749_v8 = vcombine.low %v564_v60, %v568_v62  ;;  %v245_v60 = vld [vmem:[#allocation3 + $0x1d0] sm:$0xff]  ;;  %v246_v62 = vld [vmem:[#allocation3 + $0x1d8] sm:$0xff] }
 0x110   :  { %2623 = vmatprep.subr.bf16.mxu0 %v5692_v9  ;;  %2752 = vmatprep.subr.bf16.mxu1 %v5694_v13  ;;  %v6172_v9 = vld [vmem:[%s6953_s0 + $0x10] ss:$24 sps:$4 sm:$0xff]   ;;  %v198_v13 = vld [vmem:[#allocation3 + $0x58] sm:$0xff] }
 0x113   :  { %2624 = vmatpush1.bf16.msra.mxu0 %v5691_v15  ;;  %2753 = vmatpush1.bf16.msra.mxu1 %v5693_v16  ;;  %v202_v15 = vld [vmem:[#allocation3 + $0x78] sm:$0xff]  ;;  %v5375_v16 = vcombine.low %v189_v2, %v193_v3 }
 0x114   :  { %2625 = vmatprep.subr.bf16.mxu0 %v5700_v17  ;;  %2754 = vmatprep.subr.bf16.mxu1 %v5702_v21  ;;  %v5377_v17 = vcombine.low %v190_v4, %v194_v6  ;;  %v206_v21 = vld [vmem:[#allocation3 + $0x98] sm:$0xff]  ;;  %v5386_v22 = vcombine.high %v198_v13, %v202_v15  ;;  %v253_v4 = vld [vmem:[#allocation3 + $0x210] sm:$0xff] }
 0x115   :  { %v254_v6 = vld [vmem:[#allocation3 + $0x218] sm:$0xff] }
 0x117   :  { %2626 = vmatpush1.bf16.msra.mxu0 %v5699_v23  ;;  %2755 = vmatpush1.bf16.msra.mxu1 %v5701_v24  ;;  %v210_v23 = vld [vmem:[#allocation3 + $0xb8] sm:$0xff]  ;;  %v5383_v24 = vcombine.low %v197_v11, %v201_v12  ;;  %v261_v12 = vld [vmem:[#allocation3 + $0x250] sm:$0xff] }
 0x118   :  { %2627 = vmatprep.subr.bf16.mxu0 %v5708_v25  ;;  %2756 = vmatprep.subr.bf16.mxu1 %v5710_v29  ;;  %v5385_v25 = vcombine.low %v198_v13, %v202_v15  ;;  %v214_v29 = vld [vmem:[#allocation3 + $0xd8] sm:$0xff]  ;;  %v5394_v30 = vcombine.high %v206_v21, %v210_v23  ;;  %v5393_v34 = vcombine.low %v206_v21, %v210_v23  ;;  %v265_v13 = vld [vmem:[#allocation3 + $0x270] sm:$0xff] }
 0x119   :  { %v273_v21 = vld [vmem:[#allocation3 + $0x2b0] sm:$0xff] }
 0x11b   :  { %2628 = vmatpush1.bf16.msra.mxu0 %v5707_v31  ;;  %2757 = vmatpush1.bf16.msra.mxu1 %v5709_v32  ;;  %v218_v31 = vld [vmem:[#allocation3 + $0xf8] sm:$0xff] }
 0x11c   :  { %2629 = vmatprep.subr.bf16.mxu0 %v5716_v33  ;;  %2758 = vmatprep.subr.bf16.mxu1 %v5718_v37  ;;  %v6589_v32 = vld [vmem:[%s6953_s0 + $0x4] ss:$24 sps:$4 sm:$0xff]   ;;  %v5391_v33 = vcombine.low %v205_v19, %v209_v20  ;;  %v225_v37 = vld [vmem:[#allocation3 + $0x130] sm:$0xff]  ;;  %v5401_v42 = vcombine.low %v214_v29, %v218_v31  ;;  %v5448_v19 = vcombine.high %v261_v12, %v265_v13 }
 0x11d   :  { %v5408_v43 = vcombine.high %v221_v36, %v225_v37  ;;  %v269_v20 = vld [vmem:[#allocation3 + $0x290] sm:$0xff] }
 0x11f   :  { %2630 = vmatpush1.bf16.msra.mxu0 %v5715_v39  ;;  %2759 = vmatpush1.bf16.msra.mxu1 %v5717_v40  ;;  %v5402_v39 = vcombine.high %v214_v29, %v218_v31  ;;  %v226_v40 = vld [vmem:[#allocation3 + $0x138] sm:$0xff]  ;;  %v277_v29 = vld [vmem:[#allocation3 + $0x2d0] sm:$0xff] }
 0x120   :  { %2631 = vmatprep.subr.bf16.mxu0 %v5724_v41  ;;  %2760 = vmatprep.subr.bf16.mxu1 %v5726_v45  ;;  %v5399_v41 = vcombine.low %v213_v27, %v217_v28  ;;  %v233_v45 = vld [vmem:[#allocation3 + $0x170] sm:$0xff]  ;;  %v5409_v50 = vcombine.low %v222_v38, %v226_v40  ;;  %v5456_v27 = vcombine.high %v269_v20, %v273_v21  ;;  %v278_v31 = vld [vmem:[#allocation3 + $0x2d8] sm:$0xff] }
 0x121   :  { %v5416_v51 = vcombine.high %v229_v44, %v233_v45 }
 0x123   :  { %2632 = vmatpush1.bf16.msra.mxu0 %v5723_v47  ;;  %2761 = vmatpush1.bf16.msra.mxu1 %v5725_v48  ;;  %v5410_v47 = vcombine.high %v222_v38, %v226_v40  ;;  %v234_v48 = vld [vmem:[#allocation3 + $0x178] sm:$0xff]  ;;  %v289_v38 = vld [vmem:[#allocation3 + $0x330] sm:$0xff] }
 0x124   :  { %2633 = vmatprep.subr.bf16.mxu0 %v5732_v49  ;;  %2762 = vmatprep.subr.bf16.mxu1 %v5734_v53  ;;  %v5407_v49 = vcombine.low %v221_v36, %v225_v37  ;;  %v241_v53 = vld [vmem:[#allocation3 + $0x1b0] sm:$0xff]  ;;  %v5417_v58 = vcombine.low %v230_v46, %v234_v48  ;;  %v290_v40 = vld [vmem:[#allocation3 + $0x338] sm:$0xff] }
 0x125   :  { %v5424_v59 = vcombine.high %v237_v52, %v241_v53  ;;  %v285_v37 = vld [vmem:[#allocation3 + $0x310] sm:$0xff] }
 0x127   :  { %2634 = vmatpush1.bf16.msra.mxu0 %v5731_v55  ;;  %2763 = vmatpush1.bf16.msra.mxu1 %v5733_v56  ;;  %v5418_v55 = vcombine.high %v230_v46, %v234_v48  ;;  %v242_v56 = vld [vmem:[#allocation3 + $0x1b8] sm:$0xff]  ;;  %v297_v46 = vld [vmem:[#allocation3 + $0x370] sm:$0xff] }
 0x128   :  { %2635 = vmatprep.subr.bf16.mxu0 %v5740_v57  ;;  %2764 = vmatprep.subr.bf16.mxu1 %v5742_v61  ;;  %v5415_v57 = vcombine.low %v229_v44, %v233_v45  ;;  %v249_v61 = vld [vmem:[#allocation3 + $0x1f0] sm:$0xff]  ;;  %v5425_v2 = vcombine.low %v238_v54, %v242_v56  ;;  %v298_v48 = vld [vmem:[#allocation3 + $0x378] sm:$0xff] }
 0x129   :  { %v5432_v3 = vcombine.high %v245_v60, %v249_v61  ;;  %v293_v45 = vld [vmem:[#allocation3 + $0x350] sm:$0xff] }
 0x12b   :  { %2636 = vmatpush1.bf16.msra.mxu0 %v5739_v63  ;;  %2765 = vmatpush1.bf16.msra.mxu1 %v5741_v0  ;;  %v5426_v63 = vcombine.high %v238_v54, %v242_v56  ;;  %v250_v0 = vld [vmem:[#allocation3 + $0x1f8] sm:$0xff]  ;;  %v305_v54 = vld [vmem:[#allocation3 + $0x3b0] sm:$0xff] }
 0x12c   :  { %2637 = vmatprep.subr.bf16.mxu0 %v5748_v1  ;;  %2766 = vmatprep.subr.bf16.mxu1 %v5750_v5  ;;  %v5423_v1 = vcombine.low %v237_v52, %v241_v53  ;;  %v257_v5 = vld [vmem:[#allocation3 + $0x230] sm:$0xff]  ;;  %v306_v56 = vld [vmem:[#allocation3 + $0x3b8] sm:$0xff] }
 0x12d   :  { %v5440_v11 = vcombine.high %v253_v4, %v257_v5  ;;  %v301_v53 = vld [vmem:[#allocation3 + $0x390] sm:$0xff] }
 0x12f   :  { %2638 = vmatpush1.bf16.msra.mxu0 %v5747_v7  ;;  %2767 = vmatpush1.bf16.msra.mxu1 %v5749_v8  ;;  %v5434_v7 = vcombine.high %v246_v62, %v250_v0  ;;  %v258_v8 = vld [vmem:[#allocation3 + $0x238] sm:$0xff] }
 0x130   :  { %2779 = vmatprep.subr.bf16.mxu0 %v5376_v10  ;;  %2908 = vmatprep.subr.bf16.mxu1 %v5378_v14  ;;  %v5433_v10 = vcombine.low %v246_v62, %v250_v0  ;;  %v262_v14 = vld [vmem:[#allocation3 + $0x258] sm:$0xff]  ;;  %v5442_v15 = vcombine.high %v254_v6, %v258_v8  ;;  %v313_v62 = vld [vmem:[#allocation3 + $0x3f0] sm:$0xff] }
 0x131   :  { %v314_v0 = vld [vmem:[#allocation3 + $0x3f8] sm:$0xff] }
 0x132   :  { %2640 = vmatmul.mubr.bf16.vlgmr.msra.gmra.mrb[0].mxu0 %v6172_v9  ;;  %2769 = vmatmul.mubr.bf16.vlgmr.msra.gmra.mrb[0].mxu1 %v6172_v9  ;;  %v5431_v9 = vcombine.low %v245_v60, %v249_v61  ;;  %v309_v61 = vld [vmem:[#allocation3 + $0x3d0] sm:$0xff] }
 0x133   :  { %2780 = vmatpush1.bf16.msra.mxu0 %v5375_v16  ;;  %2909 = vmatpush1.bf16.msra.mxu1 %v5377_v17  ;;  %v266_v16 = vld [vmem:[#allocation3 + $0x278] sm:$0xff]  ;;  %v5439_v17 = vcombine.low %v253_v4, %v257_v5  ;;  %v317_v5 = vld [vmem:[#allocation3 + $0x410] sm:$0xff] }
 0x134   :  { %2781 = vmatprep.subr.bf16.mxu0 %v5384_v18  ;;  %2910 = vmatprep.subr.bf16.mxu1 %v5386_v22  ;;  %v5441_v18 = vcombine.low %v254_v6, %v258_v8  ;;  %v270_v22 = vld [vmem:[#allocation3 + $0x298] sm:$0xff]  ;;  %v5450_v23 = vcombine.high %v262_v14, %v266_v16  ;;  %v321_v6 = vld [vmem:[#allocation3 + $0x430] sm:$0xff] }
 0x135   :  { %2811 = vmatprep.mubr.bf16.mxu0 %v6589_v32  ;;  %2940 = vmatprep.mubr.bf16.mxu1 %v6589_v32  ;;  %v282_v32 = vld [vmem:[#allocation3 + $0x2f8] sm:$0xff] }
 0x136   :  { %v5466_v36 = vcombine.high %v278_v31, %v282_v32  ;;  %v322_v8 = vld [vmem:[#allocation3 + $0x438] sm:$0xff] }
 0x137   :  { %2782 = vmatpush1.bf16.msra.mxu0 %v5383_v24  ;;  %2911 = vmatpush1.bf16.msra.mxu1 %v5385_v25  ;;  %v274_v24 = vld [vmem:[#allocation3 + $0x2b8] sm:$0xff]  ;;  %v5447_v25 = vcombine.low %v261_v12, %v265_v13  ;;  %v325_v13 = vld [vmem:[#allocation3 + $0x450] sm:$0xff] }
 0x138   :  { %2783 = vmatprep.subr.bf16.mxu0 %v5392_v26  ;;  %2912 = vmatprep.subr.bf16.mxu1 %v5394_v30  ;;  %v5449_v26 = vcombine.low %v262_v14, %v266_v16  ;;  %v5458_v28 = vcombine.high %v270_v22, %v274_v24  ;;  %v281_v30 = vld [vmem:[#allocation3 + $0x2f0] sm:$0xff]  ;;  %v330_v16 = vld [vmem:[#allocation3 + $0x478] sm:$0xff] }
 0x139   :  { %v329_v14 = vld [vmem:[#allocation3 + $0x470] sm:$0xff] }
 0x13b   :  { %2784 = vmatpush1.bf16.msra.mxu0 %v5391_v33  ;;  %2913 = vmatpush1.bf16.msra.mxu1 %v5393_v34  ;;  %v5455_v33 = vcombine.low %v269_v20, %v273_v21  ;;  %v5457_v34 = vcombine.low %v270_v22, %v274_v24  ;;  %v333_v21 = vld [vmem:[#allocation3 + $0x490] sm:$0xff]  ;;  %v334_v24 = vld [vmem:[#allocation3 + $0x498] sm:$0xff] }
 0x13c   :  { %2785 = vmatprep.subr.bf16.mxu0 %v5400_v35  ;;  %2914 = vmatprep.subr.bf16.mxu1 %v5402_v39  ;;  %v5464_v35 = vcombine.high %v277_v29, %v281_v30  ;;  %v286_v39 = vld [vmem:[#allocation3 + $0x318] sm:$0xff]  ;;  %v337_v22 = vld [vmem:[#allocation3 + $0x4b0] sm:$0xff] }
 0x13d   :  { %v5474_v44 = vcombine.high %v286_v39, %v290_v40 }
 0x13f   :  { %2786 = vmatpush1.bf16.msra.mxu0 %v5399_v41  ;;  %2915 = vmatpush1.bf16.msra.mxu1 %v5401_v42  ;;  %v5463_v41 = vcombine.low %v277_v29, %v281_v30  ;;  %v5465_v42 = vcombine.low %v278_v31, %v282_v32  ;;  %v341_v30 = vld [vmem:[#allocation3 + $0x4d0] sm:$0xff]  ;;  %v6591_v32 = vld [vmem:[%s6953_s0 + $0xc] ss:$24 sps:$4 sm:$0xff]  }
 0x140   :  { %2787 = vmatprep.subr.bf16.mxu0 %v5408_v43  ;;  %2916 = vmatprep.subr.bf16.mxu1 %v5410_v47  ;;  %v5472_v43 = vcombine.high %v285_v37, %v289_v38  ;;  %v294_v47 = vld [vmem:[#allocation3 + $0x358] sm:$0xff]  ;;  %v345_v31 = vld [vmem:[#allocation3 + $0x4f0] sm:$0xff] }
 0x141   :  { %v5482_v52 = vcombine.high %v294_v47, %v298_v48 }
 0x143   :  { %2788 = vmatpush1.bf16.msra.mxu0 %v5407_v49  ;;  %2917 = vmatpush1.bf16.msra.mxu1 %v5409_v50  ;;  %v5471_v49 = vcombine.low %v285_v37, %v289_v38  ;;  %v5473_v50 = vcombine.low %v286_v39, %v290_v40  ;;  %v5528_v37 = vcombine.high %v341_v30, %v345_v31  ;;  %v349_v39 = vld [vmem:[#allocation3 + $0x510] sm:$0xff] }
 0x144   :  { %2789 = vmatprep.subr.bf16.mxu0 %v5416_v51  ;;  %2918 = vmatprep.subr.bf16.mxu1 %v5418_v55  ;;  %v5480_v51 = vcombine.high %v293_v45, %v297_v46  ;;  %v302_v55 = vld [vmem:[#allocation3 + $0x398] sm:$0xff]  ;;  %v353_v40 = vld [vmem:[#allocation3 + $0x530] sm:$0xff] }
 0x145   :  { %v5490_v60 = vcombine.high %v302_v55, %v306_v56 }
 0x147   :  { %2790 = vmatpush1.bf16.msra.mxu0 %v5415_v57  ;;  %2919 = vmatpush1.bf16.msra.mxu1 %v5417_v58  ;;  %v5479_v57 = vcombine.low %v293_v45, %v297_v46  ;;  %v5481_v58 = vcombine.low %v294_v47, %v298_v48  ;;  %v5536_v45 = vcombine.high %v349_v39, %v353_v40  ;;  %v357_v47 = vld [vmem:[#allocation3 + $0x550] sm:$0xff] }
 0x148   :  { %2791 = vmatprep.subr.bf16.mxu0 %v5424_v59  ;;  %2920 = vmatprep.subr.bf16.mxu1 %v5426_v63  ;;  %v5488_v59 = vcombine.high %v301_v53, %v305_v54  ;;  %v310_v63 = vld [vmem:[#allocation3 + $0x3d8] sm:$0xff]  ;;  %v361_v48 = vld [vmem:[#allocation3 + $0x570] sm:$0xff] }
 0x149   :  { %v5498_v4 = vcombine.high %v310_v63, %v314_v0 }
 0x14b   :  { %2792 = vmatpush1.bf16.msra.mxu0 %v5423_v1  ;;  %2921 = vmatpush1.bf16.msra.mxu1 %v5425_v2  ;;  %v5487_v1 = vcombine.low %v301_v53, %v305_v54  ;;  %v5489_v2 = vcombine.low %v302_v55, %v306_v56  ;;  %v5544_v53 = vcombine.high %v357_v47, %v361_v48  ;;  %v365_v55 = vld [vmem:[#allocation3 + $0x590] sm:$0xff] }
 0x14c   :  { %2793 = vmatprep.subr.bf16.mxu0 %v5432_v3  ;;  %2922 = vmatprep.subr.bf16.mxu1 %v5434_v7  ;;  %v5496_v3 = vcombine.high %v309_v61, %v313_v62  ;;  %v318_v7 = vld [vmem:[#allocation3 + $0x418] sm:$0xff]  ;;  %v369_v56 = vld [vmem:[#allocation3 + $0x5b0] sm:$0xff] }
 0x14d   :  { %v5506_v12 = vcombine.high %v318_v7, %v322_v8 }
 0x14f   :  { %2794 = vmatpush1.bf16.msra.mxu0 %v5431_v9  ;;  %2923 = vmatpush1.bf16.msra.mxu1 %v5433_v10  ;;  %v5495_v9 = vcombine.low %v309_v61, %v313_v62  ;;  %v5497_v10 = vcombine.low %v310_v63, %v314_v0  ;;  %v5552_v61 = vcombine.high %v365_v55, %v369_v56  ;;  %v373_v63 = vld [vmem:[#allocation3 + $0x5d0] sm:$0xff] }
 0x150   :  { %2795 = vmatprep.subr.bf16.mxu0 %v5440_v11  ;;  %2924 = vmatprep.subr.bf16.mxu1 %v5442_v15  ;;  %v5504_v11 = vcombine.high %v317_v5, %v321_v6  ;;  %v326_v15 = vld [vmem:[#allocation3 + $0x458] sm:$0xff]  ;;  %v377_v0 = vld [vmem:[#allocation3 + $0x5f0] sm:$0xff] }
 0x151   :  { %v5514_v20 = vcombine.high %v326_v15, %v330_v16 }
 0x153   :  { %2796 = vmatpush1.bf16.msra.mxu0 %v5439_v17  ;;  %2925 = vmatpush1.bf16.msra.mxu1 %v5441_v18  ;;  %v5503_v17 = vcombine.low %v317_v5, %v321_v6  ;;  %v5505_v18 = vcombine.low %v318_v7, %v322_v8  ;;  %v5560_v5 = vcombine.high %v373_v63, %v377_v0  ;;  %v381_v7 = vld [vmem:[#allocation3 + $0x610] sm:$0xff] }
 0x154   :  { %2797 = vmatprep.subr.bf16.mxu0 %v5448_v19  ;;  %2926 = vmatprep.subr.bf16.mxu1 %v5450_v23  ;;  %v5512_v19 = vcombine.high %v325_v13, %v329_v14  ;;  %v6590_v23 = vld [vmem:[%s6953_s0] ss:$24 sps:$4 sm:$0xff]   ;;  %v385_v8 = vld [vmem:[#allocation3 + $0x630] sm:$0xff] }
 0x157   :  { %2798 = vmatpush1.bf16.msra.mxu0 %v5447_v25  ;;  %2927 = vmatpush1.bf16.msra.mxu1 %v5449_v26  ;;  %v338_v25 = vld [vmem:[#allocation3 + $0x4b8] sm:$0xff]  ;;  %v5511_v26 = vcombine.low %v325_v13, %v329_v14  ;;  %v5568_v13 = vcombine.high %v381_v7, %v385_v8 }
 0x158   :  { %2799 = vmatprep.subr.bf16.mxu0 %v5456_v27  ;;  %2928 = vmatprep.subr.bf16.mxu1 %v5458_v28  ;;  %v5513_v27 = vcombine.low %v326_v15, %v330_v16  ;;  %v5520_v28 = vcombine.high %v333_v21, %v337_v22  ;;  %v5522_v29 = vcombine.high %v334_v24, %v338_v25  ;;  %v389_v15 = vld [vmem:[#allocation3 + $0x650] sm:$0xff] }
 0x159   :  { %v393_v16 = vld [vmem:[#allocation3 + $0x670] sm:$0xff] }
 0x15b   :  { %2800 = vmatpush1.bf16.msra.mxu0 %v5455_v33  ;;  %2929 = vmatpush1.bf16.msra.mxu1 %v5457_v34  ;;  %v342_v33 = vld [vmem:[#allocation3 + $0x4d8] sm:$0xff] }
 0x15c   :  { %2801 = vmatprep.subr.bf16.mxu0 %v5464_v35  ;;  %2930 = vmatprep.subr.bf16.mxu1 %v5466_v36  ;;  %v346_v34 = vld [vmem:[#allocation3 + $0x4f8] sm:$0xff]  ;;  %v5519_v35 = vcombine.low %v333_v21, %v337_v22  ;;  %v5521_v36 = vcombine.low %v334_v24, %v338_v25  ;;  %v5576_v21 = vcombine.high %v389_v15, %v393_v16  ;;  %v401_v24 = vld [vmem:[#allocation3 + $0x6b0] sm:$0xff] }
 0x15d   :  { %v5530_v38 = vcombine.high %v342_v33, %v346_v34  ;;  %v398_v25 = vld [vmem:[#allocation3 + $0x698] sm:$0xff] }
 0x15f   :  { %2802 = vmatpush1.bf16.msra.mxu0 %v5463_v41  ;;  %2931 = vmatpush1.bf16.msra.mxu1 %v5465_v42  ;;  %v350_v41 = vld [vmem:[#allocation3 + $0x518] sm:$0xff] }
 0x160   :  { %2803 = vmatprep.subr.bf16.mxu0 %v5472_v43  ;;  %2932 = vmatprep.subr.bf16.mxu1 %v5474_v44  ;;  %v354_v42 = vld [vmem:[#allocation3 + $0x538] sm:$0xff]  ;;  %v5527_v43 = vcombine.low %v341_v30, %v345_v31  ;;  %v5529_v44 = vcombine.low %v342_v33, %v346_v34  ;;  %v405_v31 = vld [vmem:[#allocation3 + $0x6d0] sm:$0xff] }
 0x161   :  { %v5538_v46 = vcombine.high %v350_v41, %v354_v42  ;;  %v406_v33 = vld [vmem:[#allocation3 + $0x6d8] sm:$0xff] }
 0x162   :  { %v410_v34 = vld [vmem:[#allocation3 + $0x6f8] sm:$0xff] }
 0x163   :  { %2804 = vmatpush1.bf16.msra.mxu0 %v5471_v49  ;;  %2933 = vmatpush1.bf16.msra.mxu1 %v5473_v50  ;;  %v358_v49 = vld [vmem:[#allocation3 + $0x558] sm:$0xff] }
 0x164   :  { %2805 = vmatprep.subr.bf16.mxu0 %v5480_v51  ;;  %2934 = vmatprep.subr.bf16.mxu1 %v5482_v52  ;;  %v362_v50 = vld [vmem:[#allocation3 + $0x578] sm:$0xff]  ;;  %v5535_v51 = vcombine.low %v349_v39, %v353_v40  ;;  %v5537_v52 = vcombine.low %v350_v41, %v354_v42  ;;  %v413_v39 = vld [vmem:[#allocation3 + $0x710] sm:$0xff] }
 0x165   :  { %v5546_v54 = vcombine.high %v358_v49, %v362_v50  ;;  %v417_v40 = vld [vmem:[#allocation3 + $0x730] sm:$0xff]  ;;  %v414_v41 = vld [vmem:[#allocation3 + $0x718] sm:$0xff] }
 0x166   :  { %v418_v42 = vld [vmem:[#allocation3 + $0x738] sm:$0xff] }
 0x167   :  { %2806 = vmatpush1.bf16.msra.mxu0 %v5479_v57  ;;  %2935 = vmatpush1.bf16.msra.mxu1 %v5481_v58  ;;  %v366_v57 = vld [vmem:[#allocation3 + $0x598] sm:$0xff] }
 0x168   :  { %2807 = vmatprep.subr.bf16.mxu0 %v5488_v59  ;;  %2936 = vmatprep.subr.bf16.mxu1 %v5490_v60  ;;  %v370_v58 = vld [vmem:[#allocation3 + $0x5b8] sm:$0xff]  ;;  %v5543_v59 = vcombine.low %v357_v47, %v361_v48  ;;  %v5545_v60 = vcombine.low %v358_v49, %v362_v50  ;;  %v421_v47 = vld [vmem:[#allocation3 + $0x750] sm:$0xff] }
 0x169   :  { %v5554_v62 = vcombine.high %v366_v57, %v370_v58  ;;  %v425_v48 = vld [vmem:[#allocation3 + $0x770] sm:$0xff]  ;;  %v422_v49 = vld [vmem:[#allocation3 + $0x758] sm:$0xff] }
 0x16a   :  { %v426_v50 = vld [vmem:[#allocation3 + $0x778] sm:$0xff] }
 0x16b   :  { %2808 = vmatpush1.bf16.msra.mxu0 %v5487_v1  ;;  %2937 = vmatpush1.bf16.msra.mxu1 %v5489_v2  ;;  %v374_v1 = vld [vmem:[#allocation3 + $0x5d8] sm:$0xff] }
 0x16c   :  { %2809 = vmatprep.subr.bf16.mxu0 %v5496_v3  ;;  %2938 = vmatprep.subr.bf16.mxu1 %v5498_v4  ;;  %v378_v2 = vld [vmem:[#allocation3 + $0x5f8] sm:$0xff]  ;;  %v5551_v3 = vcombine.low %v365_v55, %v369_v56  ;;  %v5553_v4 = vcombine.low %v366_v57, %v370_v58  ;;  %v429_v55 = vld [vmem:[#allocation3 + $0x790] sm:$0xff] }
 0x16d   :  { %v5562_v6 = vcombine.high %v374_v1, %v378_v2  ;;  %v433_v56 = vld [vmem:[#allocation3 + $0x7b0] sm:$0xff]  ;;  %v430_v57 = vld [vmem:[#allocation3 + $0x798] sm:$0xff] }
 0x16e   :  { %v434_v58 = vld [vmem:[#allocation3 + $0x7b8] sm:$0xff] }
 0x16f   :  { %2810 = vmatpush1.bf16.msra.mxu0 %v5495_v9  ;;  %2939 = vmatpush1.bf16.msra.mxu1 %v5497_v10  ;;  %v382_v9 = vld [vmem:[#allocation3 + $0x618] sm:$0xff] }
 0x170   :  { %2822 = vmatprep.subr.bf16.mxu0 %v5504_v11  ;;  %2951 = vmatprep.subr.bf16.mxu1 %v5506_v12  ;;  %v386_v10 = vld [vmem:[#allocation3 + $0x638] sm:$0xff]  ;;  %v5559_v11 = vcombine.low %v373_v63, %v377_v0  ;;  %v5561_v12 = vcombine.low %v374_v1, %v378_v2  ;;  %v437_v63 = vld [vmem:[#allocation3 + $0x7d0] sm:$0xff] }
 0x171   :  { %v5570_v14 = vcombine.high %v382_v9, %v386_v10  ;;  %v441_v0 = vld [vmem:[#allocation3 + $0x7f0] sm:$0xff]  ;;  %v438_v1 = vld [vmem:[#allocation3 + $0x7d8] sm:$0xff] }
 0x172   :  { %2812 = vmatmul.mubr.bf16.vlgmr.msra.gmra.mrb[4].mxu0 %v6590_v23  ;;  %2941 = vmatmul.mubr.bf16.vlgmr.msra.gmra.mrb[4].mxu1 %v6590_v23  ;;  %v397_v23 = vld [vmem:[#allocation3 + $0x690] sm:$0xff]  ;;  %v442_v2 = vld [vmem:[#allocation3 + $0x7f8] sm:$0xff] }
 0x173   :  { %2823 = vmatpush1.bf16.msra.mxu0 %v5503_v17  ;;  %2952 = vmatpush1.bf16.msra.mxu1 %v5505_v18  ;;  %v390_v17 = vld [vmem:[#allocation3 + $0x658] sm:$0xff] }
 0x174   :  { %2824 = vmatprep.subr.bf16.mxu0 %v5512_v19  ;;  %2953 = vmatprep.subr.bf16.mxu1 %v5514_v20  ;;  %v394_v18 = vld [vmem:[#allocation3 + $0x678] sm:$0xff]  ;;  %v5567_v19 = vcombine.low %v381_v7, %v385_v8  ;;  %v5569_v20 = vcombine.low %v382_v9, %v386_v10  ;;  %v445_v7 = vld [vmem:[#allocation3 + $0x810] sm:$0xff] }
 0x175   :  { %2854 = vmatprep.mubr.bf16.mxu0 %v6591_v32  ;;  %2983 = vmatprep.mubr.bf16.mxu1 %v6591_v32  ;;  %v5578_v22 = vcombine.high %v390_v17, %v394_v18  ;;  %v409_v32 = vld [vmem:[#allocation3 + $0x6f0] sm:$0xff]  ;;  %v446_v9 = vld [vmem:[#allocation3 + $0x818] sm:$0xff] }
 0x176   :  { %v449_v8 = vld [vmem:[#allocation3 + $0x830] sm:$0xff]  ;;  %v450_v10 = vld [vmem:[#allocation3 + $0x838] sm:$0xff] }
 0x177   :  { %2825 = vmatpush1.bf16.msra.mxu0 %v5511_v26  ;;  %2954 = vmatpush1.bf16.msra.mxu1 %v5513_v27  ;;  %v402_v26 = vld [vmem:[#allocation3 + $0x6b8] sm:$0xff]  ;;  %v5575_v27 = vcombine.low %v389_v15, %v393_v16  ;;  %v453_v15 = vld [vmem:[#allocation3 + $0x850] sm:$0xff] }
 0x178   :  { %2826 = vmatprep.subr.bf16.mxu0 %v5520_v28  ;;  %2955 = vmatprep.subr.bf16.mxu1 %v5522_v29  ;;  %v5577_v28 = vcombine.low %v390_v17, %v394_v18  ;;  %v5584_v29 = vcombine.high %v397_v23, %v401_v24  ;;  %v5586_v30 = vcombine.high %v398_v25, %v402_v26  ;;  %v457_v16 = vld [vmem:[#allocation3 + $0x870] sm:$0xff]  ;;  %v454_v17 = vld [vmem:[#allocation3 + $0x858] sm:$0xff] }
 0x179   :  { %v458_v18 = vld [vmem:[#allocation3 + $0x878] sm:$0xff] }
 0x17b   :  { %2827 = vmatpush1.bf16.msra.mxu0 %v5519_v35  ;;  %2956 = vmatpush1.bf16.msra.mxu1 %v5521_v36  ;;  %v5583_v35 = vcombine.low %v397_v23, %v401_v24  ;;  %v5585_v36 = vcombine.low %v398_v25, %v402_v26  ;;  %v461_v23 = vld [vmem:[#allocation3 + $0x890] sm:$0xff]  ;;  %v6592_v25 = vld [vmem:[%s6953_s0 + $0x8] ss:$24 sps:$4 sm:$0xff]   ;;  %v462_v26 = vld [vmem:[#allocation3 + $0x898] sm:$0xff] }
 0x17c   :  { %2828 = vmatprep.subr.bf16.mxu0 %v5528_v37  ;;  %2957 = vmatprep.subr.bf16.mxu1 %v5530_v38  ;;  %v5592_v37 = vcombine.high %v405_v31, %v409_v32  ;;  %v5594_v38 = vcombine.high %v406_v33, %v410_v34  ;;  %v465_v24 = vld [vmem:[#allocation3 + $0x8b0] sm:$0xff] }
 0x17f   :  { %2829 = vmatpush1.bf16.msra.mxu0 %v5527_v43  ;;  %2958 = vmatpush1.bf16.msra.mxu1 %v5529_v44  ;;  %v5591_v43 = vcombine.low %v405_v31, %v409_v32  ;;  %v5593_v44 = vcombine.low %v406_v33, %v410_v34  ;;  %v469_v32 = vld [vmem:[#allocation3 + $0x8d0] sm:$0xff] }
 0x180   :  { %2830 = vmatprep.subr.bf16.mxu0 %v5536_v45  ;;  %2959 = vmatprep.subr.bf16.mxu1 %v5538_v46  ;;  %v5600_v45 = vcombine.high %v413_v39, %v417_v40  ;;  %v5602_v46 = vcombine.high %v414_v41, %v418_v42  ;;  %v473_v33 = vld [vmem:[#allocation3 + $0x8f0] sm:$0xff] }
 0x181   :  { %v6593_v34 = vld [vmem:[%s6953_s0 + $0x14] ss:$24 sps:$4 sm:$0xff]  }
 0x183   :  { %2831 = vmatpush1.bf16.msra.mxu0 %v5535_v51  ;;  %2960 = vmatpush1.bf16.msra.mxu1 %v5537_v52  ;;  %v5599_v51 = vcombine.low %v413_v39, %v417_v40  ;;  %v5601_v52 = vcombine.low %v414_v41, %v418_v42  ;;  %v5656_v39 = vcombine.high %v469_v32, %v473_v33  ;;  %v477_v41 = vld [vmem:[#allocation3 + $0x910] sm:$0xff] }
 0x184   :  { %2832 = vmatprep.subr.bf16.mxu0 %v5544_v53  ;;  %2961 = vmatprep.subr.bf16.mxu1 %v5546_v54  ;;  %v5608_v53 = vcombine.high %v421_v47, %v425_v48  ;;  %v5610_v54 = vcombine.high %v422_v49, %v426_v50  ;;  %v481_v42 = vld [vmem:[#allocation3 + $0x930] sm:$0xff] }
 0x187   :  { %2833 = vmatpush1.bf16.msra.mxu0 %v5543_v59  ;;  %2962 = vmatpush1.bf16.msra.mxu1 %v5545_v60  ;;  %v5607_v59 = vcombine.low %v421_v47, %v425_v48  ;;  %v5609_v60 = vcombine.low %v422_v49, %v426_v50  ;;  %v5664_v47 = vcombine.high %v477_v41, %v481_v42  ;;  %v485_v49 = vld [vmem:[#allocation3 + $0x950] sm:$0xff] }
 0x188   :  { %2834 = vmatprep.subr.bf16.mxu0 %v5552_v61  ;;  %2963 = vmatprep.subr.bf16.mxu1 %v5554_v62  ;;  %v5616_v61 = vcombine.high %v429_v55, %v433_v56  ;;  %v5618_v62 = vcombine.high %v430_v57, %v434_v58  ;;  %v489_v50 = vld [vmem:[#allocation3 + $0x970] sm:$0xff] }
 0x18b   :  { %2835 = vmatpush1.bf16.msra.mxu0 %v5551_v3  ;;  %2964 = vmatpush1.bf16.msra.mxu1 %v5553_v4  ;;  %v5615_v3 = vcombine.low %v429_v55, %v433_v56  ;;  %v5617_v4 = vcombine.low %v430_v57, %v434_v58  ;;  %v5672_v55 = vcombine.high %v485_v49, %v489_v50  ;;  %v493_v57 = vld [vmem:[#allocation3 + $0x990] sm:$0xff] }
 0x18c   :  { %2836 = vmatprep.subr.bf16.mxu0 %v5560_v5  ;;  %2965 = vmatprep.subr.bf16.mxu1 %v5562_v6  ;;  %v5624_v5 = vcombine.high %v437_v63, %v441_v0  ;;  %v5626_v6 = vcombine.high %v438_v1, %v442_v2  ;;  %v497_v58 = vld [vmem:[#allocation3 + $0x9b0] sm:$0xff] }
 0x18f   :  { %2837 = vmatpush1.bf16.msra.mxu0 %v5559_v11  ;;  %2966 = vmatpush1.bf16.msra.mxu1 %v5561_v12  ;;  %v5623_v11 = vcombine.low %v437_v63, %v441_v0  ;;  %v5625_v12 = vcombine.low %v438_v1, %v442_v2  ;;  %v5680_v63 = vcombine.high %v493_v57, %v497_v58  ;;  %v501_v1 = vld [vmem:[#allocation3 + $0x9d0] sm:$0xff] }
 0x190   :  { %2838 = vmatprep.subr.bf16.mxu0 %v5568_v13  ;;  %2967 = vmatprep.subr.bf16.mxu1 %v5570_v14  ;;  %v5632_v13 = vcombine.high %v445_v7, %v449_v8  ;;  %v5634_v14 = vcombine.high %v446_v9, %v450_v10  ;;  %v505_v2 = vld [vmem:[#allocation3 + $0x9f0] sm:$0xff] }
 0x193   :  { %2839 = vmatpush1.bf16.msra.mxu0 %v5567_v19  ;;  %2968 = vmatpush1.bf16.msra.mxu1 %v5569_v20  ;;  %v5631_v19 = vcombine.low %v445_v7, %v449_v8  ;;  %v5633_v20 = vcombine.low %v446_v9, %v450_v10  ;;  %v5688_v7 = vcombine.high %v501_v1, %v505_v2  ;;  %v509_v9 = vld [vmem:[#allocation3 + $0xa10] sm:$0xff] }
 0x194   :  { %2840 = vmatprep.subr.bf16.mxu0 %v5576_v21  ;;  %2969 = vmatprep.subr.bf16.mxu1 %v5578_v22  ;;  %v5640_v21 = vcombine.high %v453_v15, %v457_v16  ;;  %v5642_v22 = vcombine.high %v454_v17, %v458_v18  ;;  %v513_v10 = vld [vmem:[#allocation3 + $0xa30] sm:$0xff] }
 0x197   :  { %2841 = vmatpush1.bf16.msra.mxu0 %v5575_v27  ;;  %2970 = vmatpush1.bf16.msra.mxu1 %v5577_v28  ;;  %v466_v27 = vld [vmem:[#allocation3 + $0x8b8] sm:$0xff]  ;;  %v5639_v28 = vcombine.low %v453_v15, %v457_v16  ;;  %v5696_v15 = vcombine.high %v509_v9, %v513_v10 }
 0x198   :  { %2842 = vmatprep.subr.bf16.mxu0 %v5584_v29  ;;  %2971 = vmatprep.subr.bf16.mxu1 %v5586_v30  ;;  %v5641_v29 = vcombine.low %v454_v17, %v458_v18  ;;  %v5648_v30 = vcombine.high %v461_v23, %v465_v24  ;;  %v5650_v31 = vcombine.high %v462_v26, %v466_v27  ;;  %v517_v17 = vld [vmem:[#allocation3 + $0xa50] sm:$0xff] }
 0x199   :  { %v521_v18 = vld [vmem:[#allocation3 + $0xa70] sm:$0xff] }
 0x19b   :  { %2843 = vmatpush1.bf16.msra.mxu0 %v5583_v35  ;;  %2972 = vmatpush1.bf16.msra.mxu1 %v5585_v36  ;;  %v470_v35 = vld [vmem:[#allocation3 + $0x8d8] sm:$0xff] }
 0x19c   :  { %2844 = vmatprep.subr.bf16.mxu0 %v5592_v37  ;;  %2973 = vmatprep.subr.bf16.mxu1 %v5594_v38  ;;  %v474_v36 = vld [vmem:[#allocation3 + $0x8f8] sm:$0xff]  ;;  %v5647_v37 = vcombine.low %v461_v23, %v465_v24  ;;  %v5649_v38 = vcombine.low %v462_v26, %v466_v27  ;;  %v5704_v23 = vcombine.high %v517_v17, %v521_v18  ;;  %v529_v26 = vld [vmem:[#allocation3 + $0xab0] sm:$0xff] }
 0x19d   :  { %v5658_v40 = vcombine.high %v470_v35, %v474_v36  ;;  %v526_v27 = vld [vmem:[#allocation3 + $0xa98] sm:$0xff] }
 0x19f   :  { %2845 = vmatpush1.bf16.msra.mxu0 %v5591_v43  ;;  %2974 = vmatpush1.bf16.msra.mxu1 %v5593_v44  ;;  %v478_v43 = vld [vmem:[#allocation3 + $0x918] sm:$0xff] }
 0x1a0   :  { %2846 = vmatprep.subr.bf16.mxu0 %v5600_v45  ;;  %2975 = vmatprep.subr.bf16.mxu1 %v5602_v46  ;;  %v482_v44 = vld [vmem:[#allocation3 + $0x938] sm:$0xff]  ;;  %v5655_v45 = vcombine.low %v469_v32, %v473_v33  ;;  %v5657_v46 = vcombine.low %v470_v35, %v474_v36  ;;  %v533_v33 = vld [vmem:[#allocation3 + $0xad0] sm:$0xff] }
 0x1a1   :  { %v5666_v48 = vcombine.high %v478_v43, %v482_v44  ;;  %v534_v35 = vld [vmem:[#allocation3 + $0xad8] sm:$0xff] }
 0x1a2   :  { %v538_v36 = vld [vmem:[#allocation3 + $0xaf8] sm:$0xff] }
 0x1a3   :  { %2847 = vmatpush1.bf16.msra.mxu0 %v5599_v51  ;;  %2976 = vmatpush1.bf16.msra.mxu1 %v5601_v52  ;;  %v486_v51 = vld [vmem:[#allocation3 + $0x958] sm:$0xff] }
 0x1a4   :  { %2848 = vmatprep.subr.bf16.mxu0 %v5608_v53  ;;  %2977 = vmatprep.subr.bf16.mxu1 %v5610_v54  ;;  %v490_v52 = vld [vmem:[#allocation3 + $0x978] sm:$0xff]  ;;  %v5663_v53 = vcombine.low %v477_v41, %v481_v42  ;;  %v5665_v54 = vcombine.low %v478_v43, %v482_v44  ;;  %v541_v41 = vld [vmem:[#allocation3 + $0xb10] sm:$0xff] }
 0x1a5   :  { %v5674_v56 = vcombine.high %v486_v51, %v490_v52  ;;  %v545_v42 = vld [vmem:[#allocation3 + $0xb30] sm:$0xff]  ;;  %v542_v43 = vld [vmem:[#allocation3 + $0xb18] sm:$0xff] }
 0x1a6   :  { %v546_v44 = vld [vmem:[#allocation3 + $0xb38] sm:$0xff] }
 0x1a7   :  { %2849 = vmatpush1.bf16.msra.mxu0 %v5607_v59  ;;  %2978 = vmatpush1.bf16.msra.mxu1 %v5609_v60  ;;  %v494_v59 = vld [vmem:[#allocation3 + $0x998] sm:$0xff] }
 0x1a8   :  { %2850 = vmatprep.subr.bf16.mxu0 %v5616_v61  ;;  %2979 = vmatprep.subr.bf16.mxu1 %v5618_v62  ;;  %v498_v60 = vld [vmem:[#allocation3 + $0x9b8] sm:$0xff]  ;;  %v5671_v61 = vcombine.low %v485_v49, %v489_v50  ;;  %v5673_v62 = vcombine.low %v486_v51, %v490_v52  ;;  %v549_v49 = vld [vmem:[#allocation3 + $0xb50] sm:$0xff] }
 0x1a9   :  { %v5682_v0 = vcombine.high %v494_v59, %v498_v60  ;;  %v553_v50 = vld [vmem:[#allocation3 + $0xb70] sm:$0xff]  ;;  %v550_v51 = vld [vmem:[#allocation3 + $0xb58] sm:$0xff] }
 0x1aa   :  { %v554_v52 = vld [vmem:[#allocation3 + $0xb78] sm:$0xff] }
 0x1ab   :  { %2851 = vmatpush1.bf16.msra.mxu0 %v5615_v3  ;;  %2980 = vmatpush1.bf16.msra.mxu1 %v5617_v4  ;;  %v502_v3 = vld [vmem:[#allocation3 + $0x9d8] sm:$0xff] }
 0x1ac   :  { %2852 = vmatprep.subr.bf16.mxu0 %v5624_v5  ;;  %2981 = vmatprep.subr.bf16.mxu1 %v5626_v6  ;;  %v506_v4 = vld [vmem:[#allocation3 + $0x9f8] sm:$0xff]  ;;  %v5679_v5 = vcombine.low %v493_v57, %v497_v58  ;;  %v5681_v6 = vcombine.low %v494_v59, %v498_v60  ;;  %v557_v57 = vld [vmem:[#allocation3 + $0xb90] sm:$0xff] }
 0x1ad   :  { %v5690_v8 = vcombine.high %v502_v3, %v506_v4  ;;  %v561_v58 = vld [vmem:[#allocation3 + $0xbb0] sm:$0xff]  ;;  %v558_v59 = vld [vmem:[#allocation3 + $0xb98] sm:$0xff] }
 0x1ae   :  { %v562_v60 = vld [vmem:[#allocation3 + $0xbb8] sm:$0xff] }
 0x1af   :  { %2853 = vmatpush1.bf16.msra.mxu0 %v5623_v11  ;;  %2982 = vmatpush1.bf16.msra.mxu1 %v5625_v12  ;;  %v510_v11 = vld [vmem:[#allocation3 + $0xa18] sm:$0xff] }
 0x1b0   :  { %2865 = vmatprep.subr.bf16.mxu0 %v5632_v13  ;;  %2994 = vmatprep.subr.bf16.mxu1 %v5634_v14  ;;  %v514_v12 = vld [vmem:[#allocation3 + $0xa38] sm:$0xff]  ;;  %v5687_v13 = vcombine.low %v501_v1, %v505_v2  ;;  %v5689_v14 = vcombine.low %v502_v3, %v506_v4  ;;  %v565_v1 = vld [vmem:[#allocation3 + $0xbd0] sm:$0xff] }
 0x1b1   :  { %v5698_v16 = vcombine.high %v510_v11, %v514_v12  ;;  %v569_v2 = vld [vmem:[#allocation3 + $0xbf0] sm:$0xff]  ;;  %v566_v3 = vld [vmem:[#allocation3 + $0xbd8] sm:$0xff] }
 0x1b2   :  { %2855 = vmatmul.mubr.bf16.vlgmr.msra.gmra.mrb[4].mxu0 %v6592_v25  ;;  %2984 = vmatmul.mubr.bf16.vlgmr.msra.gmra.mrb[4].mxu1 %v6592_v25  ;;  %v525_v25 = vld [vmem:[#allocation3 + $0xa90] sm:$0xff]  ;;  %v570_v4 = vld [vmem:[#allocation3 + $0xbf8] sm:$0xff] }
 0x1b3   :  { %2866 = vmatpush1.bf16.msra.mxu0 %v5631_v19  ;;  %2995 = vmatpush1.bf16.msra.mxu1 %v5633_v20  ;;  %v518_v19 = vld [vmem:[#allocation3 + $0xa58] sm:$0xff] }
 0x1b4   :  { %2867 = vmatprep.subr.bf16.mxu0 %v5640_v21  ;;  %2996 = vmatprep.subr.bf16.mxu1 %v5642_v22  ;;  %v522_v20 = vld [vmem:[#allocation3 + $0xa78] sm:$0xff]  ;;  %v5695_v21 = vcombine.low %v509_v9, %v513_v10  ;;  %v5697_v22 = vcombine.low %v510_v11, %v514_v12  ;;  %v5751_v9 = vcombine.low %v565_v1, %v569_v2  ;;  %v6178_v12 = vld [vmem:[#allocation7 + $0xc] ss:$16 sps:$4 sm:$0xff]  }
 0x1b5   :  { %2897 = vmatprep.mubr.bf16.mxu0 %v6593_v34  ;;  %3026 = vmatprep.mubr.bf16.mxu1 %v6593_v34  ;;  %v5706_v24 = vcombine.high %v518_v19, %v522_v20  ;;  %v537_v34 = vld [vmem:[#allocation3 + $0xaf0] sm:$0xff]  ;;  %v5753_v10 = vcombine.low %v566_v3, %v570_v4  ;;  %v6175_v11 = vld [vmem:[#allocation7 + $0x4] ss:$16 sps:$4 sm:$0xff]  }
 0x1b7   :  { %2868 = vmatpush1.bf16.msra.mxu0 %v5639_v28  ;;  %2997 = vmatpush1.bf16.msra.mxu1 %v5641_v29  ;;  %v530_v28 = vld [vmem:[#allocation3 + $0xab8] sm:$0xff]  ;;  %v5703_v29 = vcombine.low %v517_v17, %v521_v18  ;;  %v6594_v17 = vld [vmem:[%s6953_s0 + $0x10] ss:$24 sps:$4 sm:$0xff]  }
 0x1b8   :  { %2869 = vmatprep.subr.bf16.mxu0 %v5648_v30  ;;  %2998 = vmatprep.subr.bf16.mxu1 %v5650_v31  ;;  %v5705_v30 = vcombine.low %v518_v19, %v522_v20  ;;  %v5712_v31 = vcombine.high %v525_v25, %v529_v26  ;;  %v5714_v32 = vcombine.high %v526_v27, %v530_v28  ;;  %v6179_v18 = vld [vmem:[#allocation7 + $0x20] ss:$16 sps:$4 sm:$0xff]   ;;  %v6182_v19 = vld [vmem:[#allocation7 + $0x28] ss:$16 sps:$4 sm:$0xff]   ;;  %v6187_v20 = vld [vmem:[#allocation7 + $0x44] ss:$16 sps:$4 sm:$0xff]  }
 0x1bb   :  { %2870 = vmatpush1.bf16.msra.mxu0 %v5647_v37  ;;  %2999 = vmatpush1.bf16.msra.mxu1 %v5649_v38  ;;  %v5711_v37 = vcombine.low %v525_v25, %v529_v26  ;;  %v5713_v38 = vcombine.low %v526_v27, %v530_v28  ;;  %v109_v25 = vlaneseq  ;;  %v6196_v26 = vld [vmem:[#allocation7 + $0x6c] ss:$16 sps:$4 sm:$0xff]   ;;  %v6191_v27 = vld [vmem:[#allocation7 + $0x60] ss:$16 sps:$4 sm:$0xff]   ;;  %v6194_v28 = vld [vmem:[#allocation7 + $0x68] ss:$16 sps:$4 sm:$0xff]  }
 0x1bc   :  { %2871 = vmatprep.subr.bf16.mxu0 %v5656_v39  ;;  %3000 = vmatprep.subr.bf16.mxu1 %v5658_v40  ;;  %v5720_v39 = vcombine.high %v533_v33, %v537_v34  ;;  %v5722_v40 = vcombine.high %v534_v35, %v538_v36 }
 0x1bf   :  { %2872 = vmatpush1.bf16.msra.mxu0 %v5655_v45  ;;  %3001 = vmatpush1.bf16.msra.mxu1 %v5657_v46  ;;  %v5719_v45 = vcombine.low %v533_v33, %v537_v34  ;;  %v5721_v46 = vcombine.low %v534_v35, %v538_v36  ;;  %v6200_v33 = vld [vmem:[#allocation7 + $0x88] ss:$16 sps:$4 sm:$0xff]   ;;  %v6205_v35 = vld [vmem:[#allocation7 + $0xa4] ss:$16 sps:$4 sm:$0xff]  }
 0x1c0   :  { %2873 = vmatprep.subr.bf16.mxu0 %v5664_v47  ;;  %3002 = vmatprep.subr.bf16.mxu1 %v5666_v48  ;;  %v5728_v47 = vcombine.high %v541_v41, %v545_v42  ;;  %v5730_v48 = vcombine.high %v542_v43, %v546_v44  ;;  %v6898_v36 = vld [vmem:[#allocation5] sm:$0xff] }
 0x1c3   :  { %2874 = vmatpush1.bf16.msra.mxu0 %v5663_v53  ;;  %3003 = vmatpush1.bf16.msra.mxu1 %v5665_v54  ;;  %v5727_v53 = vcombine.low %v541_v41, %v545_v42  ;;  %v5729_v54 = vcombine.low %v542_v43, %v546_v44  ;;  %v6203_v41 = vld [vmem:[#allocation7 + $0xa0] ss:$16 sps:$4 sm:$0xff]   ;;  %v6206_v43 = vld [vmem:[#allocation7 + $0xa8] ss:$16 sps:$4 sm:$0xff]   ;;  %v6211_v44 = vld [vmem:[#allocation7 + $0xc4] ss:$16 sps:$4 sm:$0xff]  }
 0x1c4   :  { %2875 = vmatprep.subr.bf16.mxu0 %v5672_v55  ;;  %3004 = vmatprep.subr.bf16.mxu1 %v5674_v56  ;;  %v5736_v55 = vcombine.high %v549_v49, %v553_v50  ;;  %v5738_v56 = vcombine.high %v550_v51, %v554_v52 }
 0x1c7   :  { %2876 = vmatpush1.bf16.msra.mxu0 %v5671_v61  ;;  %3005 = vmatpush1.bf16.msra.mxu1 %v5673_v62  ;;  %v5735_v61 = vcombine.low %v549_v49, %v553_v50  ;;  %v5737_v62 = vcombine.low %v550_v51, %v554_v52 }
 0x1c8   :  { %2877 = vmatprep.subr.bf16.mxu0 %v5680_v63  ;;  %3006 = vmatprep.subr.bf16.mxu1 %v5682_v0  ;;  %v5744_v63 = vcombine.high %v557_v57, %v561_v58  ;;  %v5746_v0 = vcombine.high %v558_v59, %v562_v60 }
 0x1cb   :  { %2878 = vmatpush1.bf16.msra.mxu0 %v5679_v5  ;;  %3007 = vmatpush1.bf16.msra.mxu1 %v5681_v6  ;;  %v5743_v5 = vcombine.low %v557_v57, %v561_v58  ;;  %v5745_v6 = vcombine.low %v558_v59, %v562_v60  ;;  %v6212_v59 = vld [vmem:[#allocation7 + $0xc8] ss:$16 sps:$4 sm:$0xff]   ;;  %v6217_v60 = vld [vmem:[#allocation7 + $0xe4] ss:$16 sps:$4 sm:$0xff]  }
 0x1cc   :  { %2879 = vmatprep.subr.bf16.mxu0 %v5688_v7  ;;  %3008 = vmatprep.subr.bf16.mxu1 %v5690_v8  ;;  %v5752_v7 = vcombine.high %v565_v1, %v569_v2  ;;  %v5754_v8 = vcombine.high %v566_v3, %v570_v4 }
 0x1cf   :  { %2880 = vmatpush1.bf16.msra.mxu0 %v5687_v13  ;;  %3009 = vmatpush1.bf16.msra.mxu1 %v5689_v14  ;;  %v6173_v13 = vld [vmem:[#allocation7] ss:$16 sps:$4 sm:$0xff]   ;;  %v6176_v14 = vld [vmem:[#allocation7 + $0x8] ss:$16 sps:$4 sm:$0xff]  }
 0x1d0   :  { %2881 = vmatprep.subr.bf16.mxu0 %v5696_v15  ;;  %3010 = vmatprep.subr.bf16.mxu1 %v5698_v16  ;;  %v6181_v15 = vld [vmem:[#allocation7 + $0x24] ss:$16 sps:$4 sm:$0xff]   ;;  %v6184_v16 = vld [vmem:[#allocation7 + $0x2c] ss:$16 sps:$4 sm:$0xff]  }
 0x1d3   :  { %2882 = vmatpush1.bf16.msra.mxu0 %v5695_v21  ;;  %3011 = vmatpush1.bf16.msra.mxu1 %v5697_v22  ;;  %v6190_v21 = vld [vmem:[#allocation7 + $0x4c] ss:$16 sps:$4 sm:$0xff]   ;;  %v6185_v22 = vld [vmem:[#allocation7 + $0x40] ss:$16 sps:$4 sm:$0xff]  }
 0x1d4   :  { %2883 = vmatprep.subr.bf16.mxu0 %v5704_v23  ;;  %3012 = vmatprep.subr.bf16.mxu1 %v5706_v24  ;;  %v6188_v23 = vld [vmem:[#allocation7 + $0x48] ss:$16 sps:$4 sm:$0xff]   ;;  %v6193_v24 = vld [vmem:[#allocation7 + $0x64] ss:$16 sps:$4 sm:$0xff]  }
 0x1d7   :  { %2884 = vmatpush1.bf16.msra.mxu0 %v5703_v29  ;;  %3013 = vmatpush1.bf16.msra.mxu1 %v5705_v30  ;;  %v6199_v29 = vld [vmem:[#allocation7 + $0x84] ss:$16 sps:$4 sm:$0xff]   ;;  %v6895_v30 = vshrl.u32 %v109_v25, 7  ;;  %v6239_v25 = vld [vmem:[#allocation7 + $0x160] ss:$16 sps:$4 sm:$0xff]  }
 0x1d8   :  { %2885 = vmatprep.subr.bf16.mxu0 %v5712_v31  ;;  %3014 = vmatprep.subr.bf16.mxu1 %v5714_v32  ;;  %v6202_v31 = vld [vmem:[#allocation7 + $0x8c] ss:$16 sps:$4 sm:$0xff]   ;;  %v6197_v32 = vld [vmem:[#allocation7 + $0x80] ss:$16 sps:$4 sm:$0xff]  }
 0x1d9   :  { %v111_v34 = vsub.s32 0, %v6895_v30 }
 0x1db   :  { %2886 = vmatpush1.bf16.msra.mxu0 %v5711_v37  ;;  %3015 = vmatpush1.bf16.msra.mxu1 %v5713_v38  ;;  %v119_v37 = vsub.s32 2, %v6895_v30  ;;  %v115_v38 = vsub.s32 1, %v6895_v30  ;;  %v112_v42 = vrot.slane %v6898_v36, %v111_v34 }
 0x1dc   :  { %2887 = vmatprep.subr.bf16.mxu0 %v5720_v39  ;;  %3016 = vmatprep.subr.bf16.mxu1 %v5722_v40  ;;  %v6208_v39 = vld [vmem:[#allocation7 + $0xac] ss:$16 sps:$4 sm:$0xff]   ;;  %v123_v40 = vsub.s32 3, %v6895_v30 }
 0x1de   :  { %v124_v51 = vrot.slane %v6898_v36, %v123_v40 }
 0x1df   :  { %2888 = vmatpush1.bf16.msra.mxu0 %v5719_v45  ;;  %3017 = vmatpush1.bf16.msra.mxu1 %v5721_v46  ;;  %v120_v46 = vrot.slane %v6898_v36, %v119_v37 }
 0x1e0   :  { %2889 = vmatprep.subr.bf16.mxu0 %v5728_v47  ;;  %3018 = vmatprep.subr.bf16.mxu1 %v5730_v48  ;;  %v116_v47 = vrot.slane %v6898_v36, %v115_v38  ;;  %v6214_v48 = vld [vmem:[#allocation7 + $0xcc] ss:$16 sps:$4 sm:$0xff]  }
 0x1e3   :  { %2890 = vmatpush1.bf16.msra.mxu0 %v5727_v53  ;;  %3019 = vmatpush1.bf16.msra.mxu1 %v5729_v54  ;;  %v6209_v54 = vld [vmem:[#allocation7 + $0xc0] ss:$16 sps:$4 sm:$0xff]  }
 0x1e4   :  { %2891 = vmatprep.subr.bf16.mxu0 %v5736_v55  ;;  %3020 = vmatprep.subr.bf16.mxu1 %v5738_v56 }
 0x1e7   :  { %2892 = vmatpush1.bf16.msra.mxu0 %v5735_v61  ;;  %3021 = vmatpush1.bf16.msra.mxu1 %v5737_v62 }
 0x1e8   :  { %2893 = vmatprep.subr.bf16.mxu0 %v5744_v63  ;;  %3022 = vmatprep.subr.bf16.mxu1 %v5746_v0 }
 0x1eb   :  { %2894 = vmatpush1.bf16.msra.mxu0 %v5743_v5  ;;  %3023 = vmatpush1.bf16.msra.mxu1 %v5745_v6  ;;  %v6220_v5 = vld [vmem:[#allocation7 + $0xec] ss:$16 sps:$4 sm:$0xff]  }
 0x1ec   :  { %2895 = vmatprep.subr.bf16.mxu0 %v5752_v7  ;;  %3024 = vmatprep.subr.bf16.mxu1 %v5754_v8  ;;  %v6215_v8 = vld [vmem:[#allocation7 + $0xe0] ss:$16 sps:$4 sm:$0xff]  }
 0x1ef   :  { %2896 = vmatpush1.bf16.msra.mxu0 %v5751_v9  ;;  %3025 = vmatpush1.bf16.msra.mxu1 %v5753_v10  ;;  %v6218_v10 = vld [vmem:[#allocation7 + $0xe8] ss:$16 sps:$4 sm:$0xff]  }
 0x1f0   :  { %4654 = vmatprep.subr.bf16.mxu0 %v6175_v11  ;;  %4826 = vmatprep.subr.bf16.mxu1 %v6178_v12  ;;  %v6223_v11 = vld [vmem:[#allocation7 + $0x104] ss:$16 sps:$4 sm:$0xff]   ;;  %v6226_v12 = vld [vmem:[#allocation7 + $0x10c] ss:$16 sps:$4 sm:$0xff]  }
 0x1f2   :  { %2898 = vmatmul.mubr.bf16.vlgmr.msra.gmra.mrb[4].mxu0 %v6594_v17  ;;  %3027 = vmatmul.mubr.bf16.vlgmr.msra.gmra.mrb[4].mxu1 %v6594_v17  ;;  %v6227_v17 = vld [vmem:[#allocation7 + $0x120] ss:$16 sps:$4 sm:$0xff]  }
 0x1f3   :  { %4655 = vmatpush1.bf16.msra.mxu0 %v6173_v13  ;;  %4827 = vmatpush1.bf16.msra.mxu1 %v6176_v14  ;;  %v6221_v13 = vld [vmem:[#allocation7 + $0x100] ss:$16 sps:$4 sm:$0xff]   ;;  %v6224_v14 = vld [vmem:[#allocation7 + $0x108] ss:$16 sps:$4 sm:$0xff]  }
 0x1f4   :  { %4656 = vmatprep.subr.bf16.mxu0 %v6181_v15  ;;  %4828 = vmatprep.subr.bf16.mxu1 %v6184_v16  ;;  %v6229_v15 = vld [vmem:[#allocation7 + $0x124] ss:$16 sps:$4 sm:$0xff]   ;;  %v6232_v16 = vld [vmem:[#allocation7 + $0x12c] ss:$16 sps:$4 sm:$0xff]  }
 0x1f7   :  { %4657 = vmatpush1.bf16.msra.mxu0 %v6179_v18  ;;  %4829 = vmatpush1.bf16.msra.mxu1 %v6182_v19  ;;  %v6230_v18 = vld [vmem:[#allocation7 + $0x128] ss:$16 sps:$4 sm:$0xff]   ;;  %v6235_v19 = vld [vmem:[#allocation7 + $0x144] ss:$16 sps:$4 sm:$0xff]  }
 0x1f8   :  { %4658 = vmatprep.subr.bf16.mxu0 %v6187_v20  ;;  %4830 = vmatprep.subr.bf16.mxu1 %v6190_v21  ;;  %v6238_v20 = vld [vmem:[#allocation7 + $0x14c] ss:$16 sps:$4 sm:$0xff]   ;;  %v6233_v21 = vld [vmem:[#allocation7 + $0x140] ss:$16 sps:$4 sm:$0xff]  }
 0x1fb   :  { %4659 = vmatpush1.bf16.msra.mxu0 %v6185_v22  ;;  %4831 = vmatpush1.bf16.msra.mxu1 %v6188_v23  ;;  %v6236_v22 = vld [vmem:[#allocation7 + $0x148] ss:$16 sps:$4 sm:$0xff]   ;;  %v6241_v23 = vld [vmem:[#allocation7 + $0x164] ss:$16 sps:$4 sm:$0xff]  }
 0x1fc   :  { %4660 = vmatprep.subr.bf16.mxu0 %v6193_v24  ;;  %4832 = vmatprep.subr.bf16.mxu1 %v6196_v26  ;;  %v6244_v24 = vld [vmem:[#allocation7 + $0x16c] ss:$16 sps:$4 sm:$0xff]   ;;  %v6242_v26 = vld [vmem:[#allocation7 + $0x168] ss:$16 sps:$4 sm:$0xff]  }
 0x1ff   :  { %4661 = vmatpush1.bf16.msra.mxu0 %v6191_v27  ;;  %4833 = vmatpush1.bf16.msra.mxu1 %v6194_v28  ;;  %v6247_v27 = vld [vmem:[#allocation7 + $0x184] ss:$16 sps:$4 sm:$0xff]   ;;  %v6250_v28 = vld [vmem:[#allocation7 + $0x18c] ss:$16 sps:$4 sm:$0xff]  }
 0x200   :  { %4662 = vmatprep.subr.bf16.mxu0 %v6199_v29  ;;  %4834 = vmatprep.subr.bf16.mxu1 %v6202_v31  ;;  %v6245_v29 = vld [vmem:[#allocation7 + $0x180] ss:$16 sps:$4 sm:$0xff]   ;;  %v6248_v31 = vld [vmem:[#allocation7 + $0x188] ss:$16 sps:$4 sm:$0xff]  }
 0x203   :  { %4663 = vmatpush1.bf16.msra.mxu0 %v6197_v32  ;;  %4835 = vmatpush1.bf16.msra.mxu1 %v6200_v33  ;;  %v6253_v32 = vld [vmem:[#allocation7 + $0x1a4] ss:$16 sps:$4 sm:$0xff]   ;;  %v6256_v33 = vld [vmem:[#allocation7 + $0x1ac] ss:$16 sps:$4 sm:$0xff]  }
 0x204   :  { %4664 = vmatprep.subr.bf16.mxu0 %v6205_v35  ;;  %4836 = vmatprep.subr.bf16.mxu1 %v6208_v39  ;;  %v6251_v35 = vld [vmem:[#allocation7 + $0x1a0] ss:$16 sps:$4 sm:$0xff]   ;;  %v6254_v39 = vld [vmem:[#allocation7 + $0x1a8] ss:$16 sps:$4 sm:$0xff]  }
 0x205   :  { %v2641_v45 = vpop.f32.mrb[0].mxu0  ;;  %v2770_v49 = vpop.f32.mrb[0].mxu1 }
 0x206   :  { %v2643_v50 = vpop.f32.mrb[1].mxu0  ;;  %v2772_v52 = vpop.f32.mrb[1].mxu1  ;;  %v3037_v55 = vadd.f32 %v2641_v45, %v112_v42  ;;  %v3039_v61 = vadd.f32 %v2770_v49, %v120_v46  ;;  %v6265_v45 = vld [vmem:[#allocation7 + $0x1e4] ss:$16 sps:$4 sm:$0xff]  }
 0x207   :  { %v2645_v53 = vpop.f32.mrb[2].mxu0  ;;  %4665 = vmatpush1.bf16.msra.mxu0 %v6203_v41  ;;  %v2774_v57 = vpop.f32.mrb[2].mxu1  ;;  %4837 = vmatpush1.bf16.msra.mxu1 %v6206_v43  ;;  %v3038_v62 = vadd.f32 %v2643_v50, %v116_v47  ;;  %v3040_v2 = vadd.f32 %v2772_v52, %v124_v51  ;;  %v6259_v41 = vld [vmem:[#allocation7 + $0x1c4] ss:$16 sps:$4 sm:$0xff]   ;;  %v6257_v43 = vld [vmem:[#allocation7 + $0x1c0] ss:$16 sps:$4 sm:$0xff]  }
 0x208   :  { %v3045_v56 = vadd.f32 %v2645_v53, %v112_v42  ;;  %v2647_v58 = vpop.f32.mrb[3].mxu0  ;;  %4666 = vmatprep.subr.bf16.mxu0 %v6211_v44  ;;  %v3047_v63 = vadd.f32 %v2774_v57, %v120_v46  ;;  %v2776_v1 = vpop.f32.mrb[3].mxu1  ;;  %4838 = vmatprep.subr.bf16.mxu1 %v6214_v48  ;;  %v6262_v42 = vld [vmem:[#allocation7 + $0x1cc] ss:$16 sps:$4 sm:$0xff]   ;;  %v6260_v44 = vld [vmem:[#allocation7 + $0x1c8] ss:$16 sps:$4 sm:$0xff]  }
 0x209   :  { %v3046_v0 = vadd.f32 %v2647_v58, %v116_v47  ;;  %v3048_v4 = vadd.f32 %v2776_v1, %v124_v51  ;;  %v6268_v46 = vld [vmem:[#allocation7 + $0x1ec] ss:$16 sps:$4 sm:$0xff]   ;;  %v6263_v47 = vld [vmem:[#allocation7 + $0x1e0] ss:$16 sps:$4 sm:$0xff]   ;;  %v6266_v48 = vld [vmem:[#allocation7 + $0x1e8] ss:$16 sps:$4 sm:$0xff]  }
 0x20a   :  { %v6915_v3 = vpack.c.bf16 %v3045_v56, %v3037_v55  ;;  %v6917_v6 = vpack.c.bf16 %v3047_v63, %v3039_v61  ;;  %v6271_v49 = vld [vmem:[#allocation7 + $0x204] ss:$16 sps:$4 sm:$0xff]   ;;  %v6274_v50 = vld [vmem:[#allocation7 + $0x20c] ss:$16 sps:$4 sm:$0xff]   ;;  %v6269_v51 = vld [vmem:[#allocation7 + $0x200] ss:$16 sps:$4 sm:$0xff]  }
 0x20b   :  { %v3089_v7 = vpack.c.bf16 %v3046_v0, %v3038_v62  ;;  %4667 = vmatpush1.bf16.msra.mxu0 %v6209_v54  ;;  %v6919_v9 = vpack.c.bf16 %v3048_v4, %v3040_v2  ;;  %4839 = vmatpush1.bf16.msra.mxu1 %v6212_v59  ;;  %v6272_v52 = vld [vmem:[#allocation7 + $0x208] ss:$16 sps:$4 sm:$0xff]   ;;  %v6277_v53 = vld [vmem:[#allocation7 + $0x224] ss:$16 sps:$4 sm:$0xff]   ;;  %v6280_v54 = vld [vmem:[#allocation7 + $0x22c] ss:$16 sps:$4 sm:$0xff]  }
 0x20c   :  { %4668 = vmatprep.subr.bf16.mxu0 %v6217_v60  ;;  %4840 = vmatprep.subr.bf16.mxu1 %v6220_v5  ;;  %v6275_v55 = vld [vmem:[#allocation7 + $0x220] ss:$16 sps:$4 sm:$0xff]   ;;  %v6278_v56 = vld [vmem:[#allocation7 + $0x228] ss:$16 sps:$4 sm:$0xff]   ;;  %v6283_v57 = vld [vmem:[#allocation7 + $0x244] ss:$16 sps:$4 sm:$0xff]  }
 0x20d   :  { %4686 = vmatprep.mubr.bf16.mxu0 %v3089_v7  ;;  %4858 = vmatprep.mubr.bf16.mxu1 %v3089_v7  ;;  %v6286_v58 = vld [vmem:[#allocation7 + $0x24c] ss:$16 sps:$4 sm:$0xff]   ;;  %v6281_v59 = vld [vmem:[#allocation7 + $0x240] ss:$16 sps:$4 sm:$0xff]   ;;  %v6284_v60 = vld [vmem:[#allocation7 + $0x248] ss:$16 sps:$4 sm:$0xff]  }
 0x20e   :  { %v6289_v61 = vld [vmem:[#allocation7 + $0x264] ss:$16 sps:$4 sm:$0xff]   ;;  %v6292_v62 = vld [vmem:[#allocation7 + $0x26c] ss:$16 sps:$4 sm:$0xff]   ;;  %v6287_v63 = vld [vmem:[#allocation7 + $0x260] ss:$16 sps:$4 sm:$0xff]  }
 0x20f   :  { %4669 = vmatpush1.bf16.msra.mxu0 %v6215_v8  ;;  %4841 = vmatpush1.bf16.msra.mxu1 %v6218_v10  ;;  %v6290_v0 = vld [vmem:[#allocation7 + $0x268] ss:$16 sps:$4 sm:$0xff]   ;;  %v6295_v1 = vld [vmem:[#allocation7 + $0x284] ss:$16 sps:$4 sm:$0xff]   ;;  %v6298_v2 = vld [vmem:[#allocation7 + $0x28c] ss:$16 sps:$4 sm:$0xff]  }
 0x210   :  { %4670 = vmatprep.subr.bf16.mxu0 %v6223_v11  ;;  %4842 = vmatprep.subr.bf16.mxu1 %v6226_v12  ;;  %v6296_v4 = vld [vmem:[#allocation7 + $0x288] ss:$16 sps:$4 sm:$0xff]   ;;  %v6301_v5 = vld [vmem:[#allocation7 + $0x2a4] ss:$16 sps:$4 sm:$0xff]   ;;  %v6304_v7 = vld [vmem:[#allocation7 + $0x2ac] ss:$16 sps:$4 sm:$0xff]  }
 0x211   :  { %v6299_v8 = vld [vmem:[#allocation7 + $0x2a0] ss:$16 sps:$4 sm:$0xff]   ;;  %v6307_v10 = vld [vmem:[#allocation7 + $0x2c4] ss:$16 sps:$4 sm:$0xff]   ;;  %v6310_v11 = vld [vmem:[#allocation7 + $0x2cc] ss:$16 sps:$4 sm:$0xff]  }
 0x212   :  { %v6305_v12 = vld [vmem:[#allocation7 + $0x2c0] ss:$16 sps:$4 sm:$0xff]  }
 0x213   :  { %4671 = vmatpush1.bf16.msra.mxu0 %v6221_v13  ;;  %4843 = vmatpush1.bf16.msra.mxu1 %v6224_v14  ;;  %v6308_v13 = vld [vmem:[#allocation7 + $0x2c8] ss:$16 sps:$4 sm:$0xff]   ;;  %v6313_v14 = vld [vmem:[#allocation7 + $0x2e4] ss:$16 sps:$4 sm:$0xff]  }
 0x214   :  { %4672 = vmatprep.subr.bf16.mxu0 %v6229_v15  ;;  %4844 = vmatprep.subr.bf16.mxu1 %v6232_v16  ;;  %v6316_v15 = vld [vmem:[#allocation7 + $0x2ec] ss:$16 sps:$4 sm:$0xff]   ;;  %v6311_v16 = vld [vmem:[#allocation7 + $0x2e0] ss:$16 sps:$4 sm:$0xff]  }
 0x217   :  { %4673 = vmatpush1.bf16.msra.mxu0 %v6227_v17  ;;  %4845 = vmatpush1.bf16.msra.mxu1 %v6230_v18  ;;  %v6314_v17 = vld [vmem:[#allocation7 + $0x2e8] ss:$16 sps:$4 sm:$0xff]   ;;  %v6319_v18 = vld [vmem:[#allocation7 + $0x304] ss:$16 sps:$4 sm:$0xff]  }
 0x218   :  { %4674 = vmatprep.subr.bf16.mxu0 %v6235_v19  ;;  %4846 = vmatprep.subr.bf16.mxu1 %v6238_v20  ;;  %v6322_v19 = vld [vmem:[#allocation7 + $0x30c] ss:$16 sps:$4 sm:$0xff]   ;;  %v6317_v20 = vld [vmem:[#allocation7 + $0x300] ss:$16 sps:$4 sm:$0xff]  }
 0x21b   :  { %4675 = vmatpush1.bf16.msra.mxu0 %v6233_v21  ;;  %4847 = vmatpush1.bf16.msra.mxu1 %v6236_v22  ;;  %v6320_v21 = vld [vmem:[#allocation7 + $0x308] ss:$16 sps:$4 sm:$0xff]   ;;  %v6325_v22 = vld [vmem:[#allocation7 + $0x324] ss:$16 sps:$4 sm:$0xff]  }
 0x21c   :  { %4676 = vmatprep.subr.bf16.mxu0 %v6241_v23  ;;  %4848 = vmatprep.subr.bf16.mxu1 %v6244_v24  ;;  %v6328_v23 = vld [vmem:[#allocation7 + $0x32c] ss:$16 sps:$4 sm:$0xff]   ;;  %v6323_v24 = vld [vmem:[#allocation7 + $0x320] ss:$16 sps:$4 sm:$0xff]  }
 0x21f   :  { %4677 = vmatpush1.bf16.msra.mxu0 %v6239_v25  ;;  %4849 = vmatpush1.bf16.msra.mxu1 %v6242_v26  ;;  %v6326_v25 = vld [vmem:[#allocation7 + $0x328] ss:$16 sps:$4 sm:$0xff]   ;;  %v6331_v26 = vld [vmem:[#allocation7 + $0x344] ss:$16 sps:$4 sm:$0xff]  }
 0x220   :  { %4678 = vmatprep.subr.bf16.mxu0 %v6247_v27  ;;  %4850 = vmatprep.subr.bf16.mxu1 %v6250_v28  ;;  %v6334_v27 = vld [vmem:[#allocation7 + $0x34c] ss:$16 sps:$4 sm:$0xff]   ;;  %v6329_v28 = vld [vmem:[#allocation7 + $0x340] ss:$16 sps:$4 sm:$0xff]  }
 0x223   :  { %4679 = vmatpush1.bf16.msra.mxu0 %v6245_v29  ;;  %4851 = vmatpush1.bf16.msra.mxu1 %v6248_v31  ;;  %v6332_v29 = vld [vmem:[#allocation7 + $0x348] ss:$16 sps:$4 sm:$0xff]   ;;  %v6337_v31 = vld [vmem:[#allocation7 + $0x364] ss:$16 sps:$4 sm:$0xff]  }
 0x224   :  { %4680 = vmatprep.subr.bf16.mxu0 %v6253_v32  ;;  %4852 = vmatprep.subr.bf16.mxu1 %v6256_v33  ;;  %v6340_v32 = vld [vmem:[#allocation7 + $0x36c] ss:$16 sps:$4 sm:$0xff]   ;;  %v6335_v33 = vld [vmem:[#allocation7 + $0x360] ss:$16 sps:$4 sm:$0xff]  }
 0x227   :  { %4681 = vmatpush1.bf16.msra.mxu0 %v6251_v35  ;;  %4853 = vmatpush1.bf16.msra.mxu1 %v6254_v39  ;;  %v6338_v35 = vld [vmem:[#allocation7 + $0x368] ss:$16 sps:$4 sm:$0xff]   ;;  %v6343_v39 = vld [vmem:[#allocation7 + $0x384] ss:$16 sps:$4 sm:$0xff]  }
 0x228   :  { %4682 = vmatprep.subr.bf16.mxu0 %v6259_v41  ;;  %4854 = vmatprep.subr.bf16.mxu1 %v6262_v42  ;;  %v6346_v41 = vld [vmem:[#allocation7 + $0x38c] ss:$16 sps:$4 sm:$0xff]   ;;  %v6341_v42 = vld [vmem:[#allocation7 + $0x380] ss:$16 sps:$4 sm:$0xff]  }
 0x22b   :  { %4683 = vmatpush1.bf16.msra.mxu0 %v6257_v43  ;;  %4855 = vmatpush1.bf16.msra.mxu1 %v6260_v44  ;;  %v6344_v43 = vld [vmem:[#allocation7 + $0x388] ss:$16 sps:$4 sm:$0xff]   ;;  %v6349_v44 = vld [vmem:[#allocation7 + $0x3a4] ss:$16 sps:$4 sm:$0xff]  }
 0x22c   :  { %4684 = vmatprep.subr.bf16.mxu0 %v6265_v45  ;;  %4856 = vmatprep.subr.bf16.mxu1 %v6268_v46  ;;  %v6352_v45 = vld [vmem:[#allocation7 + $0x3ac] ss:$16 sps:$4 sm:$0xff]   ;;  %v6347_v46 = vld [vmem:[#allocation7 + $0x3a0] ss:$16 sps:$4 sm:$0xff]  }
 0x22f   :  { %4685 = vmatpush1.bf16.msra.mxu0 %v6263_v47  ;;  %4857 = vmatpush1.bf16.msra.mxu1 %v6266_v48  ;;  %v6350_v47 = vld [vmem:[#allocation7 + $0x3a8] ss:$16 sps:$4 sm:$0xff]   ;;  %v6355_v48 = vld [vmem:[#allocation7 + $0x3c4] ss:$16 sps:$4 sm:$0xff]  }
 0x230   :  { %4697 = vmatprep.subr.bf16.mxu0 %v6271_v49  ;;  %4869 = vmatprep.subr.bf16.mxu1 %v6274_v50  ;;  %v6358_v49 = vld [vmem:[#allocation7 + $0x3cc] ss:$16 sps:$4 sm:$0xff]   ;;  %v6353_v50 = vld [vmem:[#allocation7 + $0x3c0] ss:$16 sps:$4 sm:$0xff]  }
 0x232   :  { %4687 = vmatmul.mubr.bf16.vlgmr.msra.gmra.mrb[8].mxu0 %v6915_v3  ;;  %4859 = vmatmul.mubr.bf16.vlgmr.msra.gmra.mrb[8].mxu1 %v6915_v3  ;;  %v6293_v3 = vld [vmem:[#allocation7 + $0x280] ss:$16 sps:$4 sm:$0xff]  }
 0x233   :  { %4698 = vmatpush1.bf16.msra.mxu0 %v6269_v51  ;;  %4729 = vmatprep.mubr.bf16.mxu0 %v6919_v9  ;;  %v6356_v51 = vld [vmem:[#allocation7 + $0x3c8] ss:$16 sps:$4 sm:$0xff]  }
 0x234   :  { %4870 = vmatpush1.bf16.msra.mxu1 %v6272_v52  ;;  %4901 = vmatprep.mubr.bf16.mxu1 %v6919_v9  ;;  %v6302_v9 = vld [vmem:[#allocation7 + $0x2a8] ss:$16 sps:$4 sm:$0xff]   ;;  %v6361_v52 = vld [vmem:[#allocation7 + $0x3e4] ss:$16 sps:$4 sm:$0xff]  }
 0x235   :  { %4699 = vmatprep.subr.bf16.mxu0 %v6277_v53  ;;  %4871 = vmatprep.subr.bf16.mxu1 %v6280_v54  ;;  %v6364_v53 = vld [vmem:[#allocation7 + $0x3ec] ss:$16 sps:$4 sm:$0xff]   ;;  %v6359_v54 = vld [vmem:[#allocation7 + $0x3e0] ss:$16 sps:$4 sm:$0xff]  }
 0x237   :  { %4700 = vmatpush1.bf16.msra.mxu0 %v6275_v55  ;;  %v6362_v55 = vld [vmem:[#allocation7 + $0x3e8] ss:$16 sps:$4 sm:$0xff]  }
 0x238   :  { %4872 = vmatpush1.bf16.msra.mxu1 %v6278_v56  ;;  %4701 = vmatprep.subr.bf16.mxu0 %v6283_v57  ;;  %v6367_v56 = vld [vmem:[#allocation7 + $0x404] ss:$16 sps:$4 sm:$0xff]   ;;  %v6370_v57 = vld [vmem:[#allocation7 + $0x40c] ss:$16 sps:$4 sm:$0xff]  }
 0x239   :  { %4873 = vmatprep.subr.bf16.mxu1 %v6286_v58  ;;  %v6365_v58 = vld [vmem:[#allocation7 + $0x400] ss:$16 sps:$4 sm:$0xff]  }
 0x23b   :  { %4702 = vmatpush1.bf16.msra.mxu0 %v6281_v59  ;;  %v6368_v59 = vld [vmem:[#allocation7 + $0x408] ss:$16 sps:$4 sm:$0xff]  }
 0x23c   :  { %4874 = vmatpush1.bf16.msra.mxu1 %v6284_v60  ;;  %4703 = vmatprep.subr.bf16.mxu0 %v6289_v61  ;;  %v6373_v60 = vld [vmem:[#allocation7 + $0x424] ss:$16 sps:$4 sm:$0xff]   ;;  %v6376_v61 = vld [vmem:[#allocation7 + $0x42c] ss:$16 sps:$4 sm:$0xff]  }
 0x23d   :  { %4875 = vmatprep.subr.bf16.mxu1 %v6292_v62  ;;  %v6371_v62 = vld [vmem:[#allocation7 + $0x420] ss:$16 sps:$4 sm:$0xff]  }
 0x23f   :  { %4704 = vmatpush1.bf16.msra.mxu0 %v6287_v63  ;;  %v6374_v63 = vld [vmem:[#allocation7 + $0x428] ss:$16 sps:$4 sm:$0xff]  }
 0x240   :  { %4876 = vmatpush1.bf16.msra.mxu1 %v6290_v0  ;;  %4705 = vmatprep.subr.bf16.mxu0 %v6295_v1  ;;  %v6379_v0 = vld [vmem:[#allocation7 + $0x444] ss:$16 sps:$4 sm:$0xff]   ;;  %v6382_v1 = vld [vmem:[#allocation7 + $0x44c] ss:$16 sps:$4 sm:$0xff]  }
 0x241   :  { %4877 = vmatprep.subr.bf16.mxu1 %v6298_v2  ;;  %v6377_v2 = vld [vmem:[#allocation7 + $0x440] ss:$16 sps:$4 sm:$0xff]  }
 0x243   :  { %4706 = vmatpush1.bf16.msra.mxu0 %v6293_v3  ;;  %v6380_v3 = vld [vmem:[#allocation7 + $0x448] ss:$16 sps:$4 sm:$0xff]  }
 0x244   :  { %4878 = vmatpush1.bf16.msra.mxu1 %v6296_v4  ;;  %4707 = vmatprep.subr.bf16.mxu0 %v6301_v5  ;;  %v6385_v4 = vld [vmem:[#allocation7 + $0x464] ss:$16 sps:$4 sm:$0xff]   ;;  %v6388_v5 = vld [vmem:[#allocation7 + $0x46c] ss:$16 sps:$4 sm:$0xff]  }
 0x245   :  { %4879 = vmatprep.subr.bf16.mxu1 %v6304_v7  ;;  %v6383_v7 = vld [vmem:[#allocation7 + $0x460] ss:$16 sps:$4 sm:$0xff]  }
 0x247   :  { %4708 = vmatpush1.bf16.msra.mxu0 %v6299_v8  ;;  %v6391_v8 = vld [vmem:[#allocation7 + $0x484] ss:$16 sps:$4 sm:$0xff]  }
 0x248   :  { %4880 = vmatpush1.bf16.msra.mxu1 %v6302_v9  ;;  %4709 = vmatprep.subr.bf16.mxu0 %v6307_v10  ;;  %v6394_v9 = vld [vmem:[#allocation7 + $0x48c] ss:$16 sps:$4 sm:$0xff]   ;;  %v6389_v10 = vld [vmem:[#allocation7 + $0x480] ss:$16 sps:$4 sm:$0xff]  }
 0x249   :  { %4881 = vmatprep.subr.bf16.mxu1 %v6310_v11  ;;  %v6392_v11 = vld [vmem:[#allocation7 + $0x488] ss:$16 sps:$4 sm:$0xff]  }
 0x24b   :  { %4710 = vmatpush1.bf16.msra.mxu0 %v6305_v12  ;;  %v6397_v12 = vld [vmem:[#allocation7 + $0x4a4] ss:$16 sps:$4 sm:$0xff]  }
 0x24c   :  { %4882 = vmatpush1.bf16.msra.mxu1 %v6308_v13  ;;  %4711 = vmatprep.subr.bf16.mxu0 %v6313_v14  ;;  %v6400_v13 = vld [vmem:[#allocation7 + $0x4ac] ss:$16 sps:$4 sm:$0xff]   ;;  %v6395_v14 = vld [vmem:[#allocation7 + $0x4a0] ss:$16 sps:$4 sm:$0xff]  }
 0x24d   :  { %4883 = vmatprep.subr.bf16.mxu1 %v6316_v15  ;;  %v6398_v15 = vld [vmem:[#allocation7 + $0x4a8] ss:$16 sps:$4 sm:$0xff]  }
 0x24f   :  { %4712 = vmatpush1.bf16.msra.mxu0 %v6311_v16  ;;  %v6403_v16 = vld [vmem:[#allocation7 + $0x4c4] ss:$16 sps:$4 sm:$0xff]  }
 0x250   :  { %4884 = vmatpush1.bf16.msra.mxu1 %v6314_v17  ;;  %4713 = vmatprep.subr.bf16.mxu0 %v6319_v18  ;;  %v6406_v17 = vld [vmem:[#allocation7 + $0x4cc] ss:$16 sps:$4 sm:$0xff]   ;;  %v6401_v18 = vld [vmem:[#allocation7 + $0x4c0] ss:$16 sps:$4 sm:$0xff]  }
 0x251   :  { %4885 = vmatprep.subr.bf16.mxu1 %v6322_v19  ;;  %v6404_v19 = vld [vmem:[#allocation7 + $0x4c8] ss:$16 sps:$4 sm:$0xff]  }
 0x253   :  { %4714 = vmatpush1.bf16.msra.mxu0 %v6317_v20  ;;  %v6409_v20 = vld [vmem:[#allocation7 + $0x4e4] ss:$16 sps:$4 sm:$0xff]  }
 0x254   :  { %4886 = vmatpush1.bf16.msra.mxu1 %v6320_v21  ;;  %4715 = vmatprep.subr.bf16.mxu0 %v6325_v22  ;;  %v6412_v21 = vld [vmem:[#allocation7 + $0x4ec] ss:$16 sps:$4 sm:$0xff]   ;;  %v6407_v22 = vld [vmem:[#allocation7 + $0x4e0] ss:$16 sps:$4 sm:$0xff]  }
 0x255   :  { %4887 = vmatprep.subr.bf16.mxu1 %v6328_v23  ;;  %v6410_v23 = vld [vmem:[#allocation7 + $0x4e8] ss:$16 sps:$4 sm:$0xff]  }
 0x257   :  { %4716 = vmatpush1.bf16.msra.mxu0 %v6323_v24  ;;  %v6415_v24 = vld [vmem:[#allocation7 + $0x504] ss:$16 sps:$4 sm:$0xff]  }
 0x258   :  { %4888 = vmatpush1.bf16.msra.mxu1 %v6326_v25  ;;  %4717 = vmatprep.subr.bf16.mxu0 %v6331_v26  ;;  %v6418_v25 = vld [vmem:[#allocation7 + $0x50c] ss:$16 sps:$4 sm:$0xff]   ;;  %v6413_v26 = vld [vmem:[#allocation7 + $0x500] ss:$16 sps:$4 sm:$0xff]  }
 0x259   :  { %4889 = vmatprep.subr.bf16.mxu1 %v6334_v27  ;;  %v6416_v27 = vld [vmem:[#allocation7 + $0x508] ss:$16 sps:$4 sm:$0xff]  }
 0x25b   :  { %4718 = vmatpush1.bf16.msra.mxu0 %v6329_v28  ;;  %v6421_v28 = vld [vmem:[#allocation7 + $0x524] ss:$16 sps:$4 sm:$0xff]  }
 0x25c   :  { %4890 = vmatpush1.bf16.msra.mxu1 %v6332_v29  ;;  %4719 = vmatprep.subr.bf16.mxu0 %v6337_v31  ;;  %v6424_v29 = vld [vmem:[#allocation7 + $0x52c] ss:$16 sps:$4 sm:$0xff]   ;;  %v6419_v31 = vld [vmem:[#allocation7 + $0x520] ss:$16 sps:$4 sm:$0xff]  }
 0x25d   :  { %4891 = vmatprep.subr.bf16.mxu1 %v6340_v32  ;;  %v6422_v32 = vld [vmem:[#allocation7 + $0x528] ss:$16 sps:$4 sm:$0xff]  }
 0x25f   :  { %4720 = vmatpush1.bf16.msra.mxu0 %v6335_v33  ;;  %v6427_v33 = vld [vmem:[#allocation7 + $0x544] ss:$16 sps:$4 sm:$0xff]  }
 0x260   :  { %4892 = vmatpush1.bf16.msra.mxu1 %v6338_v35  ;;  %4721 = vmatprep.subr.bf16.mxu0 %v6343_v39  ;;  %v6430_v35 = vld [vmem:[#allocation7 + $0x54c] ss:$16 sps:$4 sm:$0xff]   ;;  %v6425_v39 = vld [vmem:[#allocation7 + $0x540] ss:$16 sps:$4 sm:$0xff]  }
 0x261   :  { %4893 = vmatprep.subr.bf16.mxu1 %v6346_v41  ;;  %v6428_v41 = vld [vmem:[#allocation7 + $0x548] ss:$16 sps:$4 sm:$0xff]  }
 0x263   :  { %4722 = vmatpush1.bf16.msra.mxu0 %v6341_v42  ;;  %v6433_v42 = vld [vmem:[#allocation7 + $0x564] ss:$16 sps:$4 sm:$0xff]  }
 0x264   :  { %4894 = vmatpush1.bf16.msra.mxu1 %v6344_v43  ;;  %4723 = vmatprep.subr.bf16.mxu0 %v6349_v44  ;;  %v6436_v43 = vld [vmem:[#allocation7 + $0x56c] ss:$16 sps:$4 sm:$0xff]   ;;  %v6431_v44 = vld [vmem:[#allocation7 + $0x560] ss:$16 sps:$4 sm:$0xff]  }
 0x265   :  { %4895 = vmatprep.subr.bf16.mxu1 %v6352_v45  ;;  %v6434_v45 = vld [vmem:[#allocation7 + $0x568] ss:$16 sps:$4 sm:$0xff]  }
 0x267   :  { %4724 = vmatpush1.bf16.msra.mxu0 %v6347_v46  ;;  %v6439_v46 = vld [vmem:[#allocation7 + $0x584] ss:$16 sps:$4 sm:$0xff]  }
 0x268   :  { %4896 = vmatpush1.bf16.msra.mxu1 %v6350_v47  ;;  %4725 = vmatprep.subr.bf16.mxu0 %v6355_v48  ;;  %v6442_v47 = vld [vmem:[#allocation7 + $0x58c] ss:$16 sps:$4 sm:$0xff]   ;;  %v6437_v48 = vld [vmem:[#allocation7 + $0x580] ss:$16 sps:$4 sm:$0xff]  }
 0x269   :  { %4897 = vmatprep.subr.bf16.mxu1 %v6358_v49  ;;  %v6440_v49 = vld [vmem:[#allocation7 + $0x588] ss:$16 sps:$4 sm:$0xff]  }
 0x26b   :  { %4726 = vmatpush1.bf16.msra.mxu0 %v6353_v50  ;;  %v6445_v50 = vld [vmem:[#allocation7 + $0x5a4] ss:$16 sps:$4 sm:$0xff]  }
 0x26c   :  { %4898 = vmatpush1.bf16.msra.mxu1 %v6356_v51  ;;  %4727 = vmatprep.subr.bf16.mxu0 %v6361_v52  ;;  %v6448_v51 = vld [vmem:[#allocation7 + $0x5ac] ss:$16 sps:$4 sm:$0xff]   ;;  %v6443_v52 = vld [vmem:[#allocation7 + $0x5a0] ss:$16 sps:$4 sm:$0xff]  }
 0x26d   :  { %4899 = vmatprep.subr.bf16.mxu1 %v6364_v53  ;;  %v6446_v53 = vld [vmem:[#allocation7 + $0x5a8] ss:$16 sps:$4 sm:$0xff]  }
 0x26f   :  { %4728 = vmatpush1.bf16.msra.mxu0 %v6359_v54  ;;  %v6451_v54 = vld [vmem:[#allocation7 + $0x5c4] ss:$16 sps:$4 sm:$0xff]  }
 0x270   :  { %4900 = vmatpush1.bf16.msra.mxu1 %v6362_v55  ;;  %4740 = vmatprep.subr.bf16.mxu0 %v6367_v56  ;;  %v6454_v55 = vld [vmem:[#allocation7 + $0x5cc] ss:$16 sps:$4 sm:$0xff]   ;;  %v6449_v56 = vld [vmem:[#allocation7 + $0x5c0] ss:$16 sps:$4 sm:$0xff]  }
 0x271   :  { %4912 = vmatprep.subr.bf16.mxu1 %v6370_v57  ;;  %v6452_v57 = vld [vmem:[#allocation7 + $0x5c8] ss:$16 sps:$4 sm:$0xff]  }
 0x272   :  { %4730 = vmatmul.mubr.bf16.vlgmr.msra.gmra.mrb[8].mxu0 %v6917_v6 }
 0x273   :  { %4902 = vmatmul.mubr.bf16.vlgmr.msra.gmra.mrb[8].mxu1 %v6917_v6  ;;  %4741 = vmatpush1.bf16.msra.mxu0 %v6365_v58  ;;  %v6386_v6 = vld [vmem:[#allocation7 + $0x468] ss:$16 sps:$4 sm:$0xff]   ;;  %v6457_v58 = vld [vmem:[#allocation7 + $0x5e4] ss:$16 sps:$4 sm:$0xff]  }
 0x274   :  { %4913 = vmatpush1.bf16.msra.mxu1 %v6368_v59  ;;  %4742 = vmatprep.subr.bf16.mxu0 %v6373_v60  ;;  %v6460_v59 = vld [vmem:[#allocation7 + $0x5ec] ss:$16 sps:$4 sm:$0xff]   ;;  %v6455_v60 = vld [vmem:[#allocation7 + $0x5e0] ss:$16 sps:$4 sm:$0xff]  }
 0x275   :  { %4914 = vmatprep.subr.bf16.mxu1 %v6376_v61  ;;  %v6458_v61 = vld [vmem:[#allocation7 + $0x5e8] ss:$16 sps:$4 sm:$0xff]  }
 0x277   :  { %4743 = vmatpush1.bf16.msra.mxu0 %v6371_v62  ;;  %v6463_v62 = vld [vmem:[#allocation7 + $0x604] ss:$16 sps:$4 sm:$0xff]  }
 0x278   :  { %4915 = vmatpush1.bf16.msra.mxu1 %v6374_v63  ;;  %4744 = vmatprep.subr.bf16.mxu0 %v6379_v0  ;;  %v6466_v63 = vld [vmem:[#allocation7 + $0x60c] ss:$16 sps:$4 sm:$0xff]   ;;  %v127_v0 = vsub.s32 4, %v6895_v30 }
 0x279   :  { %4916 = vmatprep.subr.bf16.mxu1 %v6382_v1  ;;  %v135_v1 = vsub.s32 6, %v6895_v30 }
 0x27b   :  { %4745 = vmatpush1.bf16.msra.mxu0 %v6377_v2  ;;  %v131_v2 = vsub.s32 5, %v6895_v30 }
 0x27c   :  { %4917 = vmatpush1.bf16.msra.mxu1 %v6380_v3  ;;  %4746 = vmatprep.subr.bf16.mxu0 %v6385_v4  ;;  %v139_v3 = vsub.s32 7, %v6895_v30  ;;  %v128_v4 = vrot.slane %v6898_v36, %v127_v0  ;;  %v6514_v0 = vld [vmem:[#allocation7 + $0x70c] ss:$16 sps:$4 sm:$0xff]  }
 0x27d   :  { %4918 = vmatprep.subr.bf16.mxu1 %v6388_v5 }
 0x27f   :  { %4747 = vmatpush1.bf16.msra.mxu0 %v6383_v7  ;;  %v136_v7 = vrot.slane %v6898_v36, %v135_v1  ;;  %v6509_v1 = vld [vmem:[#allocation7 + $0x700] ss:$16 sps:$4 sm:$0xff]  }
 0x280   :  { %4919 = vmatpush1.bf16.msra.mxu1 %v6386_v6  ;;  %4748 = vmatprep.subr.bf16.mxu0 %v6391_v8  ;;  %v132_v6 = vrot.slane %v6898_v36, %v131_v2  ;;  %v6512_v2 = vld [vmem:[#allocation7 + $0x708] ss:$16 sps:$4 sm:$0xff]  }
 0x281   :  { %4920 = vmatprep.subr.bf16.mxu1 %v6394_v9 }
 0x283   :  { %4749 = vmatpush1.bf16.msra.mxu0 %v6389_v10  ;;  %v140_v10 = vrot.slane %v6898_v36, %v139_v3  ;;  %v6517_v3 = vld [vmem:[#allocation7 + $0x724] ss:$16 sps:$4 sm:$0xff]  }
 0x284   :  { %4921 = vmatpush1.bf16.msra.mxu1 %v6392_v11  ;;  %4750 = vmatprep.subr.bf16.mxu0 %v6397_v12 }
 0x285   :  { %4922 = vmatprep.subr.bf16.mxu1 %v6400_v13 }
 0x287   :  { %4751 = vmatpush1.bf16.msra.mxu0 %v6395_v14 }
 0x288   :  { %4923 = vmatpush1.bf16.msra.mxu1 %v6398_v15  ;;  %4752 = vmatprep.subr.bf16.mxu0 %v6403_v16 }
 0x289   :  { %4924 = vmatprep.subr.bf16.mxu1 %v6406_v17 }
 0x28b   :  { %4753 = vmatpush1.bf16.msra.mxu0 %v6401_v18 }
 0x28c   :  { %4925 = vmatpush1.bf16.msra.mxu1 %v6404_v19  ;;  %4754 = vmatprep.subr.bf16.mxu0 %v6409_v20 }
 0x28d   :  { %4926 = vmatprep.subr.bf16.mxu1 %v6412_v21 }
 0x28f   :  { %4755 = vmatpush1.bf16.msra.mxu0 %v6407_v22 }
 0x290   :  { %4927 = vmatpush1.bf16.msra.mxu1 %v6410_v23  ;;  %4756 = vmatprep.subr.bf16.mxu0 %v6415_v24 }
 0x291   :  { %4928 = vmatprep.subr.bf16.mxu1 %v6418_v25 }
 0x293   :  { %4757 = vmatpush1.bf16.msra.mxu0 %v6413_v26 }
 0x294   :  { %4929 = vmatpush1.bf16.msra.mxu1 %v6416_v27  ;;  %4758 = vmatprep.subr.bf16.mxu0 %v6421_v28  ;;  %v6461_v27 = vld [vmem:[#allocation7 + $0x600] ss:$16 sps:$4 sm:$0xff]   ;;  %v6464_v28 = vld [vmem:[#allocation7 + $0x608] ss:$16 sps:$4 sm:$0xff]  }
 0x295   :  { %4930 = vmatprep.subr.bf16.mxu1 %v6424_v29  ;;  %v6469_v29 = vld [vmem:[#allocation7 + $0x624] ss:$16 sps:$4 sm:$0xff]  }
 0x297   :  { %4759 = vmatpush1.bf16.msra.mxu0 %v6419_v31  ;;  %v6472_v31 = vld [vmem:[#allocation7 + $0x62c] ss:$16 sps:$4 sm:$0xff]  }
 0x298   :  { %4931 = vmatpush1.bf16.msra.mxu1 %v6422_v32  ;;  %4760 = vmatprep.subr.bf16.mxu0 %v6427_v33  ;;  %v6467_v32 = vld [vmem:[#allocation7 + $0x620] ss:$16 sps:$4 sm:$0xff]   ;;  %v6470_v33 = vld [vmem:[#allocation7 + $0x628] ss:$16 sps:$4 sm:$0xff]  }
 0x299   :  { %4932 = vmatprep.subr.bf16.mxu1 %v6430_v35  ;;  %v6475_v35 = vld [vmem:[#allocation7 + $0x644] ss:$16 sps:$4 sm:$0xff]  }
 0x29b   :  { %4761 = vmatpush1.bf16.msra.mxu0 %v6425_v39  ;;  %v6478_v39 = vld [vmem:[#allocation7 + $0x64c] ss:$16 sps:$4 sm:$0xff]  }
 0x29c   :  { %4933 = vmatpush1.bf16.msra.mxu1 %v6428_v41  ;;  %4762 = vmatprep.subr.bf16.mxu0 %v6433_v42  ;;  %v6473_v41 = vld [vmem:[#allocation7 + $0x640] ss:$16 sps:$4 sm:$0xff]   ;;  %v6476_v42 = vld [vmem:[#allocation7 + $0x648] ss:$16 sps:$4 sm:$0xff]  }
 0x29d   :  { %4934 = vmatprep.subr.bf16.mxu1 %v6436_v43  ;;  %v6481_v43 = vld [vmem:[#allocation7 + $0x664] ss:$16 sps:$4 sm:$0xff]  }
 0x29f   :  { %4763 = vmatpush1.bf16.msra.mxu0 %v6431_v44  ;;  %v6484_v44 = vld [vmem:[#allocation7 + $0x66c] ss:$16 sps:$4 sm:$0xff]  }
 0x2a0   :  { %4935 = vmatpush1.bf16.msra.mxu1 %v6434_v45  ;;  %4764 = vmatprep.subr.bf16.mxu0 %v6439_v46  ;;  %v6479_v45 = vld [vmem:[#allocation7 + $0x660] ss:$16 sps:$4 sm:$0xff]   ;;  %v6482_v46 = vld [vmem:[#allocation7 + $0x668] ss:$16 sps:$4 sm:$0xff]  }
 0x2a1   :  { %4936 = vmatprep.subr.bf16.mxu1 %v6442_v47  ;;  %v6487_v47 = vld [vmem:[#allocation7 + $0x684] ss:$16 sps:$4 sm:$0xff]  }
 0x2a3   :  { %4765 = vmatpush1.bf16.msra.mxu0 %v6437_v48  ;;  %v6490_v48 = vld [vmem:[#allocation7 + $0x68c] ss:$16 sps:$4 sm:$0xff]  }
 0x2a4   :  { %4937 = vmatpush1.bf16.msra.mxu1 %v6440_v49  ;;  %4766 = vmatprep.subr.bf16.mxu0 %v6445_v50  ;;  %v6485_v49 = vld [vmem:[#allocation7 + $0x680] ss:$16 sps:$4 sm:$0xff]   ;;  %v6488_v50 = vld [vmem:[#allocation7 + $0x688] ss:$16 sps:$4 sm:$0xff]  }
 0x2a5   :  { %4938 = vmatprep.subr.bf16.mxu1 %v6448_v51  ;;  %v6493_v51 = vld [vmem:[#allocation7 + $0x6a4] ss:$16 sps:$4 sm:$0xff]  }
 0x2a7   :  { %4767 = vmatpush1.bf16.msra.mxu0 %v6443_v52  ;;  %v6496_v52 = vld [vmem:[#allocation7 + $0x6ac] ss:$16 sps:$4 sm:$0xff]  }
 0x2a8   :  { %4939 = vmatpush1.bf16.msra.mxu1 %v6446_v53  ;;  %4768 = vmatprep.subr.bf16.mxu0 %v6451_v54  ;;  %v6491_v53 = vld [vmem:[#allocation7 + $0x6a0] ss:$16 sps:$4 sm:$0xff]   ;;  %v6494_v54 = vld [vmem:[#allocation7 + $0x6a8] ss:$16 sps:$4 sm:$0xff]  }
 0x2a9   :  { %4940 = vmatprep.subr.bf16.mxu1 %v6454_v55  ;;  %v6499_v55 = vld [vmem:[#allocation7 + $0x6c4] ss:$16 sps:$4 sm:$0xff]  }
 0x2ab   :  { %4769 = vmatpush1.bf16.msra.mxu0 %v6449_v56  ;;  %v6502_v56 = vld [vmem:[#allocation7 + $0x6cc] ss:$16 sps:$4 sm:$0xff]  }
 0x2ac   :  { %4941 = vmatpush1.bf16.msra.mxu1 %v6452_v57  ;;  %4770 = vmatprep.subr.bf16.mxu0 %v6457_v58  ;;  %v6497_v57 = vld [vmem:[#allocation7 + $0x6c0] ss:$16 sps:$4 sm:$0xff]   ;;  %v6500_v58 = vld [vmem:[#allocation7 + $0x6c8] ss:$16 sps:$4 sm:$0xff]  }
 0x2ad   :  { %4942 = vmatprep.subr.bf16.mxu1 %v6460_v59  ;;  %v6505_v59 = vld [vmem:[#allocation7 + $0x6e4] ss:$16 sps:$4 sm:$0xff]  }
 0x2af   :  { %4771 = vmatpush1.bf16.msra.mxu0 %v6455_v60  ;;  %v6508_v60 = vld [vmem:[#allocation7 + $0x6ec] ss:$16 sps:$4 sm:$0xff]  }
 0x2b0   :  { %4943 = vmatpush1.bf16.msra.mxu1 %v6458_v61  ;;  %4783 = vmatprep.subr.bf16.mxu0 %v6463_v62  ;;  %v6503_v61 = vld [vmem:[#allocation7 + $0x6e0] ss:$16 sps:$4 sm:$0xff]   ;;  %v6506_v62 = vld [vmem:[#allocation7 + $0x6e8] ss:$16 sps:$4 sm:$0xff]  }
 0x2b1   :  { %4955 = vmatprep.subr.bf16.mxu1 %v6466_v63  ;;  %v6511_v63 = vld [vmem:[#allocation7 + $0x704] ss:$16 sps:$4 sm:$0xff]  }
 0x2c5   :  { %v2899_v5 = vpop.f32.mrb[4].mxu0  ;;  %v3028_v8 = vpop.f32.mrb[4].mxu1 }
 0x2c6   :  { %v2901_v9 = vpop.f32.mrb[5].mxu0  ;;  %v3030_v11 = vpop.f32.mrb[5].mxu1  ;;  %v3041_v13 = vadd.f32 %v2899_v5, %v128_v4  ;;  %v3043_v17 = vadd.f32 %v3028_v8, %v136_v7  ;;  %v6515_v5 = vld [vmem:[#allocation7 + $0x720] ss:$16 sps:$4 sm:$0xff]   ;;  %v6526_v8 = vld [vmem:[#allocation7 + $0x74c] ss:$16 sps:$4 sm:$0xff]  }
 0x2c7   :  { %v2903_v12 = vpop.f32.mrb[6].mxu0  ;;  %v3032_v15 = vpop.f32.mrb[6].mxu1  ;;  %v3042_v18 = vadd.f32 %v2901_v9, %v132_v6  ;;  %v3044_v22 = vadd.f32 %v3030_v11, %v140_v10  ;;  %v6521_v9 = vld [vmem:[#allocation7 + $0x740] ss:$16 sps:$4 sm:$0xff]   ;;  %v6529_v11 = vld [vmem:[#allocation7 + $0x764] ss:$16 sps:$4 sm:$0xff]  }
 0x2c8   :  { %v3049_v14 = vadd.f32 %v2903_v12, %v128_v4  ;;  %v2905_v16 = vpop.f32.mrb[7].mxu0  ;;  %v3051_v19 = vadd.f32 %v3032_v15, %v136_v7  ;;  %v3034_v21 = vpop.f32.mrb[7].mxu1  ;;  %v6520_v4 = vld [vmem:[#allocation7 + $0x72c] ss:$16 sps:$4 sm:$0xff]   ;;  %v6518_v7 = vld [vmem:[#allocation7 + $0x728] ss:$16 sps:$4 sm:$0xff]  }
 0x2c9   :  { %v3050_v20 = vadd.f32 %v2905_v16, %v132_v6  ;;  %v3052_v24 = vadd.f32 %v3034_v21, %v140_v10  ;;  %v6523_v6 = vld [vmem:[#allocation7 + $0x744] ss:$16 sps:$4 sm:$0xff]   ;;  %v6524_v10 = vld [vmem:[#allocation7 + $0x748] ss:$16 sps:$4 sm:$0xff]   ;;  %v6532_v12 = vld [vmem:[#allocation7 + $0x76c] ss:$16 sps:$4 sm:$0xff]  }
 0x2ca   :  { %v3092_v23 = vpack.c.bf16 %v3049_v14, %v3041_v13  ;;  %v6935_v25 = vpack.c.bf16 %v3051_v19, %v3043_v17  ;;  %v6527_v13 = vld [vmem:[#allocation7 + $0x760] ss:$16 sps:$4 sm:$0xff]   ;;  %v6530_v14 = vld [vmem:[#allocation7 + $0x768] ss:$16 sps:$4 sm:$0xff]   ;;  %v6535_v15 = vld [vmem:[#allocation7 + $0x784] ss:$16 sps:$4 sm:$0xff]  }
 0x2cb   :  { %v3093_v26 = vpack.c.bf16 %v3050_v20, %v3042_v18  ;;  %v3095_v36 = vpack.c.bf16 %v3052_v24, %v3044_v22  ;;  %v6538_v16 = vld [vmem:[#allocation7 + $0x78c] ss:$16 sps:$4 sm:$0xff]   ;;  %v6533_v17 = vld [vmem:[#allocation7 + $0x780] ss:$16 sps:$4 sm:$0xff]   ;;  %v6536_v18 = vld [vmem:[#allocation7 + $0x788] ss:$16 sps:$4 sm:$0xff]  }
 0x2cc   :  { %v6541_v19 = vld [vmem:[#allocation7 + $0x7a4] ss:$16 sps:$4 sm:$0xff]   ;;  %v6544_v20 = vld [vmem:[#allocation7 + $0x7ac] ss:$16 sps:$4 sm:$0xff]   ;;  %v6539_v21 = vld [vmem:[#allocation7 + $0x7a0] ss:$16 sps:$4 sm:$0xff]  }
 0x2cd   :  { %4772 = vmatprep.mubr.bf16.mxu0 %v3093_v26  ;;  %4944 = vmatprep.mubr.bf16.mxu1 %v3093_v26  ;;  %v6542_v22 = vld [vmem:[#allocation7 + $0x7a8] ss:$16 sps:$4 sm:$0xff]   ;;  %v6550_v24 = vld [vmem:[#allocation7 + $0x7cc] ss:$16 sps:$4 sm:$0xff]   ;;  %v6545_v26 = vld [vmem:[#allocation7 + $0x7c0] ss:$16 sps:$4 sm:$0xff]  }
 0x2ce   :  { %4773 = vmatmul.mubr.bf16.vlgmr.msra.gmra.mrb[8].mxu0 %v3092_v23  ;;  %4945 = vmatmul.mubr.bf16.vlgmr.msra.gmra.mrb[8].mxu1 %v3092_v23  ;;  %v6547_v23 = vld [vmem:[#allocation7 + $0x7c4] ss:$16 sps:$4 sm:$0xff]  }
 0x2cf   :  { %4784 = vmatpush1.bf16.msra.mxu0 %v6461_v27  ;;  %4956 = vmatpush1.bf16.msra.mxu1 %v6464_v28  ;;  %v6548_v27 = vld [vmem:[#allocation7 + $0x7c8] ss:$16 sps:$4 sm:$0xff]   ;;  %v6553_v28 = vld [vmem:[#allocation7 + $0x7e4] ss:$16 sps:$4 sm:$0xff]  }
 0x2d0   :  { %4815 = vmatprep.mubr.bf16.mxu0 %v3095_v36  ;;  %4987 = vmatprep.mubr.bf16.mxu1 %v3095_v36  ;;  %v6556_v36 = vld [vmem:[#allocation7 + $0x7ec] ss:$16 sps:$4 sm:$0xff]  }
 0x2d1   :  { %4785 = vmatprep.subr.bf16.mxu0 %v6469_v29  ;;  %4957 = vmatprep.subr.bf16.mxu1 %v6472_v31  ;;  %v6551_v29 = vld [vmem:[#allocation7 + $0x7e0] ss:$16 sps:$4 sm:$0xff]   ;;  %v6554_v31 = vld [vmem:[#allocation7 + $0x7e8] ss:$16 sps:$4 sm:$0xff]  }
 0x2d3   :  { %4786 = vmatpush1.bf16.msra.mxu0 %v6467_v32  ;;  %4958 = vmatpush1.bf16.msra.mxu1 %v6470_v33  ;;  %v6557_v32 = vld [vmem:[#allocation10 + $0x40] sm:$0xff]  }
 0x2d4   :  { %4787 = vmatprep.subr.bf16.mxu0 %v6475_v35  ;;  %4959 = vmatprep.subr.bf16.mxu1 %v6478_v39  ;;  %v6558_v33 = vld [vmem:[#allocation10 + $0xc0] sm:$0xff]  }
 0x2d5   :  { %v6559_v35 = vld [vmem:[#allocation10] sm:$0xff]  }
 0x2d6   :  { %v6560_v39 = vld [vmem:[#allocation10 + $0x80] sm:$0xff]  }
 0x2d7   :  { %4788 = vmatpush1.bf16.msra.mxu0 %v6473_v41  ;;  %4960 = vmatpush1.bf16.msra.mxu1 %v6476_v42  ;;  %v6561_v41 = vld [vmem:[#allocation10 + $0x48] sm:$0xff]  }
 0x2d8   :  { %4789 = vmatprep.subr.bf16.mxu0 %v6481_v43  ;;  %4961 = vmatprep.subr.bf16.mxu1 %v6484_v44  ;;  %v6562_v42 = vld [vmem:[#allocation10 + $0xc8] sm:$0xff]  }
 0x2d9   :  { %v6563_v43 = vld [vmem:[#allocation10 + $0x8] sm:$0xff]  }
 0x2da   :  { %v6564_v44 = vld [vmem:[#allocation10 + $0x88] sm:$0xff]  }
 0x2db   :  { %4790 = vmatpush1.bf16.msra.mxu0 %v6479_v45  ;;  %4962 = vmatpush1.bf16.msra.mxu1 %v6482_v46  ;;  %v6565_v45 = vld [vmem:[#allocation10 + $0x50] sm:$0xff]  }
 0x2dc   :  { %4791 = vmatprep.subr.bf16.mxu0 %v6487_v47  ;;  %4963 = vmatprep.subr.bf16.mxu1 %v6490_v48  ;;  %v6566_v46 = vld [vmem:[#allocation10 + $0xd0] sm:$0xff]  }
 0x2dd   :  { %v6567_v47 = vld [vmem:[#allocation10 + $0x10] sm:$0xff]  }
 0x2de   :  { %v6568_v48 = vld [vmem:[#allocation10 + $0x90] sm:$0xff]  }
 0x2df   :  { %4792 = vmatpush1.bf16.msra.mxu0 %v6485_v49  ;;  %4964 = vmatpush1.bf16.msra.mxu1 %v6488_v50  ;;  %v6569_v49 = vld [vmem:[#allocation10 + $0x58] sm:$0xff]  }
 0x2e0   :  { %4793 = vmatprep.subr.bf16.mxu0 %v6493_v51  ;;  %4965 = vmatprep.subr.bf16.mxu1 %v6496_v52  ;;  %v6570_v50 = vld [vmem:[#allocation10 + $0xd8] sm:$0xff]   ;;  %v6573_v52 = vld [vmem:[#allocation10 + $0x60] sm:$0xff]  }
 0x2e1   :  { %v6571_v51 = vld [vmem:[#allocation10 + $0x18] sm:$0xff]  }
 0x2e3   :  { %4794 = vmatpush1.bf16.msra.mxu0 %v6491_v53  ;;  %4966 = vmatpush1.bf16.msra.mxu1 %v6494_v54  ;;  %v6574_v53 = vld [vmem:[#allocation10 + $0xe0] sm:$0xff]  }
 0x2e4   :  { %4795 = vmatprep.subr.bf16.mxu0 %v6499_v55  ;;  %4967 = vmatprep.subr.bf16.mxu1 %v6502_v56  ;;  %v6575_v54 = vld [vmem:[#allocation10 + $0x20] sm:$0xff]   ;;  %v6577_v56 = vld [vmem:[#allocation10 + $0x68] sm:$0xff]  }
 0x2e5   :  { %v6576_v55 = vld [vmem:[#allocation10 + $0xa0] sm:$0xff]  }
 0x2e7   :  { %4796 = vmatpush1.bf16.msra.mxu0 %v6497_v57  ;;  %4968 = vmatpush1.bf16.msra.mxu1 %v6500_v58  ;;  %v6578_v57 = vld [vmem:[#allocation10 + $0xe8] sm:$0xff]  }
 0x2e8   :  { %4797 = vmatprep.subr.bf16.mxu0 %v6505_v59  ;;  %4969 = vmatprep.subr.bf16.mxu1 %v6508_v60  ;;  %v6579_v58 = vld [vmem:[#allocation10 + $0x28] sm:$0xff]   ;;  %v6581_v60 = vld [vmem:[#allocation10 + $0x70] sm:$0xff]  }
 0x2e9   :  { %v6580_v59 = vld [vmem:[#allocation10 + $0xa8] sm:$0xff]  }
 0x2eb   :  { %4798 = vmatpush1.bf16.msra.mxu0 %v6503_v61  ;;  %4970 = vmatpush1.bf16.msra.mxu1 %v6506_v62  ;;  %v6582_v61 = vld [vmem:[#allocation10 + $0xf0] sm:$0xff]  }
 0x2ec   :  { %4799 = vmatprep.subr.bf16.mxu0 %v6511_v63  ;;  %4971 = vmatprep.subr.bf16.mxu1 %v6514_v0  ;;  %v6583_v62 = vld [vmem:[#allocation10 + $0x30] sm:$0xff]   ;;  %v6585_v0 = vld [vmem:[#allocation10 + $0x78] sm:$0xff]  }
 0x2ed   :  { %v6584_v63 = vld [vmem:[#allocation10 + $0xb0] sm:$0xff]  }
 0x2ef   :  { %4800 = vmatpush1.bf16.msra.mxu0 %v6509_v1  ;;  %4972 = vmatpush1.bf16.msra.mxu1 %v6512_v2  ;;  %v6586_v1 = vld [vmem:[#allocation10 + $0xf8] sm:$0xff]  }
 0x2f0   :  { %4801 = vmatprep.subr.bf16.mxu0 %v6517_v3  ;;  %4973 = vmatprep.subr.bf16.mxu1 %v6520_v4  ;;  %v6587_v2 = vld [vmem:[#allocation10 + $0x38] sm:$0xff]  }
 0x2f1   :  { %v6588_v3 = vld [vmem:[#allocation10 + $0xb8] sm:$0xff]  }
 0x2f2   :  { %v3352_v4 = vld [vmem:[#allocation8] sm:$0xf] }
 0x2f3   :  { %4802 = vmatpush1.bf16.msra.mxu0 %v6515_v5  ;;  %4974 = vmatpush1.bf16.msra.mxu1 %v6518_v7  ;;  %v3357_v5 = vrot.slane %v3352_v4, %v111_v34  ;;  %v3365_v7 = vrot.slane %v3352_v4, %v119_v37 }
 0x2f4   :  { %4803 = vmatprep.subr.bf16.mxu0 %v6523_v6  ;;  %4975 = vmatprep.subr.bf16.mxu1 %v6526_v8  ;;  %v3361_v6 = vrot.slane %v3352_v4, %v115_v38  ;;  %v3369_v8 = vrot.slane %v3352_v4, %v123_v40 }
 0x2f7   :  { %4804 = vmatpush1.bf16.msra.mxu0 %v6521_v9  ;;  %4976 = vmatpush1.bf16.msra.mxu1 %v6524_v10 }
 0x2f8   :  { %4805 = vmatprep.subr.bf16.mxu0 %v6529_v11  ;;  %4977 = vmatprep.subr.bf16.mxu1 %v6532_v12 }
 0x2fb   :  { %4806 = vmatpush1.bf16.msra.mxu0 %v6527_v13  ;;  %4978 = vmatpush1.bf16.msra.mxu1 %v6530_v14 }
 0x2fc   :  { %4807 = vmatprep.subr.bf16.mxu0 %v6535_v15  ;;  %4979 = vmatprep.subr.bf16.mxu1 %v6538_v16 }
 0x2ff   :  { %4808 = vmatpush1.bf16.msra.mxu0 %v6533_v17  ;;  %4980 = vmatpush1.bf16.msra.mxu1 %v6536_v18 }
 0x300   :  { %4809 = vmatprep.subr.bf16.mxu0 %v6541_v19  ;;  %4981 = vmatprep.subr.bf16.mxu1 %v6544_v20 }
 0x303   :  { %4810 = vmatpush1.bf16.msra.mxu0 %v6539_v21  ;;  %4982 = vmatpush1.bf16.msra.mxu1 %v6542_v22 }
 0x304   :  { %4811 = vmatprep.subr.bf16.mxu0 %v6547_v23  ;;  %4983 = vmatprep.subr.bf16.mxu1 %v6550_v24 }
 0x307   :  { %4812 = vmatpush1.bf16.msra.mxu0 %v6545_v26  ;;  %4984 = vmatpush1.bf16.msra.mxu1 %v6548_v27 }
 0x308   :  { %4813 = vmatprep.subr.bf16.mxu0 %v6553_v28  ;;  %4985 = vmatprep.subr.bf16.mxu1 %v6556_v36 }
 0x30b   :  { %4814 = vmatpush1.bf16.msra.mxu0 %v6551_v29  ;;  %4986 = vmatpush1.bf16.msra.mxu1 %v6554_v31 }
 0x30c   :  { %6044 = vmatprep.subr.bf16.mxu0 %v6557_v32  ;;  %6066 = vmatprep.subr.bf16.mxu1 %v6558_v33 }
 0x30e   :  { %4816 = vmatmul.mubr.bf16.vlgmr.msra.gmra.mrb[8].mxu0 %v6935_v25  ;;  %4988 = vmatmul.mubr.bf16.vlgmr.msra.gmra.mrb[8].mxu1 %v6935_v25  ;;  %v6572_v25 = vld [vmem:[#allocation10 + $0x98] sm:$0xff]  }
 0x30f   :  { %6045 = vmatpush3.bf16.msra.mxu0 %v6559_v35  ;;  %6067 = vmatpush3.bf16.msra.mxu1 %v6560_v39  ;;  %v6011_v39 = vld [vmem:[#allocation11] ss:$0 sm:$0xff] }
 0x310   :  { %6046 = vmatprep.subr.bf16.mxu0 %v6561_v41  ;;  %6068 = vmatprep.subr.bf16.mxu1 %v6562_v42 }
 0x313   :  { %6047 = vmatpush3.bf16.msra.mxu0 %v6563_v43  ;;  %6069 = vmatpush3.bf16.msra.mxu1 %v6564_v44 }
 0x314   :  { %6048 = vmatprep.subr.bf16.mxu0 %v6565_v45  ;;  %6070 = vmatprep.subr.bf16.mxu1 %v6566_v46 }
 0x317   :  { %6049 = vmatpush3.bf16.msra.mxu0 %v6567_v47  ;;  %6071 = vmatpush3.bf16.msra.mxu1 %v6568_v48 }
 0x318   :  { %6050 = vmatprep.subr.bf16.mxu0 %v6569_v49  ;;  %6072 = vmatprep.subr.bf16.mxu1 %v6570_v50 }
 0x31b   :  { %6051 = vmatpush3.bf16.msra.mxu0 %v6571_v51  ;;  %6073 = vmatpush3.bf16.msra.mxu1 %v6572_v25 }
 0x31c   :  { %6052 = vmatprep.subr.bf16.mxu0 %v6573_v52  ;;  %6074 = vmatprep.subr.bf16.mxu1 %v6574_v53 }
 0x31f   :  { %6053 = vmatpush3.bf16.msra.mxu0 %v6575_v54  ;;  %6075 = vmatpush3.bf16.msra.mxu1 %v6576_v55 }
 0x320   :  { %6054 = vmatprep.subr.bf16.mxu0 %v6577_v56  ;;  %6076 = vmatprep.subr.bf16.mxu1 %v6578_v57 }
 0x323   :  { %6055 = vmatpush3.bf16.msra.mxu0 %v6579_v58  ;;  %6077 = vmatpush3.bf16.msra.mxu1 %v6580_v59 }
 0x324   :  { %6056 = vmatprep.subr.bf16.mxu0 %v6581_v60  ;;  %6078 = vmatprep.subr.bf16.mxu1 %v6582_v61 }
 0x327   :  { %6057 = vmatpush3.bf16.msra.mxu0 %v6583_v62  ;;  %6079 = vmatpush3.bf16.msra.mxu1 %v6584_v63 }
 0x328   :  { %6058 = vmatprep.subr.bf16.mxu0 %v6585_v0  ;;  %6080 = vmatprep.subr.bf16.mxu1 %v6586_v1 }
 0x32b   :  { %6059 = vmatpush3.bf16.msra.mxu0 %v6587_v2  ;;  %6081 = vmatpush3.bf16.msra.mxu1 %v6588_v3 }
 0x3e1   :  { %v4817_v9 = vpop.f32.mrb[8].mxu0  ;;  %v4989_v10 = vpop.f32.mrb[8].mxu1 }
 0x3e2   :  { %v6088_v11 = vadd.f32 %v4817_v9, %v3357_v5  ;;  %v6092_v12 = vadd.f32 %v4989_v10, %v3365_v7  ;;  %v4819_v13 = vpop.f32.mrb[9].mxu0  ;;  %v4991_v14 = vpop.f32.mrb[9].mxu1 }
 0x3e3   :  { %v6089_v15 = vadd.f32 %v4819_v13, %v3361_v6  ;;  %v6093_v16 = vadd.f32 %v4991_v14, %v3369_v8  ;;  %v4821_v17 = vpop.f32.mrb[10].mxu0  ;;  %v4993_v18 = vpop.f32.mrb[10].mxu1 }
 0x3e4   :  { %v6090_v34 = vadd.f32 %v4821_v17, %v3357_v5  ;;  %v6094_v19 = vadd.f32 %v4993_v18, %v3365_v7  ;;  %v4823_v20 = vpop.f32.mrb[11].mxu0  ;;  %v4995_v37 = vpop.f32.mrb[11].mxu1  ;;  %v4998_v38 = vmax.f32 %v6088_v11, 0.0  ;;  %v5000_v23 = vmax.f32 %v6092_v12, 0.0 }
 0x3e5   :  { %v6091_v21 = vadd.f32 %v4823_v20, %v3361_v6  ;;  %v6095_v22 = vadd.f32 %v4995_v37, %v3369_v8  ;;  %v4999_v24 = vmax.f32 %v6089_v15, 0.0  ;;  %v5001_v26 = vmax.f32 %v6093_v16, 0.0 }
 0x3e6   :  { %v5002_v30 = vmax.f32 %v6090_v34, 0.0  ;;  %v5004_v40 = vmax.f32 %v6094_v19, 0.0 }
 0x3e7   :  { %v5003_v27 = vmax.f32 %v6091_v21, 0.0  ;;  %v5005_v28 = vmax.f32 %v6095_v22, 0.0 }
 0x3e8   :  { %v5006_v36 = vpack.c.bf16 %v5002_v30, %v4998_v38  ;;  %v5008_v29 = vpack.c.bf16 %v5004_v40, %v5000_v23 }
 0x3e9   :  { %v5007_v31 = vpack.c.bf16 %v5003_v27, %v4999_v24  ;;  %v5009_v32 = vpack.c.bf16 %v5005_v28, %v5001_v26 }
 0x3eb   :  { %5305 = vmatprep.mubr.bf16.mxu0 %v5007_v31  ;;  %5346 = vmatprep.mubr.bf16.mxu1 %v5009_v32 }
 0x3ec   :  { %5306 = vmatmul.mubr.bf16.vlgmr.msra.gmra.mrb[12].mxu0 %v5006_v36  ;;  %5347 = vmatmul.mubr.bf16.vlgmr.msra.gmra.mrb[12].mxu1 %v5008_v29 }
 0x4bf   :  { %v6060_v33 = vpop.f32.mrb[12].mxu0  ;;  %v6082_v35 = vpop.f32.mrb[12].mxu1 }
 0x4c0   :  { %v6061_v41 = vpop.f32.mrb[13].mxu0  ;;  %v6083_v42 = vpop.f32.mrb[13].mxu1 }
 0x4c1   :  { %v6062_v43 = vadd.f32 %v6061_v41, %v6060_v33  ;;  %v6084_v44 = vadd.f32 %v6083_v42, %v6082_v35  ;;  %v6063_v45 = vpop.f32.mrb[14].mxu0  ;;  %v6085_v46 = vpop.f32.mrb[14].mxu1 }
 0x4c2   :  { %v6064_v47 = vpop.f32.mrb[15].mxu0  ;;  %v6086_v48 = vpop.f32.mrb[15].mxu1 }
 0x4c3   :  { %v5308_v49 = vadd.f32 %v6062_v43, %v6011_v39  ;;  %v6065_v50 = vadd.f32 %v6064_v47, %v6063_v45  ;;  %v6087_v51 = vadd.f32 %v6086_v48, %v6085_v46 }
 0x4c5   :  { %v5349_v25 = vadd.f32 %v6084_v44, %v5308_v49  ;;  %v5311_v52 = vadd.f32 %v6065_v50, %v6011_v39 }
 0x4c7   :  { %5355 = vst [vmem:[%s6960_s7] sm:$0xff] %v5349_v25  ;;  %v5352_v53 = vadd.f32 %v6087_v51, %v5311_v52 }
 0x4c9   :  { %5356 = vst [vmem:[%s6960_s7 + $0x8] sm:$0xff] %v5352_v53 }
 0x4ca   :  { %5361 = vsyncpa [#allocation4], 1 }
 0x4cb   :  { %5362 = vsyncpa [#allocation6], 1 }
 0x4cc   :  { %5363 = vsyncpa [#allocation9], 1 }
 0x4cd   :  { %5364 = vsyncpa [#allocation12], 1 }

</bundles_post_ra>
